<compile_context>
chip_gen: v6e
topology: v6e:2x2x1
jax: 0.10.0
libtpu: 0.0.40
codegen_flags: <defaults>
</compile_context>

<pallas_src>
import functools

import jax
import jax.numpy as jnp
from jax.experimental import pallas as pl
from jax.experimental.pallas import tpu as pltpu

EPS = 1e-5          # nn.LayerNorm default
NEG_INF = -1e30     # finite mask sentinel (avoids NaN on fully-masked rows)


def _layernorm(x, gamma, beta):
    mu = jnp.mean(x, axis=-1, keepdims=True)
    var = jnp.mean((x - mu) ** 2, axis=-1, keepdims=True)
    return (x - mu) * jax.lax.rsqrt(var + EPS) * gamma + beta


def _gelu(x):
    # exact (erf-based) GELU, matching nn.GELU() default
    return 0.5 * x * (1.0 + jax.lax.erf(x * 0.7071067811865476))


# ---------------------------------------------------------------------------
# One Transformer-XL layer.  Grid = (batch,).  Per step: fused QKV projection,
# per-head scores + relative-position bias (roll-based shift trick), softmax,
# context into a (S, D) bf16 scratch, then one W_o matmul, residual+LN, FFN,
# residual+LN.
# ---------------------------------------------------------------------------
def transformer_layer_kernel(S, D, hd, H,
                             x_ref, amask_ref, rel_ref,
                             wqkv_ref, bqkv_ref, wo_ref, bo_ref,
                             g1_ref, be1_ref,
                             wf1_ref, bf1_ref, wf2_ref, bf2_ref,
                             g2_ref, be2_ref,
                             out_ref, ctx_ref):
    scale = hd ** (-0.5)
    Mp = rel_ref.shape[2]

    x = x_ref[0]                                      # (S, D) f32
    xb = x.astype(jnp.bfloat16)                       # one cast per grid step
    amask = amask_ref[0]                              # (1, S) additive 0 / -1e30

    # Fused QKV projection: a single lane-dense (S, D) @ (D, 3D) MXU matmul.
    qkv = jnp.dot(xb, wqkv_ref[...],
                  preferred_element_type=jnp.float32) + bqkv_ref[...]
    qkv_b = qkv.astype(jnp.bfloat16)                  # (S, 3D)

    # TODO(synk): for large H switch to lax.fori_loop + pl.ds head slicing; the
    # static loop keeps every slice lane-static and is fine at small H.
    for h in range(H):
        qb = qkv_b[:, h * hd:(h + 1) * hd]
        kb = qkv_b[:, D + h * hd:D + (h + 1) * hd]
        vb = qkv_b[:, 2 * D + h * hd:2 * D + (h + 1) * hd]

        # Attention scores (S, S): contract head_dim of q and k on the MXU.
        scores = jax.lax.dot_general(
            qb, kb, (((1,), (1,)), ((), ())),
            preferred_element_type=jnp.float32) * scale

        # Relative-position bias via the Transformer-XL shift trick:
        #   raw[i, m] = q[i] . band[m]   with m = (j - i) + (S - 1)
        #   bias[i, j] = raw[i, j - i + S - 1]
        # -> one MXU matmul + one strided lane roll (XLU slot, overlaps MXU).
        raw = jnp.dot(qb, rel_ref[h],
                      preferred_element_type=jnp.float32)          # (S, Mp)
        bias = pltpu.roll(raw, Mp - (S - 1), 1,
                          stride=1, stride_axis=0)[:, :S]
        # Zero-padded band columns (m >= 2S-1) are never selected: for j < S the
        # rolled index j - i + S - 1 stays inside [0, 2S-2].

        scores = scores + bias + amask                # additive key mask

        # Softmax in f32; the divide goes to the EUP via approx reciprocal.
        # TODO(synk): use an exact divide if tight parity with f32 PyTorch matters.
        m = jnp.max(scores, axis=-1, keepdims=True)
        p = jnp.exp(scores - m)
        attn = p * pl.reciprocal(jnp.sum(p, axis=-1, keepdims=True), approx=True)

        ctx_h = jnp.dot(attn.astype(jnp.bfloat16), vb,
                        preferred_element_type=jnp.float32)        # (S, hd)
        ctx_ref[:, h * hd:(h + 1) * hd] = ctx_h.astype(jnp.bfloat16)

    # Output projection: one lane-dense (S, D) @ (D, D) matmul over all heads
    # (no per-head f32 read-modify-write accumulation).
    attended = jnp.dot(ctx_ref[...], wo_ref[...],
                       preferred_element_type=jnp.float32) + bo_ref[...]
    x1 = _layernorm(x + attended, g1_ref[...], be1_ref[...])

    hid = _gelu(jnp.dot(x1.astype(jnp.bfloat16), wf1_ref[...],
                        preferred_element_type=jnp.float32) + bf1_ref[...])
    # TODO(synk): on v7x tile this FFN over d_ff chunks when the bf16 FFN
    # weights approach the 64 MiB VMEM budget; unnecessary on v5e/v6e (128 MiB).
    ff = jnp.dot(hid.astype(jnp.bfloat16), wf2_ref[...],
                 preferred_element_type=jnp.float32) + bf2_ref[...]
    out_ref[0] = _layernorm(x1 + ff, g2_ref[...], be2_ref[...])


def run_layer(x, rel_t, amask, lp, num_heads):
    B, S, D = x.shape
    H = num_heads
    hd = D // H
    Mp = rel_t.shape[2]

    kern = functools.partial(transformer_layer_kernel, S, D, hd, H)

    operands = (x, amask, rel_t,
                lp["wqkv"], lp["bqkv"], lp["wo"], lp["bo"],
                lp["g1"], lp["be1"],
                lp["wf1"], lp["bf1"], lp["wf2"], lp["bf2"],
                lp["g2"], lp["be2"])

    # VMEM budget from the actual resident set: per-batch activation / output
    # blocks double-buffered, constant weight blocks counted twice for safety,
    # plus the bf16 ctx scratch and fixed headroom for Mosaic internals.
    def nbytes(a):
        return int(a.size) * a.dtype.itemsize
    act_bytes = 2 * (nbytes(x) // B + nbytes(amask) // B)
    out_bytes = 2 * (S * D * 4)
    weight_bytes = sum(nbytes(a) for a in operands[2:])
    scratch_bytes = S * D * 2
    vmem_limit = int(min(max(act_bytes + out_bytes + 2 * weight_bytes
                             + scratch_bytes + (4 << 20), 16 << 20), 48 << 20))
    # TODO(synk): at production sizes cap <=~56 MiB (plus FFN d_ff tiling) on
    # v7x (64 MiB physical VMEM), and raise toward ~96-110 MiB on v5e/v6e
    # (128 MiB physical) so everything stays resident single-buffered.

    def call(single_buffer_weights):
        def const_spec(shape):
            n = len(shape)
            if single_buffer_weights:
                # Constant-index blocks never change -> single buffer is enough.
                return pl.BlockSpec(tuple(shape), lambda b: (0,) * n,
                                    pipeline_mode=pl.Buffered(1))
            return pl.BlockSpec(tuple(shape), lambda b: (0,) * n)

        in_specs = [
            pl.BlockSpec((1, S, D), lambda b: (b, 0, 0)),    # x
            pl.BlockSpec((1, 1, S), lambda b: (b, 0, 0)),    # additive key mask
        ] + [const_spec(op.shape) for op in operands[2:]]

        return pl.pallas_call(
            kern,
            grid=(B,),
            in_specs=in_specs,
            out_specs=pl.BlockSpec((1, S, D), lambda b: (b, 0, 0)),
            # TODO(synk): emit bf16 inter-layer activations (or fuse adjacent
            # layers into one pallas_call) to halve per-layer activation HBM
            # traffic when the layer is memory-bound.
            out_shape=jax.ShapeDtypeStruct((B, S, D), jnp.float32),
            scratch_shapes=[pltpu.VMEM((S, D), jnp.bfloat16)],
            compiler_params=pltpu.CompilerParams(
                # TODO(synk): on v7x with B < 2 add a parallel q-row tile axis so
                # both TensorCores get work; S/hd should also be padded toward
                # (8,128) multiples at production shapes.
                dimension_semantics=("parallel",),
                vmem_limit_bytes=vmem_limit),
        )(*operands)

    try:
        return call(True)          # single-buffered constant weight blocks
    except Exception:              # pipeline_mode unsupported in this build
        return call(False)


# ---------------------------------------------------------------------------
# Parameter init + full forward
# ---------------------------------------------------------------------------
def init_params(key, vocab_size, d_model, num_layers, num_heads, d_ff,
                max_len, num_classes):
    keys = iter(jax.random.split(key, 256))
    bf16 = jnp.bfloat16

    def nrm(shape, scale=0.02, dtype=jnp.float32):
        return (scale * jax.random.normal(next(keys), shape)).astype(dtype)

    params = {
        "embedding": nrm((vocab_size, d_model), 1.0),
        "rel_table": nrm((2 * max_len - 1, d_model), 1.0),
        "layers": [],
        "classifier": {},
    }
    for _ in range(num_layers):
        lp = {
            # Fused QKV weight, columns [Wq | Wk | Wv].  Big matmul weights in
            # bf16 (halved HBM/DMA traffic); biases / LayerNorm params in f32.
            "wqkv": nrm((d_model, 3 * d_model), dtype=bf16),
            "bqkv": nrm((1, 3 * d_model)),
            "wo": nrm((d_model, d_model), dtype=bf16), "bo": nrm((1, d_model)),
            "g1": jnp.ones((1, d_model), jnp.float32),
            "be1": jnp.zeros((1, d_model), jnp.float32),
            "wf1": nrm((d_model, d_ff), dtype=bf16), "bf1": nrm((1, d_ff)),
            "wf2": nrm((d_ff, d_model), dtype=bf16), "bf2": nrm((1, d_model)),
            "g2": jnp.ones((1, d_model), jnp.float32),
            "be2": jnp.zeros((1, d_model), jnp.float32),
        }
        params["layers"].append(lp)
    params["classifier"] = {
        "w1": nrm((d_model, d_model)), "b1": nrm((1, d_model)),
        "g": jnp.ones((1, d_model), jnp.float32),
        "be": jnp.zeros((1, d_model), jnp.float32),
        "w2": nrm((d_model, num_classes)), "b2": nrm((1, num_classes)),
    }
    return params


def transformer_xl_classifier_forward(params, input_ids, attention_mask,
                                      num_heads, max_len):
    B, S = input_ids.shape
    D = params["embedding"].shape[1]
    H = num_heads
    hd = D // H

    # Embedding lookup (plain XLA glue).
    x = jnp.take(params["embedding"], input_ids, axis=0)            # (B, S, D)

    # Relative-position band: row m holds rel_table[clip((m-(S-1)) + max_len-1)]
    # (exactly the rows the PyTorch module gathers; clamp matches torch.clamp),
    # padded to a 128-lane multiple and pre-transposed per head to
    # (H, head_dim, Mp) so the in-kernel bias matmul has no transposed operand.
    r = jnp.arange(2 * S - 1) - (S - 1)
    band_idx = jnp.clip(r + max_len - 1, 0, 2 * max_len - 2)
    band = jnp.take(params["rel_table"], band_idx, axis=0)          # (2S-1, D)
    Mp = ((2 * S - 1 + 127) // 128) * 128
    band = jnp.pad(band, ((0, Mp - (2 * S - 1)), (0, 0)))
    rel_t = band.reshape(Mp, H, hd).transpose(1, 2, 0).astype(jnp.bfloat16)

    # Precomputed additive key mask (0 keep / NEG_INF drop): the per-head
    # in-kernel select becomes a broadcast add.
    amask = jnp.where(attention_mask == 0, NEG_INF, 0.0).astype(jnp.float32)
    amask = amask.reshape(B, 1, S)

    for lp in params["layers"]:
        x = run_layer(x, rel_t, amask, lp, num_heads)

    # Last non-padded position per batch element (glue gather).
    idx = jnp.sum(attention_mask.astype(jnp.int32), axis=1) - 1
    last_hidden = x[jnp.arange(B), idx]                             # (B, D)

    # Classifier head: Linear -> LayerNorm -> GELU -> Linear.  num_classes is
    # far below 128 lanes, so per the perf review this stays in plain XLA.
    cp = params["classifier"]
    z = last_hidden @ cp["w1"] + cp["b1"]
    z = _layernorm(z, cp["g"], cp["be"])
    z = _gelu(z)
    return z @ cp["w2"] + cp["b2"]


if __name__ == "__main__":
    vocab_size, d_model, num_layers = 50, 32, 2
    num_heads, d_ff, max_len, num_classes = 4, 64, 16, 2
    B, S = 2, 8

    key = jax.random.PRNGKey(0)
    pkey, ikey = jax.random.split(key)
    params = init_params(pkey, vocab_size, d_model, num_layers, num_heads,
                         d_ff, max_len, num_classes)
    input_ids = jax.random.randint(ikey, (B, S), 0, vocab_size, dtype=jnp.int32)
    attention_mask = jnp.array(
        [[1, 1, 1, 1, 1, 1, 0, 0],
         [1, 1, 1, 1, 1, 1, 1, 1]], dtype=jnp.int32)

    logits = transformer_xl_classifier_forward(
        params, input_ids, attention_mask, num_heads=num_heads, max_len=max_len)
    jax.block_until_ready(logits)
    assert logits.shape == (B, num_classes)
    assert bool(jnp.all(jnp.isfinite(logits)))
    print("KERNEL_OK")
</pallas_src>

<mosaic_0001>
module attributes {stable_mosaic.version = 11 : i64} {
  func.func @transformer_layer_kernel(%arg0: i32, %arg1: memref<1x8x32xf32, #tpu.memory_space<vmem>>, %arg2: memref<1x1x8xf32, #tpu.memory_space<vmem>>, %arg3: memref<4x8x128xbf16, #tpu.memory_space<vmem>>, %arg4: memref<32x96xbf16, #tpu.memory_space<vmem>>, %arg5: memref<1x96xf32, #tpu.memory_space<vmem>>, %arg6: memref<32x32xbf16, #tpu.memory_space<vmem>>, %arg7: memref<1x32xf32, #tpu.memory_space<vmem>>, %arg8: memref<1x32xf32, #tpu.memory_space<vmem>>, %arg9: memref<1x32xf32, #tpu.memory_space<vmem>>, %arg10: memref<32x64xbf16, #tpu.memory_space<vmem>>, %arg11: memref<1x64xf32, #tpu.memory_space<vmem>>, %arg12: memref<64x32xbf16, #tpu.memory_space<vmem>>, %arg13: memref<1x32xf32, #tpu.memory_space<vmem>>, %arg14: memref<1x32xf32, #tpu.memory_space<vmem>>, %arg15: memref<1x32xf32, #tpu.memory_space<vmem>>, %arg16: memref<1x8x32xf32, #tpu.memory_space<vmem>>, %arg17: memref<8x32xbf16, #tpu.memory_space<vmem>>) attributes {dimension_semantics = [#tpu.dimension_semantics<parallel>], iteration_bounds = array<i64: 2>, scalar_prefetch = 0 : i64, scratch_operands = 1 : i64, tpu.core_type = #tpu.core_type<tc>, window_params = [{transform_indices = @transform_0, window_bounds = array<i64: 1, 8, 32>}, {transform_indices = @transform_1, window_bounds = array<i64: 1, 1, 8>}, {pipeline_mode = #tpu.pipeline_mode<synchronous>, transform_indices = @transform_2, window_bounds = array<i64: 4, 8, 128>}, {pipeline_mode = #tpu.pipeline_mode<synchronous>, transform_indices = @transform_3, window_bounds = array<i64: 32, 96>}, {pipeline_mode = #tpu.pipeline_mode<synchronous>, transform_indices = @transform_4, window_bounds = array<i64: 1, 96>}, {pipeline_mode = #tpu.pipeline_mode<synchronous>, transform_indices = @transform_5, window_bounds = array<i64: 32, 32>}, {pipeline_mode = #tpu.pipeline_mode<synchronous>, transform_indices = @transform_6, window_bounds = array<i64: 1, 32>}, {pipeline_mode = #tpu.pipeline_mode<synchronous>, transform_indices = @transform_7, window_bounds = array<i64: 1, 32>}, {pipeline_mode = #tpu.pipeline_mode<synchronous>, transform_indices = @transform_8, window_bounds = array<i64: 1, 32>}, {pipeline_mode = #tpu.pipeline_mode<synchronous>, transform_indices = @transform_9, window_bounds = array<i64: 32, 64>}, {pipeline_mode = #tpu.pipeline_mode<synchronous>, transform_indices = @transform_10, window_bounds = array<i64: 1, 64>}, {pipeline_mode = #tpu.pipeline_mode<synchronous>, transform_indices = @transform_11, window_bounds = array<i64: 64, 32>}, {pipeline_mode = #tpu.pipeline_mode<synchronous>, transform_indices = @transform_12, window_bounds = array<i64: 1, 32>}, {pipeline_mode = #tpu.pipeline_mode<synchronous>, transform_indices = @transform_13, window_bounds = array<i64: 1, 32>}, {pipeline_mode = #tpu.pipeline_mode<synchronous>, transform_indices = @transform_14, window_bounds = array<i64: 1, 32>}, {transform_indices = @transform_15, window_bounds = array<i64: 1, 8, 32>}]} {
    %c0 = arith.constant 0 : index
    %c0_0 = arith.constant 0 : index
    %c0_1 = arith.constant 0 : index
    %0 = vector.load %arg1[%c0, %c0_0, %c0_1] : memref<1x8x32xf32, #tpu.memory_space<vmem>>, vector<1x8x32xf32>
    %1 = vector.shape_cast %0 : vector<1x8x32xf32> to vector<8x32xf32>
    %2 = arith.truncf %1 : vector<8x32xf32> to vector<8x32xbf16>
    %c0_2 = arith.constant 0 : index
    %c0_3 = arith.constant 0 : index
    %c0_4 = arith.constant 0 : index
    %3 = vector.load %arg2[%c0_2, %c0_3, %c0_4] : memref<1x1x8xf32, #tpu.memory_space<vmem>>, vector<1x1x8xf32>
    %4 = vector.shape_cast %3 : vector<1x1x8xf32> to vector<1x8xf32>
    %c0_5 = arith.constant 0 : index
    %c0_6 = arith.constant 0 : index
    %5 = vector.load %arg4[%c0_5, %c0_6] : memref<32x96xbf16, #tpu.memory_space<vmem>>, vector<32x96xbf16>
    %cst = arith.constant dense<0.000000e+00> : vector<8x96xf32>
    %6 = tpu.matmul %2, %5, %cst {dimension_numbers = #tpu.dot_dimension_numbers<[1], [0], [0], [1], [0, 0, 1, 1], [], []>} : vector<8x32xbf16>, vector<32x96xbf16>, vector<8x96xf32> -> vector<8x96xf32>
    %c0_7 = arith.constant 0 : index
    %c0_8 = arith.constant 0 : index
    %7 = vector.load %arg5[%c0_7, %c0_8] : memref<1x96xf32, #tpu.memory_space<vmem>>, vector<1x96xf32>
    %8 = vector.broadcast %7 : vector<1x96xf32> to vector<8x96xf32>
    %9 = arith.addf %6, %8 : vector<8x96xf32>
    %10 = arith.truncf %9 : vector<8x96xf32> to vector<8x96xbf16>
    %11 = vector.extract_strided_slice %10 {offsets = [0, 0], sizes = [8, 8], strides = [1, 1]} : vector<8x96xbf16> to vector<8x8xbf16>
    %12 = vector.extract_strided_slice %10 {offsets = [0, 32], sizes = [8, 8], strides = [1, 1]} : vector<8x96xbf16> to vector<8x8xbf16>
    %13 = vector.extract_strided_slice %10 {offsets = [0, 64], sizes = [8, 8], strides = [1, 1]} : vector<8x96xbf16> to vector<8x8xbf16>
    %cst_9 = arith.constant dense<0.000000e+00> : vector<8x8xf32>
    %14 = tpu.matmul %11, %12, %cst_9 {dimension_numbers = #tpu.dot_dimension_numbers<[1], [1], [0], [0], [0, 0, 1, 0], [], []>} : vector<8x8xbf16>, vector<8x8xbf16>, vector<8x8xf32> -> vector<8x8xf32>
    %cst_10 = arith.constant 0.353553385 : f32
    %15 = vector.broadcast %cst_10 : f32 to vector<8x8xf32>
    %16 = arith.mulf %14, %15 : vector<8x8xf32>
    %c0_11 = arith.constant 0 : index
    %c0_12 = arith.constant 0 : index
    %c0_13 = arith.constant 0 : index
    %17 = vector.load %arg3[%c0_11, %c0_12, %c0_13] : memref<4x8x128xbf16, #tpu.memory_space<vmem>>, vector<1x8x128xbf16>
    %18 = vector.shape_cast %17 : vector<1x8x128xbf16> to vector<8x128xbf16>
    %cst_14 = arith.constant dense<0.000000e+00> : vector<8x128xf32>
    %19 = tpu.matmul %11, %18, %cst_14 {dimension_numbers = #tpu.dot_dimension_numbers<[1], [0], [0], [1], [0, 0, 1, 1], [], []>} : vector<8x8xbf16>, vector<8x128xbf16>, vector<8x128xf32> -> vector<8x128xf32>
    %c121_i32 = arith.constant 121 : i32
    %20 = tpu.dynamic_rotate %19 by %c121_i32 dim 1 {stride = 1 : si32, stride_dimension = 0 : si32} : vector<8x128xf32>, i32 -> vector<8x128xf32>
    %21 = vector.extract_strided_slice %20 {offsets = [0, 0], sizes = [8, 8], strides = [1, 1]} : vector<8x128xf32> to vector<8x8xf32>
    %22 = arith.addf %16, %21 : vector<8x8xf32>
    %23 = vector.broadcast %4 : vector<1x8xf32> to vector<8x8xf32>
    %24 = arith.addf %22, %23 : vector<8x8xf32>
    %cst_15 = arith.constant dense<0xFF800000> : vector<8xf32>
    %25 = vector.multi_reduction <maximumf>, %24, %cst_15 [1] : vector<8x8xf32> to vector<8xf32>
    %26 = vector.shape_cast %25 : vector<8xf32> to vector<8x1xf32>
    %27 = vector.broadcast %26 : vector<8x1xf32> to vector<8x8xf32>
    %28 = arith.subf %24, %27 : vector<8x8xf32>
    %29 = math.exp %28 : vector<8x8xf32>
    %cst_16 = arith.constant dense<0.000000e+00> : vector<8xf32>
    %30 = vector.multi_reduction <add>, %29, %cst_16 [1] : vector<8x8xf32> to vector<8xf32>
    %31 = vector.shape_cast %30 : vector<8xf32> to vector<8x1xf32>
    %32 = tpu.reciprocal %31 {approx = true} : vector<8x1xf32> -> vector<8x1xf32>
    %33 = vector.broadcast %32 : vector<8x1xf32> to vector<8x8xf32>
    %34 = arith.mulf %29, %33 : vector<8x8xf32>
    %35 = arith.truncf %34 : vector<8x8xf32> to vector<8x8xbf16>
    %cst_17 = arith.constant dense<0.000000e+00> : vector<8x8xf32>
    %36 = tpu.matmul %35, %13, %cst_17 {dimension_numbers = #tpu.dot_dimension_numbers<[1], [0], [0], [1], [0, 0, 1, 1], [], []>} : vector<8x8xbf16>, vector<8x8xbf16>, vector<8x8xf32> -> vector<8x8xf32>
    %37 = arith.truncf %36 : vector<8x8xf32> to vector<8x8xbf16>
    %c0_18 = arith.constant 0 : index
    %c0_19 = arith.constant 0 : index
    %38 = vector.load %arg17[%c0_18, %c0_19] : memref<8x32xbf16, #tpu.memory_space<vmem>>, vector<8x8xbf16>
    tpu.vector_store %arg17[%c0_18, %c0_19], %37 {strides = array<i32>} : memref<8x32xbf16, #tpu.memory_space<vmem>>, vector<8x8xbf16>,
    %39 = vector.extract_strided_slice %10 {offsets = [0, 8], sizes = [8, 8], strides = [1, 1]} : vector<8x96xbf16> to vector<8x8xbf16>
    %40 = vector.extract_strided_slice %10 {offsets = [0, 40], sizes = [8, 8], strides = [1, 1]} : vector<8x96xbf16> to vector<8x8xbf16>
    %41 = vector.extract_strided_slice %10 {offsets = [0, 72], sizes = [8, 8], strides = [1, 1]} : vector<8x96xbf16> to vector<8x8xbf16>
    %cst_20 = arith.constant dense<0.000000e+00> : vector<8x8xf32>
    %42 = tpu.matmul %39, %40, %cst_20 {dimension_numbers = #tpu.dot_dimension_numbers<[1], [1], [0], [0], [0, 0, 1, 0], [], []>} : vector<8x8xbf16>, vector<8x8xbf16>, vector<8x8xf32> -> vector<8x8xf32>
    %cst_21 = arith.constant 0.353553385 : f32
    %43 = vector.broadcast %cst_21 : f32 to vector<8x8xf32>
    %44 = arith.mulf %42, %43 : vector<8x8xf32>
    %c1 = arith.constant 1 : index
    %c0_22 = arith.constant 0 : index
    %c0_23 = arith.constant 0 : index
    %45 = vector.load %arg3[%c1, %c0_22, %c0_23] : memref<4x8x128xbf16, #tpu.memory_space<vmem>>, vector<1x8x128xbf16>
    %46 = vector.shape_cast %45 : vector<1x8x128xbf16> to vector<8x128xbf16>
    %cst_24 = arith.constant dense<0.000000e+00> : vector<8x128xf32>
    %47 = tpu.matmul %39, %46, %cst_24 {dimension_numbers = #tpu.dot_dimension_numbers<[1], [0], [0], [1], [0, 0, 1, 1], [], []>} : vector<8x8xbf16>, vector<8x128xbf16>, vector<8x128xf32> -> vector<8x128xf32>
    %c121_i32_25 = arith.constant 121 : i32
    %48 = tpu.dynamic_rotate %47 by %c121_i32_25 dim 1 {stride = 1 : si32, stride_dimension = 0 : si32} : vector<8x128xf32>, i32 -> vector<8x128xf32>
    %49 = vector.extract_strided_slice %48 {offsets = [0, 0], sizes = [8, 8], strides = [1, 1]} : vector<8x128xf32> to vector<8x8xf32>
    %50 = arith.addf %44, %49 : vector<8x8xf32>
    %51 = vector.broadcast %4 : vector<1x8xf32> to vector<8x8xf32>
    %52 = arith.addf %50, %51 : vector<8x8xf32>
    %cst_26 = arith.constant dense<0xFF800000> : vector<8xf32>
    %53 = vector.multi_reduction <maximumf>, %52, %cst_26 [1] : vector<8x8xf32> to vector<8xf32>
    %54 = vector.shape_cast %53 : vector<8xf32> to vector<8x1xf32>
    %55 = vector.broadcast %54 : vector<8x1xf32> to vector<8x8xf32>
    %56 = arith.subf %52, %55 : vector<8x8xf32>
    %57 = math.exp %56 : vector<8x8xf32>
    %cst_27 = arith.constant dense<0.000000e+00> : vector<8xf32>
    %58 = vector.multi_reduction <add>, %57, %cst_27 [1] : vector<8x8xf32> to vector<8xf32>
    %59 = vector.shape_cast %58 : vector<8xf32> to vector<8x1xf32>
    %60 = tpu.reciprocal %59 {approx = true} : vector<8x1xf32> -> vector<8x1xf32>
    %61 = vector.broadcast %60 : vector<8x1xf32> to vector<8x8xf32>
    %62 = arith.mulf %57, %61 : vector<8x8xf32>
    %63 = arith.truncf %62 : vector<8x8xf32> to vector<8x8xbf16>
    %cst_28 = arith.constant dense<0.000000e+00> : vector<8x8xf32>
    %64 = tpu.matmul %63, %41, %cst_28 {dimension_numbers = #tpu.dot_dimension_numbers<[1], [0], [0], [1], [0, 0, 1, 1], [], []>} : vector<8x8xbf16>, vector<8x8xbf16>, vector<8x8xf32> -> vector<8x8xf32>
    %65 = arith.truncf %64 : vector<8x8xf32> to vector<8x8xbf16>
    %c0_29 = arith.constant 0 : index
    %c8 = arith.constant 8 : index
    %66 = vector.load %arg17[%c0_29, %c8] : memref<8x32xbf16, #tpu.memory_space<vmem>>, vector<8x8xbf16>
    tpu.vector_store %arg17[%c0_29, %c8], %65 {strides = array<i32>} : memref<8x32xbf16, #tpu.memory_space<vmem>>, vector<8x8xbf16>,
    %67 = vector.extract_strided_slice %10 {offsets = [0, 16], sizes = [8, 8], strides = [1, 1]} : vector<8x96xbf16> to vector<8x8xbf16>
    %68 = vector.extract_strided_slice %10 {offsets = [0, 48], sizes = [8, 8], strides = [1, 1]} : vector<8x96xbf16> to vector<8x8xbf16>
    %69 = vector.extract_strided_slice %10 {offsets = [0, 80], sizes = [8, 8], strides = [1, 1]} : vector<8x96xbf16> to vector<8x8xbf16>
    %cst_30 = arith.constant dense<0.000000e+00> : vector<8x8xf32>
    %70 = tpu.matmul %67, %68, %cst_30 {dimension_numbers = #tpu.dot_dimension_numbers<[1], [1], [0], [0], [0, 0, 1, 0], [], []>} : vector<8x8xbf16>, vector<8x8xbf16>, vector<8x8xf32> -> vector<8x8xf32>
    %cst_31 = arith.constant 0.353553385 : f32
    %71 = vector.broadcast %cst_31 : f32 to vector<8x8xf32>
    %72 = arith.mulf %70, %71 : vector<8x8xf32>
    %c2 = arith.constant 2 : index
    %c0_32 = arith.constant 0 : index
    %c0_33 = arith.constant 0 : index
    %73 = vector.load %arg3[%c2, %c0_32, %c0_33] : memref<4x8x128xbf16, #tpu.memory_space<vmem>>, vector<1x8x128xbf16>
    %74 = vector.shape_cast %73 : vector<1x8x128xbf16> to vector<8x128xbf16>
    %cst_34 = arith.constant dense<0.000000e+00> : vector<8x128xf32>
    %75 = tpu.matmul %67, %74, %cst_34 {dimension_numbers = #tpu.dot_dimension_numbers<[1], [0], [0], [1], [0, 0, 1, 1], [], []>} : vector<8x8xbf16>, vector<8x128xbf16>, vector<8x128xf32> -> vector<8x128xf32>
    %c121_i32_35 = arith.constant 121 : i32
    %76 = tpu.dynamic_rotate %75 by %c121_i32_35 dim 1 {stride = 1 : si32, stride_dimension = 0 : si32} : vector<8x128xf32>, i32 -> vector<8x128xf32>
    %77 = vector.extract_strided_slice %76 {offsets = [0, 0], sizes = [8, 8], strides = [1, 1]} : vector<8x128xf32> to vector<8x8xf32>
    %78 = arith.addf %72, %77 : vector<8x8xf32>
    %79 = vector.broadcast %4 : vector<1x8xf32> to vector<8x8xf32>
    %80 = arith.addf %78, %79 : vector<8x8xf32>
    %cst_36 = arith.constant dense<0xFF800000> : vector<8xf32>
    %81 = vector.multi_reduction <maximumf>, %80, %cst_36 [1] : vector<8x8xf32> to vector<8xf32>
    %82 = vector.shape_cast %81 : vector<8xf32> to vector<8x1xf32>
    %83 = vector.broadcast %82 : vector<8x1xf32> to vector<8x8xf32>
    %84 = arith.subf %80, %83 : vector<8x8xf32>
    %85 = math.exp %84 : vector<8x8xf32>
    %cst_37 = arith.constant dense<0.000000e+00> : vector<8xf32>
    %86 = vector.multi_reduction <add>, %85, %cst_37 [1] : vector<8x8xf32> to vector<8xf32>
    %87 = vector.shape_cast %86 : vector<8xf32> to vector<8x1xf32>
    %88 = tpu.reciprocal %87 {approx = true} : vector<8x1xf32> -> vector<8x1xf32>
    %89 = vector.broadcast %88 : vector<8x1xf32> to vector<8x8xf32>
    %90 = arith.mulf %85, %89 : vector<8x8xf32>
    %91 = arith.truncf %90 : vector<8x8xf32> to vector<8x8xbf16>
    %cst_38 = arith.constant dense<0.000000e+00> : vector<8x8xf32>
    %92 = tpu.matmul %91, %69, %cst_38 {dimension_numbers = #tpu.dot_dimension_numbers<[1], [0], [0], [1], [0, 0, 1, 1], [], []>} : vector<8x8xbf16>, vector<8x8xbf16>, vector<8x8xf32> -> vector<8x8xf32>
    %93 = arith.truncf %92 : vector<8x8xf32> to vector<8x8xbf16>
    %c0_39 = arith.constant 0 : index
    %c16 = arith.constant 16 : index
    %94 = vector.load %arg17[%c0_39, %c16] : memref<8x32xbf16, #tpu.memory_space<vmem>>, vector<8x8xbf16>
    tpu.vector_store %arg17[%c0_39, %c16], %93 {strides = array<i32>} : memref<8x32xbf16, #tpu.memory_space<vmem>>, vector<8x8xbf16>,
    %95 = vector.extract_strided_slice %10 {offsets = [0, 24], sizes = [8, 8], strides = [1, 1]} : vector<8x96xbf16> to vector<8x8xbf16>
    %96 = vector.extract_strided_slice %10 {offsets = [0, 56], sizes = [8, 8], strides = [1, 1]} : vector<8x96xbf16> to vector<8x8xbf16>
    %97 = vector.extract_strided_slice %10 {offsets = [0, 88], sizes = [8, 8], strides = [1, 1]} : vector<8x96xbf16> to vector<8x8xbf16>
    %cst_40 = arith.constant dense<0.000000e+00> : vector<8x8xf32>
    %98 = tpu.matmul %95, %96, %cst_40 {dimension_numbers = #tpu.dot_dimension_numbers<[1], [1], [0], [0], [0, 0, 1, 0], [], []>} : vector<8x8xbf16>, vector<8x8xbf16>, vector<8x8xf32> -> vector<8x8xf32>
    %cst_41 = arith.constant 0.353553385 : f32
    %99 = vector.broadcast %cst_41 : f32 to vector<8x8xf32>
    %100 = arith.mulf %98, %99 : vector<8x8xf32>
    %c3 = arith.constant 3 : index
    %c0_42 = arith.constant 0 : index
    %c0_43 = arith.constant 0 : index
    %101 = vector.load %arg3[%c3, %c0_42, %c0_43] : memref<4x8x128xbf16, #tpu.memory_space<vmem>>, vector<1x8x128xbf16>
    %102 = vector.shape_cast %101 : vector<1x8x128xbf16> to vector<8x128xbf16>
    %cst_44 = arith.constant dense<0.000000e+00> : vector<8x128xf32>
    %103 = tpu.matmul %95, %102, %cst_44 {dimension_numbers = #tpu.dot_dimension_numbers<[1], [0], [0], [1], [0, 0, 1, 1], [], []>} : vector<8x8xbf16>, vector<8x128xbf16>, vector<8x128xf32> -> vector<8x128xf32>
    %c121_i32_45 = arith.constant 121 : i32
    %104 = tpu.dynamic_rotate %103 by %c121_i32_45 dim 1 {stride = 1 : si32, stride_dimension = 0 : si32} : vector<8x128xf32>, i32 -> vector<8x128xf32>
    %105 = vector.extract_strided_slice %104 {offsets = [0, 0], sizes = [8, 8], strides = [1, 1]} : vector<8x128xf32> to vector<8x8xf32>
    %106 = arith.addf %100, %105 : vector<8x8xf32>
    %107 = vector.broadcast %4 : vector<1x8xf32> to vector<8x8xf32>
    %108 = arith.addf %106, %107 : vector<8x8xf32>
    %cst_46 = arith.constant dense<0xFF800000> : vector<8xf32>
    %109 = vector.multi_reduction <maximumf>, %108, %cst_46 [1] : vector<8x8xf32> to vector<8xf32>
    %110 = vector.shape_cast %109 : vector<8xf32> to vector<8x1xf32>
    %111 = vector.broadcast %110 : vector<8x1xf32> to vector<8x8xf32>
    %112 = arith.subf %108, %111 : vector<8x8xf32>
    %113 = math.exp %112 : vector<8x8xf32>
    %cst_47 = arith.constant dense<0.000000e+00> : vector<8xf32>
    %114 = vector.multi_reduction <add>, %113, %cst_47 [1] : vector<8x8xf32> to vector<8xf32>
    %115 = vector.shape_cast %114 : vector<8xf32> to vector<8x1xf32>
    %116 = tpu.reciprocal %115 {approx = true} : vector<8x1xf32> -> vector<8x1xf32>
    %117 = vector.broadcast %116 : vector<8x1xf32> to vector<8x8xf32>
    %118 = arith.mulf %113, %117 : vector<8x8xf32>
    %119 = arith.truncf %118 : vector<8x8xf32> to vector<8x8xbf16>
    %cst_48 = arith.constant dense<0.000000e+00> : vector<8x8xf32>
    %120 = tpu.matmul %119, %97, %cst_48 {dimension_numbers = #tpu.dot_dimension_numbers<[1], [0], [0], [1], [0, 0, 1, 1], [], []>} : vector<8x8xbf16>, vector<8x8xbf16>, vector<8x8xf32> -> vector<8x8xf32>
    %121 = arith.truncf %120 : vector<8x8xf32> to vector<8x8xbf16>
    %c0_49 = arith.constant 0 : index
    %c24 = arith.constant 24 : index
    %122 = vector.load %arg17[%c0_49, %c24] : memref<8x32xbf16, #tpu.memory_space<vmem>>, vector<8x8xbf16>
    tpu.vector_store %arg17[%c0_49, %c24], %121 {strides = array<i32>} : memref<8x32xbf16, #tpu.memory_space<vmem>>, vector<8x8xbf16>,
    %c0_50 = arith.constant 0 : index
    %c0_51 = arith.constant 0 : index
    %123 = vector.load %arg17[%c0_50, %c0_51] : memref<8x32xbf16, #tpu.memory_space<vmem>>, vector<8x32xbf16>
    %c0_52 = arith.constant 0 : index
    %c0_53 = arith.constant 0 : index
    %124 = vector.load %arg6[%c0_52, %c0_53] : memref<32x32xbf16, #tpu.memory_space<vmem>>, vector<32x32xbf16>
    %cst_54 = arith.constant dense<0.000000e+00> : vector<8x32xf32>
    %125 = tpu.matmul %123, %124, %cst_54 {dimension_numbers = #tpu.dot_dimension_numbers<[1], [0], [0], [1], [0, 0, 1, 1], [], []>} : vector<8x32xbf16>, vector<32x32xbf16>, vector<8x32xf32> -> vector<8x32xf32>
    %c0_55 = arith.constant 0 : index
    %c0_56 = arith.constant 0 : index
    %126 = vector.load %arg7[%c0_55, %c0_56] : memref<1x32xf32, #tpu.memory_space<vmem>>, vector<1x32xf32>
    %127 = vector.broadcast %126 : vector<1x32xf32> to vector<8x32xf32>
    %128 = arith.addf %125, %127 : vector<8x32xf32>
    %129 = arith.addf %1, %128 : vector<8x32xf32>
    %c0_57 = arith.constant 0 : index
    %c0_58 = arith.constant 0 : index
    %130 = vector.load %arg8[%c0_57, %c0_58] : memref<1x32xf32, #tpu.memory_space<vmem>>, vector<1x32xf32>
    %c0_59 = arith.constant 0 : index
    %c0_60 = arith.constant 0 : index
    %131 = vector.load %arg9[%c0_59, %c0_60] : memref<1x32xf32, #tpu.memory_space<vmem>>, vector<1x32xf32>
    %cst_61 = arith.constant dense<0.000000e+00> : vector<8xf32>
    %132 = vector.multi_reduction <add>, %129, %cst_61 [1] : vector<8x32xf32> to vector<8xf32>
    %133 = vector.shape_cast %132 : vector<8xf32> to vector<8x1xf32>
    %cst_62 = arith.constant 3.200000e+01 : f32
    %134 = vector.broadcast %cst_62 : f32 to vector<8x1xf32>
    %135 = arith.divf %133, %134 : vector<8x1xf32>
    %136 = vector.broadcast %135 : vector<8x1xf32> to vector<8x32xf32>
    %137 = arith.subf %129, %136 : vector<8x32xf32>
    %138 = arith.mulf %137, %137 : vector<8x32xf32>
    %cst_63 = arith.constant dense<0.000000e+00> : vector<8xf32>
    %139 = vector.multi_reduction <add>, %138, %cst_63 [1] : vector<8x32xf32> to vector<8xf32>
    %140 = vector.shape_cast %139 : vector<8xf32> to vector<8x1xf32>
    %cst_64 = arith.constant 3.200000e+01 : f32
    %141 = vector.broadcast %cst_64 : f32 to vector<8x1xf32>
    %142 = arith.divf %140, %141 : vector<8x1xf32>
    %143 = vector.broadcast %135 : vector<8x1xf32> to vector<8x32xf32>
    %144 = arith.subf %129, %143 : vector<8x32xf32>
    %cst_65 = arith.constant 9.99999974E-6 : f32
    %145 = vector.broadcast %cst_65 : f32 to vector<8x1xf32>
    %146 = arith.addf %142, %145 : vector<8x1xf32>
    %147 = math.rsqrt %146 : vector<8x1xf32>
    %148 = vector.broadcast %147 : vector<8x1xf32> to vector<8x32xf32>
    %149 = arith.mulf %144, %148 : vector<8x32xf32>
    %150 = vector.broadcast %130 : vector<1x32xf32> to vector<8x32xf32>
    %151 = arith.mulf %149, %150 : vector<8x32xf32>
    %152 = vector.broadcast %131 : vector<1x32xf32> to vector<8x32xf32>
    %153 = arith.addf %151, %152 : vector<8x32xf32>
    %154 = arith.truncf %153 : vector<8x32xf32> to vector<8x32xbf16>
    %c0_66 = arith.constant 0 : index
    %c0_67 = arith.constant 0 : index
    %155 = vector.load %arg10[%c0_66, %c0_67] : memref<32x64xbf16, #tpu.memory_space<vmem>>, vector<32x64xbf16>
    %cst_68 = arith.constant dense<0.000000e+00> : vector<8x64xf32>
    %156 = tpu.matmul %154, %155, %cst_68 {dimension_numbers = #tpu.dot_dimension_numbers<[1], [0], [0], [1], [0, 0, 1, 1], [], []>} : vector<8x32xbf16>, vector<32x64xbf16>, vector<8x64xf32> -> vector<8x64xf32>
    %c0_69 = arith.constant 0 : index
    %c0_70 = arith.constant 0 : index
    %157 = vector.load %arg11[%c0_69, %c0_70] : memref<1x64xf32, #tpu.memory_space<vmem>>, vector<1x64xf32>
    %158 = vector.broadcast %157 : vector<1x64xf32> to vector<8x64xf32>
    %159 = arith.addf %156, %158 : vector<8x64xf32>
    %cst_71 = arith.constant 5.000000e-01 : f32
    %160 = vector.broadcast %cst_71 : f32 to vector<8x64xf32>
    %161 = arith.mulf %160, %159 : vector<8x64xf32>
    %cst_72 = arith.constant 0.707106769 : f32
    %162 = vector.broadcast %cst_72 : f32 to vector<8x64xf32>
    %163 = arith.mulf %159, %162 : vector<8x64xf32>
    %164 = math.erf %163 : vector<8x64xf32>
    %cst_73 = arith.constant 1.000000e+00 : f32
    %165 = vector.broadcast %cst_73 : f32 to vector<8x64xf32>
    %166 = arith.addf %165, %164 : vector<8x64xf32>
    %167 = arith.mulf %161, %166 : vector<8x64xf32>
    %168 = arith.truncf %167 : vector<8x64xf32> to vector<8x64xbf16>
    %c0_74 = arith.constant 0 : index
    %c0_75 = arith.constant 0 : index
    %169 = vector.load %arg12[%c0_74, %c0_75] : memref<64x32xbf16, #tpu.memory_space<vmem>>, vector<64x32xbf16>
    %cst_76 = arith.constant dense<0.000000e+00> : vector<8x32xf32>
    %170 = tpu.matmul %168, %169, %cst_76 {dimension_numbers = #tpu.dot_dimension_numbers<[1], [0], [0], [1], [0, 0, 1, 1], [], []>} : vector<8x64xbf16>, vector<64x32xbf16>, vector<8x32xf32> -> vector<8x32xf32>
    %c0_77 = arith.constant 0 : index
    %c0_78 = arith.constant 0 : index
    %171 = vector.load %arg13[%c0_77, %c0_78] : memref<1x32xf32, #tpu.memory_space<vmem>>, vector<1x32xf32>
    %172 = vector.broadcast %171 : vector<1x32xf32> to vector<8x32xf32>
    %173 = arith.addf %170, %172 : vector<8x32xf32>
    %174 = arith.addf %153, %173 : vector<8x32xf32>
    %c0_79 = arith.constant 0 : index
    %c0_80 = arith.constant 0 : index
    %175 = vector.load %arg14[%c0_79, %c0_80] : memref<1x32xf32, #tpu.memory_space<vmem>>, vector<1x32xf32>
    %c0_81 = arith.constant 0 : index
    %c0_82 = arith.constant 0 : index
    %176 = vector.load %arg15[%c0_81, %c0_82] : memref<1x32xf32, #tpu.memory_space<vmem>>, vector<1x32xf32>
    %cst_83 = arith.constant dense<0.000000e+00> : vector<8xf32>
    %177 = vector.multi_reduction <add>, %174, %cst_83 [1] : vector<8x32xf32> to vector<8xf32>
    %178 = vector.shape_cast %177 : vector<8xf32> to vector<8x1xf32>
    %cst_84 = arith.constant 3.200000e+01 : f32
    %179 = vector.broadcast %cst_84 : f32 to vector<8x1xf32>
    %180 = arith.divf %178, %179 : vector<8x1xf32>
    %181 = vector.broadcast %180 : vector<8x1xf32> to vector<8x32xf32>
    %182 = arith.subf %174, %181 : vector<8x32xf32>
    %183 = arith.mulf %182, %182 : vector<8x32xf32>
    %cst_85 = arith.constant dense<0.000000e+00> : vector<8xf32>
    %184 = vector.multi_reduction <add>, %183, %cst_85 [1] : vector<8x32xf32> to vector<8xf32>
    %185 = vector.shape_cast %184 : vector<8xf32> to vector<8x1xf32>
    %cst_86 = arith.constant 3.200000e+01 : f32
    %186 = vector.broadcast %cst_86 : f32 to vector<8x1xf32>
    %187 = arith.divf %185, %186 : vector<8x1xf32>
    %188 = vector.broadcast %180 : vector<8x1xf32> to vector<8x32xf32>
    %189 = arith.subf %174, %188 : vector<8x32xf32>
    %cst_87 = arith.constant 9.99999974E-6 : f32
    %190 = vector.broadcast %cst_87 : f32 to vector<8x1xf32>
    %191 = arith.addf %187, %190 : vector<8x1xf32>
    %192 = math.rsqrt %191 : vector<8x1xf32>
    %193 = vector.broadcast %192 : vector<8x1xf32> to vector<8x32xf32>
    %194 = arith.mulf %189, %193 : vector<8x32xf32>
    %195 = vector.broadcast %175 : vector<1x32xf32> to vector<8x32xf32>
    %196 = arith.mulf %194, %195 : vector<8x32xf32>
    %197 = vector.broadcast %176 : vector<1x32xf32> to vector<8x32xf32>
    %198 = arith.addf %196, %197 : vector<8x32xf32>
    %c0_88 = arith.constant 0 : index
    %c0_89 = arith.constant 0 : index
    %c0_90 = arith.constant 0 : index
    %199 = vector.load %arg16[%c0_88, %c0_89, %c0_90] : memref<1x8x32xf32, #tpu.memory_space<vmem>>, vector<1x8x32xf32>
    %200 = vector.shape_cast %199 : vector<1x8x32xf32> to vector<8x32xf32>
    %201 = vector.shape_cast %198 : vector<8x32xf32> to vector<1x8x32xf32>
    tpu.vector_store %arg16[%c0_88, %c0_89, %c0_90], %201 {strides = array<i32>} : memref<1x8x32xf32, #tpu.memory_space<vmem>>, vector<1x8x32xf32>,
    return
  }
  func.func @transform_0(%arg0: i32) -> (i32, i32, i32) {
    %c0_i32 = arith.constant 0 : i32
    %c0_i32_0 = arith.constant 0 : i32
    %c0_i32_1 = arith.constant 0 : i32
    return %arg0, %c0_i32, %c0_i32_0 : i32, i32, i32
  }
  func.func @transform_1(%arg0: i32) -> (i32, i32, i32) {
    %c0_i32 = arith.constant 0 : i32
    %c0_i32_0 = arith.constant 0 : i32
    %c0_i32_1 = arith.constant 0 : i32
    return %arg0, %c0_i32, %c0_i32_0 : i32, i32, i32
  }
  func.func @transform_2(%arg0: i32) -> (i32, i32, i32) {
    %c0_i32 = arith.constant 0 : i32
    %c0_i32_0 = arith.constant 0 : i32
    %c0_i32_1 = arith.constant 0 : i32
    %c0_i32_2 = arith.constant 0 : i32
    return %c0_i32, %c0_i32_0, %c0_i32_1 : i32, i32, i32
  }
  func.func @transform_3(%arg0: i32) -> (i32, i32) {
    %c0_i32 = arith.constant 0 : i32
    %c0_i32_0 = arith.constant 0 : i32
    %c0_i32_1 = arith.constant 0 : i32
    return %c0_i32, %c0_i32_0 : i32, i32
  }
  func.func @transform_4(%arg0: i32) -> (i32, i32) {
    %c0_i32 = arith.constant 0 : i32
    %c0_i32_0 = arith.constant 0 : i32
    %c0_i32_1 = arith.constant 0 : i32
    return %c0_i32, %c0_i32_0 : i32, i32
  }
  func.func @transform_5(%arg0: i32) -> (i32, i32) {
    %c0_i32 = arith.constant 0 : i32
    %c0_i32_0 = arith.constant 0 : i32
    %c0_i32_1 = arith.constant 0 : i32
    return %c0_i32, %c0_i32_0 : i32, i32
  }
  func.func @transform_6(%arg0: i32) -> (i32, i32) {
    %c0_i32 = arith.constant 0 : i32
    %c0_i32_0 = arith.constant 0 : i32
    %c0_i32_1 = arith.constant 0 : i32
    return %c0_i32, %c0_i32_0 : i32, i32
  }
  func.func @transform_7(%arg0: i32) -> (i32, i32) {
    %c0_i32 = arith.constant 0 : i32
    %c0_i32_0 = arith.constant 0 : i32
    %c0_i32_1 = arith.constant 0 : i32
    return %c0_i32, %c0_i32_0 : i32, i32
  }
  func.func @transform_8(%arg0: i32) -> (i32, i32) {
    %c0_i32 = arith.constant 0 : i32
    %c0_i32_0 = arith.constant 0 : i32
    %c0_i32_1 = arith.constant 0 : i32
    return %c0_i32, %c0_i32_0 : i32, i32
  }
  func.func @transform_9(%arg0: i32) -> (i32, i32) {
    %c0_i32 = arith.constant 0 : i32
    %c0_i32_0 = arith.constant 0 : i32
    %c0_i32_1 = arith.constant 0 : i32
    return %c0_i32, %c0_i32_0 : i32, i32
  }
  func.func @transform_10(%arg0: i32) -> (i32, i32) {
    %c0_i32 = arith.constant 0 : i32
    %c0_i32_0 = arith.constant 0 : i32
    %c0_i32_1 = arith.constant 0 : i32
    return %c0_i32, %c0_i32_0 : i32, i32
  }
  func.func @transform_11(%arg0: i32) -> (i32, i32) {
    %c0_i32 = arith.constant 0 : i32
    %c0_i32_0 = arith.constant 0 : i32
    %c0_i32_1 = arith.constant 0 : i32
    return %c0_i32, %c0_i32_0 : i32, i32
  }
  func.func @transform_12(%arg0: i32) -> (i32, i32) {
    %c0_i32 = arith.constant 0 : i32
    %c0_i32_0 = arith.constant 0 : i32
    %c0_i32_1 = arith.constant 0 : i32
    return %c0_i32, %c0_i32_0 : i32, i32
  }
  func.func @transform_13(%arg0: i32) -> (i32, i32) {
    %c0_i32 = arith.constant 0 : i32
    %c0_i32_0 = arith.constant 0 : i32
    %c0_i32_1 = arith.constant 0 : i32
    return %c0_i32, %c0_i32_0 : i32, i32
  }
  func.func @transform_14(%arg0: i32) -> (i32, i32) {
    %c0_i32 = arith.constant 0 : i32
    %c0_i32_0 = arith.constant 0 : i32
    %c0_i32_1 = arith.constant 0 : i32
    return %c0_i32, %c0_i32_0 : i32, i32
  }
  func.func @transform_15(%arg0: i32) -> (i32, i32, i32) {
    %c0_i32 = arith.constant 0 : i32
    %c0_i32_0 = arith.constant 0 : i32
    %c0_i32_1 = arith.constant 0 : i32
    return %arg0, %c0_i32, %c0_i32_0 : i32, i32, i32
  }
}

module attributes {stable_mosaic.version = 11 : i64} {
  func.func @transformer_layer_kernel(%arg0: i32, %arg1: memref<1x8x32xf32, #tpu.memory_space<vmem>>, %arg2: memref<1x1x8xf32, #tpu.memory_space<vmem>>, %arg3: memref<4x8x128xbf16, #tpu.memory_space<vmem>>, %arg4: memref<32x96xbf16, #tpu.memory_space<vmem>>, %arg5: memref<1x96xf32, #tpu.memory_space<vmem>>, %arg6: memref<32x32xbf16, #tpu.memory_space<vmem>>, %arg7: memref<1x32xf32, #tpu.memory_space<vmem>>, %arg8: memref<1x32xf32, #tpu.memory_space<vmem>>, %arg9: memref<1x32xf32, #tpu.memory_space<vmem>>, %arg10: memref<32x64xbf16, #tpu.memory_space<vmem>>, %arg11: memref<1x64xf32, #tpu.memory_space<vmem>>, %arg12: memref<64x32xbf16, #tpu.memory_space<vmem>>, %arg13: memref<1x32xf32, #tpu.memory_space<vmem>>, %arg14: memref<1x32xf32, #tpu.memory_space<vmem>>, %arg15: memref<1x32xf32, #tpu.memory_space<vmem>>, %arg16: memref<1x8x32xf32, #tpu.memory_space<vmem>>, %arg17: memref<8x32xbf16, #tpu.memory_space<vmem>>) attributes {dimension_semantics = [#tpu.dimension_semantics<parallel>], iteration_bounds = array<i64: 2>, scalar_prefetch = 0 : i64, scratch_operands = 1 : i64, tpu.core_type = #tpu.core_type<tc>, window_params = [{transform_indices = @transform_0, window_bounds = array<i64: 1, 8, 32>}, {transform_indices = @transform_1, window_bounds = array<i64: 1, 1, 8>}, {pipeline_mode = #tpu.pipeline_mode<synchronous>, transform_indices = @transform_2, window_bounds = array<i64: 4, 8, 128>}, {pipeline_mode = #tpu.pipeline_mode<synchronous>, transform_indices = @transform_3, window_bounds = array<i64: 32, 96>}, {pipeline_mode = #tpu.pipeline_mode<synchronous>, transform_indices = @transform_4, window_bounds = array<i64: 1, 96>}, {pipeline_mode = #tpu.pipeline_mode<synchronous>, transform_indices = @transform_5, window_bounds = array<i64: 32, 32>}, {pipeline_mode = #tpu.pipeline_mode<synchronous>, transform_indices = @transform_6, window_bounds = array<i64: 1, 32>}, {pipeline_mode = #tpu.pipeline_mode<synchronous>, transform_indices = @transform_7, window_bounds = array<i64: 1, 32>}, {pipeline_mode = #tpu.pipeline_mode<synchronous>, transform_indices = @transform_8, window_bounds = array<i64: 1, 32>}, {pipeline_mode = #tpu.pipeline_mode<synchronous>, transform_indices = @transform_9, window_bounds = array<i64: 32, 64>}, {pipeline_mode = #tpu.pipeline_mode<synchronous>, transform_indices = @transform_10, window_bounds = array<i64: 1, 64>}, {pipeline_mode = #tpu.pipeline_mode<synchronous>, transform_indices = @transform_11, window_bounds = array<i64: 64, 32>}, {pipeline_mode = #tpu.pipeline_mode<synchronous>, transform_indices = @transform_12, window_bounds = array<i64: 1, 32>}, {pipeline_mode = #tpu.pipeline_mode<synchronous>, transform_indices = @transform_13, window_bounds = array<i64: 1, 32>}, {pipeline_mode = #tpu.pipeline_mode<synchronous>, transform_indices = @transform_14, window_bounds = array<i64: 1, 32>}, {transform_indices = @transform_15, window_bounds = array<i64: 1, 8, 32>}]} {
    %c0 = arith.constant 0 : index
    %c0_0 = arith.constant 0 : index
    %c0_1 = arith.constant 0 : index
    %0 = vector.load %arg1[%c0, %c0_0, %c0_1] : memref<1x8x32xf32, #tpu.memory_space<vmem>>, vector<1x8x32xf32>
    %1 = vector.shape_cast %0 : vector<1x8x32xf32> to vector<8x32xf32>
    %2 = arith.truncf %1 : vector<8x32xf32> to vector<8x32xbf16>
    %c0_2 = arith.constant 0 : index
    %c0_3 = arith.constant 0 : index
    %c0_4 = arith.constant 0 : index
    %3 = vector.load %arg2[%c0_2, %c0_3, %c0_4] : memref<1x1x8xf32, #tpu.memory_space<vmem>>, vector<1x1x8xf32>
    %4 = vector.shape_cast %3 : vector<1x1x8xf32> to vector<1x8xf32>
    %c0_5 = arith.constant 0 : index
    %c0_6 = arith.constant 0 : index
    %5 = vector.load %arg4[%c0_5, %c0_6] : memref<32x96xbf16, #tpu.memory_space<vmem>>, vector<32x96xbf16>
    %cst = arith.constant dense<0.000000e+00> : vector<8x96xf32>
    %6 = tpu.matmul %2, %5, %cst {dimension_numbers = #tpu.dot_dimension_numbers<[1], [0], [0], [1], [0, 0, 1, 1], [], []>} : vector<8x32xbf16>, vector<32x96xbf16>, vector<8x96xf32> -> vector<8x96xf32>
    %c0_7 = arith.constant 0 : index
    %c0_8 = arith.constant 0 : index
    %7 = vector.load %arg5[%c0_7, %c0_8] : memref<1x96xf32, #tpu.memory_space<vmem>>, vector<1x96xf32>
    %8 = vector.broadcast %7 : vector<1x96xf32> to vector<8x96xf32>
    %9 = arith.addf %6, %8 : vector<8x96xf32>
    %10 = arith.truncf %9 : vector<8x96xf32> to vector<8x96xbf16>
    %11 = vector.extract_strided_slice %10 {offsets = [0, 0], sizes = [8, 8], strides = [1, 1]} : vector<8x96xbf16> to vector<8x8xbf16>
    %12 = vector.extract_strided_slice %10 {offsets = [0, 32], sizes = [8, 8], strides = [1, 1]} : vector<8x96xbf16> to vector<8x8xbf16>
    %13 = vector.extract_strided_slice %10 {offsets = [0, 64], sizes = [8, 8], strides = [1, 1]} : vector<8x96xbf16> to vector<8x8xbf16>
    %cst_9 = arith.constant dense<0.000000e+00> : vector<8x8xf32>
    %14 = tpu.matmul %11, %12, %cst_9 {dimension_numbers = #tpu.dot_dimension_numbers<[1], [1], [0], [0], [0, 0, 1, 0], [], []>} : vector<8x8xbf16>, vector<8x8xbf16>, vector<8x8xf32> -> vector<8x8xf32>
    %cst_10 = arith.constant 0.353553385 : f32
    %15 = vector.broadcast %cst_10 : f32 to vector<8x8xf32>
    %16 = arith.mulf %14, %15 : vector<8x8xf32>
    %c0_11 = arith.constant 0 : index
    %c0_12 = arith.constant 0 : index
    %c0_13 = arith.constant 0 : index
    %17 = vector.load %arg3[%c0_11, %c0_12, %c0_13] : memref<4x8x128xbf16, #tpu.memory_space<vmem>>, vector<1x8x128xbf16>
    %18 = vector.shape_cast %17 : vector<1x8x128xbf16> to vector<8x128xbf16>
    %cst_14 = arith.constant dense<0.000000e+00> : vector<8x128xf32>
    %19 = tpu.matmul %11, %18, %cst_14 {dimension_numbers = #tpu.dot_dimension_numbers<[1], [0], [0], [1], [0, 0, 1, 1], [], []>} : vector<8x8xbf16>, vector<8x128xbf16>, vector<8x128xf32> -> vector<8x128xf32>
    %c121_i32 = arith.constant 121 : i32
    %20 = tpu.dynamic_rotate %19 by %c121_i32 dim 1 {stride = 1 : si32, stride_dimension = 0 : si32} : vector<8x128xf32>, i32 -> vector<8x128xf32>
    %21 = vector.extract_strided_slice %20 {offsets = [0, 0], sizes = [8, 8], strides = [1, 1]} : vector<8x128xf32> to vector<8x8xf32>
    %22 = arith.addf %16, %21 : vector<8x8xf32>
    %23 = vector.broadcast %4 : vector<1x8xf32> to vector<8x8xf32>
    %24 = arith.addf %22, %23 : vector<8x8xf32>
    %cst_15 = arith.constant dense<0xFF800000> : vector<8xf32>
    %25 = vector.multi_reduction <maximumf>, %24, %cst_15 [1] : vector<8x8xf32> to vector<8xf32>
    %26 = vector.shape_cast %25 : vector<8xf32> to vector<8x1xf32>
    %27 = vector.broadcast %26 : vector<8x1xf32> to vector<8x8xf32>
    %28 = arith.subf %24, %27 : vector<8x8xf32>
    %29 = math.exp %28 : vector<8x8xf32>
    %cst_16 = arith.constant dense<0.000000e+00> : vector<8xf32>
    %30 = vector.multi_reduction <add>, %29, %cst_16 [1] : vector<8x8xf32> to vector<8xf32>
    %31 = vector.shape_cast %30 : vector<8xf32> to vector<8x1xf32>
    %32 = tpu.reciprocal %31 {approx = true} : vector<8x1xf32> -> vector<8x1xf32>
    %33 = vector.broadcast %32 : vector<8x1xf32> to vector<8x8xf32>
    %34 = arith.mulf %29, %33 : vector<8x8xf32>
    %35 = arith.truncf %34 : vector<8x8xf32> to vector<8x8xbf16>
    %cst_17 = arith.constant dense<0.000000e+00> : vector<8x8xf32>
    %36 = tpu.matmul %35, %13, %cst_17 {dimension_numbers = #tpu.dot_dimension_numbers<[1], [0], [0], [1], [0, 0, 1, 1], [], []>} : vector<8x8xbf16>, vector<8x8xbf16>, vector<8x8xf32> -> vector<8x8xf32>
    %37 = arith.truncf %36 : vector<8x8xf32> to vector<8x8xbf16>
    %c0_18 = arith.constant 0 : index
    %c0_19 = arith.constant 0 : index
    %38 = vector.load %arg17[%c0_18, %c0_19] : memref<8x32xbf16, #tpu.memory_space<vmem>>, vector<8x8xbf16>
    tpu.vector_store %arg17[%c0_18, %c0_19], %37 {strides = array<i32>} : memref<8x32xbf16, #tpu.memory_space<vmem>>, vector<8x8xbf16>,
    %39 = vector.extract_strided_slice %10 {offsets = [0, 8], sizes = [8, 8], strides = [1, 1]} : vector<8x96xbf16> to vector<8x8xbf16>
    %40 = vector.extract_strided_slice %10 {offsets = [0, 40], sizes = [8, 8], strides = [1, 1]} : vector<8x96xbf16> to vector<8x8xbf16>
    %41 = vector.extract_strided_slice %10 {offsets = [0, 72], sizes = [8, 8], strides = [1, 1]} : vector<8x96xbf16> to vector<8x8xbf16>
    %cst_20 = arith.constant dense<0.000000e+00> : vector<8x8xf32>
    %42 = tpu.matmul %39, %40, %cst_20 {dimension_numbers = #tpu.dot_dimension_numbers<[1], [1], [0], [0], [0, 0, 1, 0], [], []>} : vector<8x8xbf16>, vector<8x8xbf16>, vector<8x8xf32> -> vector<8x8xf32>
    %cst_21 = arith.constant 0.353553385 : f32
    %43 = vector.broadcast %cst_21 : f32 to vector<8x8xf32>
    %44 = arith.mulf %42, %43 : vector<8x8xf32>
    %c1 = arith.constant 1 : index
    %c0_22 = arith.constant 0 : index
    %c0_23 = arith.constant 0 : index
    %45 = vector.load %arg3[%c1, %c0_22, %c0_23] : memref<4x8x128xbf16, #tpu.memory_space<vmem>>, vector<1x8x128xbf16>
    %46 = vector.shape_cast %45 : vector<1x8x128xbf16> to vector<8x128xbf16>
    %cst_24 = arith.constant dense<0.000000e+00> : vector<8x128xf32>
    %47 = tpu.matmul %39, %46, %cst_24 {dimension_numbers = #tpu.dot_dimension_numbers<[1], [0], [0], [1], [0, 0, 1, 1], [], []>} : vector<8x8xbf16>, vector<8x128xbf16>, vector<8x128xf32> -> vector<8x128xf32>
    %c121_i32_25 = arith.constant 121 : i32
    %48 = tpu.dynamic_rotate %47 by %c121_i32_25 dim 1 {stride = 1 : si32, stride_dimension = 0 : si32} : vector<8x128xf32>, i32 -> vector<8x128xf32>
    %49 = vector.extract_strided_slice %48 {offsets = [0, 0], sizes = [8, 8], strides = [1, 1]} : vector<8x128xf32> to vector<8x8xf32>
    %50 = arith.addf %44, %49 : vector<8x8xf32>
    %51 = vector.broadcast %4 : vector<1x8xf32> to vector<8x8xf32>
    %52 = arith.addf %50, %51 : vector<8x8xf32>
    %cst_26 = arith.constant dense<0xFF800000> : vector<8xf32>
    %53 = vector.multi_reduction <maximumf>, %52, %cst_26 [1] : vector<8x8xf32> to vector<8xf32>
    %54 = vector.shape_cast %53 : vector<8xf32> to vector<8x1xf32>
    %55 = vector.broadcast %54 : vector<8x1xf32> to vector<8x8xf32>
    %56 = arith.subf %52, %55 : vector<8x8xf32>
    %57 = math.exp %56 : vector<8x8xf32>
    %cst_27 = arith.constant dense<0.000000e+00> : vector<8xf32>
    %58 = vector.multi_reduction <add>, %57, %cst_27 [1] : vector<8x8xf32> to vector<8xf32>
    %59 = vector.shape_cast %58 : vector<8xf32> to vector<8x1xf32>
    %60 = tpu.reciprocal %59 {approx = true} : vector<8x1xf32> -> vector<8x1xf32>
    %61 = vector.broadcast %60 : vector<8x1xf32> to vector<8x8xf32>
    %62 = arith.mulf %57, %61 : vector<8x8xf32>
    %63 = arith.truncf %62 : vector<8x8xf32> to vector<8x8xbf16>
    %cst_28 = arith.constant dense<0.000000e+00> : vector<8x8xf32>
    %64 = tpu.matmul %63, %41, %cst_28 {dimension_numbers = #tpu.dot_dimension_numbers<[1], [0], [0], [1], [0, 0, 1, 1], [], []>} : vector<8x8xbf16>, vector<8x8xbf16>, vector<8x8xf32> -> vector<8x8xf32>
    %65 = arith.truncf %64 : vector<8x8xf32> to vector<8x8xbf16>
    %c0_29 = arith.constant 0 : index
    %c8 = arith.constant 8 : index
    %66 = vector.load %arg17[%c0_29, %c8] : memref<8x32xbf16, #tpu.memory_space<vmem>>, vector<8x8xbf16>
    tpu.vector_store %arg17[%c0_29, %c8], %65 {strides = array<i32>} : memref<8x32xbf16, #tpu.memory_space<vmem>>, vector<8x8xbf16>,
    %67 = vector.extract_strided_slice %10 {offsets = [0, 16], sizes = [8, 8], strides = [1, 1]} : vector<8x96xbf16> to vector<8x8xbf16>
    %68 = vector.extract_strided_slice %10 {offsets = [0, 48], sizes = [8, 8], strides = [1, 1]} : vector<8x96xbf16> to vector<8x8xbf16>
    %69 = vector.extract_strided_slice %10 {offsets = [0, 80], sizes = [8, 8], strides = [1, 1]} : vector<8x96xbf16> to vector<8x8xbf16>
    %cst_30 = arith.constant dense<0.000000e+00> : vector<8x8xf32>
    %70 = tpu.matmul %67, %68, %cst_30 {dimension_numbers = #tpu.dot_dimension_numbers<[1], [1], [0], [0], [0, 0, 1, 0], [], []>} : vector<8x8xbf16>, vector<8x8xbf16>, vector<8x8xf32> -> vector<8x8xf32>
    %cst_31 = arith.constant 0.353553385 : f32
    %71 = vector.broadcast %cst_31 : f32 to vector<8x8xf32>
    %72 = arith.mulf %70, %71 : vector<8x8xf32>
    %c2 = arith.constant 2 : index
    %c0_32 = arith.constant 0 : index
    %c0_33 = arith.constant 0 : index
    %73 = vector.load %arg3[%c2, %c0_32, %c0_33] : memref<4x8x128xbf16, #tpu.memory_space<vmem>>, vector<1x8x128xbf16>
    %74 = vector.shape_cast %73 : vector<1x8x128xbf16> to vector<8x128xbf16>
    %cst_34 = arith.constant dense<0.000000e+00> : vector<8x128xf32>
    %75 = tpu.matmul %67, %74, %cst_34 {dimension_numbers = #tpu.dot_dimension_numbers<[1], [0], [0], [1], [0, 0, 1, 1], [], []>} : vector<8x8xbf16>, vector<8x128xbf16>, vector<8x128xf32> -> vector<8x128xf32>
    %c121_i32_35 = arith.constant 121 : i32
    %76 = tpu.dynamic_rotate %75 by %c121_i32_35 dim 1 {stride = 1 : si32, stride_dimension = 0 : si32} : vector<8x128xf32>, i32 -> vector<8x128xf32>
    %77 = vector.extract_strided_slice %76 {offsets = [0, 0], sizes = [8, 8], strides = [1, 1]} : vector<8x128xf32> to vector<8x8xf32>
    %78 = arith.addf %72, %77 : vector<8x8xf32>
    %79 = vector.broadcast %4 : vector<1x8xf32> to vector<8x8xf32>
    %80 = arith.addf %78, %79 : vector<8x8xf32>
    %cst_36 = arith.constant dense<0xFF800000> : vector<8xf32>
    %81 = vector.multi_reduction <maximumf>, %80, %cst_36 [1] : vector<8x8xf32> to vector<8xf32>
    %82 = vector.shape_cast %81 : vector<8xf32> to vector<8x1xf32>
    %83 = vector.broadcast %82 : vector<8x1xf32> to vector<8x8xf32>
    %84 = arith.subf %80, %83 : vector<8x8xf32>
    %85 = math.exp %84 : vector<8x8xf32>
    %cst_37 = arith.constant dense<0.000000e+00> : vector<8xf32>
    %86 = vector.multi_reduction <add>, %85, %cst_37 [1] : vector<8x8xf32> to vector<8xf32>
    %87 = vector.shape_cast %86 : vector<8xf32> to vector<8x1xf32>
    %88 = tpu.reciprocal %87 {approx = true} : vector<8x1xf32> -> vector<8x1xf32>
    %89 = vector.broadcast %88 : vector<8x1xf32> to vector<8x8xf32>
    %90 = arith.mulf %85, %89 : vector<8x8xf32>
    %91 = arith.truncf %90 : vector<8x8xf32> to vector<8x8xbf16>
    %cst_38 = arith.constant dense<0.000000e+00> : vector<8x8xf32>
    %92 = tpu.matmul %91, %69, %cst_38 {dimension_numbers = #tpu.dot_dimension_numbers<[1], [0], [0], [1], [0, 0, 1, 1], [], []>} : vector<8x8xbf16>, vector<8x8xbf16>, vector<8x8xf32> -> vector<8x8xf32>
    %93 = arith.truncf %92 : vector<8x8xf32> to vector<8x8xbf16>
    %c0_39 = arith.constant 0 : index
    %c16 = arith.constant 16 : index
    %94 = vector.load %arg17[%c0_39, %c16] : memref<8x32xbf16, #tpu.memory_space<vmem>>, vector<8x8xbf16>
    tpu.vector_store %arg17[%c0_39, %c16], %93 {strides = array<i32>} : memref<8x32xbf16, #tpu.memory_space<vmem>>, vector<8x8xbf16>,
    %95 = vector.extract_strided_slice %10 {offsets = [0, 24], sizes = [8, 8], strides = [1, 1]} : vector<8x96xbf16> to vector<8x8xbf16>
    %96 = vector.extract_strided_slice %10 {offsets = [0, 56], sizes = [8, 8], strides = [1, 1]} : vector<8x96xbf16> to vector<8x8xbf16>
    %97 = vector.extract_strided_slice %10 {offsets = [0, 88], sizes = [8, 8], strides = [1, 1]} : vector<8x96xbf16> to vector<8x8xbf16>
    %cst_40 = arith.constant dense<0.000000e+00> : vector<8x8xf32>
    %98 = tpu.matmul %95, %96, %cst_40 {dimension_numbers = #tpu.dot_dimension_numbers<[1], [1], [0], [0], [0, 0, 1, 0], [], []>} : vector<8x8xbf16>, vector<8x8xbf16>, vector<8x8xf32> -> vector<8x8xf32>
    %cst_41 = arith.constant 0.353553385 : f32
    %99 = vector.broadcast %cst_41 : f32 to vector<8x8xf32>
    %100 = arith.mulf %98, %99 : vector<8x8xf32>
    %c3 = arith.constant 3 : index
    %c0_42 = arith.constant 0 : index
    %c0_43 = arith.constant 0 : index
    %101 = vector.load %arg3[%c3, %c0_42, %c0_43] : memref<4x8x128xbf16, #tpu.memory_space<vmem>>, vector<1x8x128xbf16>
    %102 = vector.shape_cast %101 : vector<1x8x128xbf16> to vector<8x128xbf16>
    %cst_44 = arith.constant dense<0.000000e+00> : vector<8x128xf32>
    %103 = tpu.matmul %95, %102, %cst_44 {dimension_numbers = #tpu.dot_dimension_numbers<[1], [0], [0], [1], [0, 0, 1, 1], [], []>} : vector<8x8xbf16>, vector<8x128xbf16>, vector<8x128xf32> -> vector<8x128xf32>
    %c121_i32_45 = arith.constant 121 : i32
    %104 = tpu.dynamic_rotate %103 by %c121_i32_45 dim 1 {stride = 1 : si32, stride_dimension = 0 : si32} : vector<8x128xf32>, i32 -> vector<8x128xf32>
    %105 = vector.extract_strided_slice %104 {offsets = [0, 0], sizes = [8, 8], strides = [1, 1]} : vector<8x128xf32> to vector<8x8xf32>
    %106 = arith.addf %100, %105 : vector<8x8xf32>
    %107 = vector.broadcast %4 : vector<1x8xf32> to vector<8x8xf32>
    %108 = arith.addf %106, %107 : vector<8x8xf32>
    %cst_46 = arith.constant dense<0xFF800000> : vector<8xf32>
    %109 = vector.multi_reduction <maximumf>, %108, %cst_46 [1] : vector<8x8xf32> to vector<8xf32>
    %110 = vector.shape_cast %109 : vector<8xf32> to vector<8x1xf32>
    %111 = vector.broadcast %110 : vector<8x1xf32> to vector<8x8xf32>
    %112 = arith.subf %108, %111 : vector<8x8xf32>
    %113 = math.exp %112 : vector<8x8xf32>
    %cst_47 = arith.constant dense<0.000000e+00> : vector<8xf32>
    %114 = vector.multi_reduction <add>, %113, %cst_47 [1] : vector<8x8xf32> to vector<8xf32>
    %115 = vector.shape_cast %114 : vector<8xf32> to vector<8x1xf32>
    %116 = tpu.reciprocal %115 {approx = true} : vector<8x1xf32> -> vector<8x1xf32>
    %117 = vector.broadcast %116 : vector<8x1xf32> to vector<8x8xf32>
    %118 = arith.mulf %113, %117 : vector<8x8xf32>
    %119 = arith.truncf %118 : vector<8x8xf32> to vector<8x8xbf16>
    %cst_48 = arith.constant dense<0.000000e+00> : vector<8x8xf32>
    %120 = tpu.matmul %119, %97, %cst_48 {dimension_numbers = #tpu.dot_dimension_numbers<[1], [0], [0], [1], [0, 0, 1, 1], [], []>} : vector<8x8xbf16>, vector<8x8xbf16>, vector<8x8xf32> -> vector<8x8xf32>
    %121 = arith.truncf %120 : vector<8x8xf32> to vector<8x8xbf16>
    %c0_49 = arith.constant 0 : index
    %c24 = arith.constant 24 : index
    %122 = vector.load %arg17[%c0_49, %c24] : memref<8x32xbf16, #tpu.memory_space<vmem>>, vector<8x8xbf16>
    tpu.vector_store %arg17[%c0_49, %c24], %121 {strides = array<i32>} : memref<8x32xbf16, #tpu.memory_space<vmem>>, vector<8x8xbf16>,
    %c0_50 = arith.constant 0 : index
    %c0_51 = arith.constant 0 : index
    %123 = vector.load %arg17[%c0_50, %c0_51] : memref<8x32xbf16, #tpu.memory_space<vmem>>, vector<8x32xbf16>
    %c0_52 = arith.constant 0 : index
    %c0_53 = arith.constant 0 : index
    %124 = vector.load %arg6[%c0_52, %c0_53] : memref<32x32xbf16, #tpu.memory_space<vmem>>, vector<32x32xbf16>
    %cst_54 = arith.constant dense<0.000000e+00> : vector<8x32xf32>
    %125 = tpu.matmul %123, %124, %cst_54 {dimension_numbers = #tpu.dot_dimension_numbers<[1], [0], [0], [1], [0, 0, 1, 1], [], []>} : vector<8x32xbf16>, vector<32x32xbf16>, vector<8x32xf32> -> vector<8x32xf32>
    %c0_55 = arith.constant 0 : index
    %c0_56 = arith.constant 0 : index
    %126 = vector.load %arg7[%c0_55, %c0_56] : memref<1x32xf32, #tpu.memory_space<vmem>>, vector<1x32xf32>
    %127 = vector.broadcast %126 : vector<1x32xf32> to vector<8x32xf32>
    %128 = arith.addf %125, %127 : vector<8x32xf32>
    %129 = arith.addf %1, %128 : vector<8x32xf32>
    %c0_57 = arith.constant 0 : index
    %c0_58 = arith.constant 0 : index
    %130 = vector.load %arg8[%c0_57, %c0_58] : memref<1x32xf32, #tpu.memory_space<vmem>>, vector<1x32xf32>
    %c0_59 = arith.constant 0 : index
    %c0_60 = arith.constant 0 : index
    %131 = vector.load %arg9[%c0_59, %c0_60] : memref<1x32xf32, #tpu.memory_space<vmem>>, vector<1x32xf32>
    %cst_61 = arith.constant dense<0.000000e+00> : vector<8xf32>
    %132 = vector.multi_reduction <add>, %129, %cst_61 [1] : vector<8x32xf32> to vector<8xf32>
    %133 = vector.shape_cast %132 : vector<8xf32> to vector<8x1xf32>
    %cst_62 = arith.constant 3.200000e+01 : f32
    %134 = vector.broadcast %cst_62 : f32 to vector<8x1xf32>
    %135 = arith.divf %133, %134 : vector<8x1xf32>
    %136 = vector.broadcast %135 : vector<8x1xf32> to vector<8x32xf32>
    %137 = arith.subf %129, %136 : vector<8x32xf32>
    %138 = arith.mulf %137, %137 : vector<8x32xf32>
    %cst_63 = arith.constant dense<0.000000e+00> : vector<8xf32>
    %139 = vector.multi_reduction <add>, %138, %cst_63 [1] : vector<8x32xf32> to vector<8xf32>
    %140 = vector.shape_cast %139 : vector<8xf32> to vector<8x1xf32>
    %cst_64 = arith.constant 3.200000e+01 : f32
    %141 = vector.broadcast %cst_64 : f32 to vector<8x1xf32>
    %142 = arith.divf %140, %141 : vector<8x1xf32>
    %143 = vector.broadcast %135 : vector<8x1xf32> to vector<8x32xf32>
    %144 = arith.subf %129, %143 : vector<8x32xf32>
    %cst_65 = arith.constant 9.99999974E-6 : f32
    %145 = vector.broadcast %cst_65 : f32 to vector<8x1xf32>
    %146 = arith.addf %142, %145 : vector<8x1xf32>
    %147 = math.rsqrt %146 : vector<8x1xf32>
    %148 = vector.broadcast %147 : vector<8x1xf32> to vector<8x32xf32>
    %149 = arith.mulf %144, %148 : vector<8x32xf32>
    %150 = vector.broadcast %130 : vector<1x32xf32> to vector<8x32xf32>
    %151 = arith.mulf %149, %150 : vector<8x32xf32>
    %152 = vector.broadcast %131 : vector<1x32xf32> to vector<8x32xf32>
    %153 = arith.addf %151, %152 : vector<8x32xf32>
    %154 = arith.truncf %153 : vector<8x32xf32> to vector<8x32xbf16>
    %c0_66 = arith.constant 0 : index
    %c0_67 = arith.constant 0 : index
    %155 = vector.load %arg10[%c0_66, %c0_67] : memref<32x64xbf16, #tpu.memory_space<vmem>>, vector<32x64xbf16>
    %cst_68 = arith.constant dense<0.000000e+00> : vector<8x64xf32>
    %156 = tpu.matmul %154, %155, %cst_68 {dimension_numbers = #tpu.dot_dimension_numbers<[1], [0], [0], [1], [0, 0, 1, 1], [], []>} : vector<8x32xbf16>, vector<32x64xbf16>, vector<8x64xf32> -> vector<8x64xf32>
    %c0_69 = arith.constant 0 : index
    %c0_70 = arith.constant 0 : index
    %157 = vector.load %arg11[%c0_69, %c0_70] : memref<1x64xf32, #tpu.memory_space<vmem>>, vector<1x64xf32>
    %158 = vector.broadcast %157 : vector<1x64xf32> to vector<8x64xf32>
    %159 = arith.addf %156, %158 : vector<8x64xf32>
    %cst_71 = arith.constant 5.000000e-01 : f32
    %160 = vector.broadcast %cst_71 : f32 to vector<8x64xf32>
    %161 = arith.mulf %160, %159 : vector<8x64xf32>
    %cst_72 = arith.constant 0.707106769 : f32
    %162 = vector.broadcast %cst_72 : f32 to vector<8x64xf32>
    %163 = arith.mulf %159, %162 : vector<8x64xf32>
    %164 = math.erf %163 : vector<8x64xf32>
    %cst_73 = arith.constant 1.000000e+00 : f32
    %165 = vector.broadcast %cst_73 : f32 to vector<8x64xf32>
    %166 = arith.addf %165, %164 : vector<8x64xf32>
    %167 = arith.mulf %161, %166 : vector<8x64xf32>
    %168 = arith.truncf %167 : vector<8x64xf32> to vector<8x64xbf16>
    %c0_74 = arith.constant 0 : index
    %c0_75 = arith.constant 0 : index
    %169 = vector.load %arg12[%c0_74, %c0_75] : memref<64x32xbf16, #tpu.memory_space<vmem>>, vector<64x32xbf16>
    %cst_76 = arith.constant dense<0.000000e+00> : vector<8x32xf32>
    %170 = tpu.matmul %168, %169, %cst_76 {dimension_numbers = #tpu.dot_dimension_numbers<[1], [0], [0], [1], [0, 0, 1, 1], [], []>} : vector<8x64xbf16>, vector<64x32xbf16>, vector<8x32xf32> -> vector<8x32xf32>
    %c0_77 = arith.constant 0 : index
    %c0_78 = arith.constant 0 : index
    %171 = vector.load %arg13[%c0_77, %c0_78] : memref<1x32xf32, #tpu.memory_space<vmem>>, vector<1x32xf32>
    %172 = vector.broadcast %171 : vector<1x32xf32> to vector<8x32xf32>
    %173 = arith.addf %170, %172 : vector<8x32xf32>
    %174 = arith.addf %153, %173 : vector<8x32xf32>
    %c0_79 = arith.constant 0 : index
    %c0_80 = arith.constant 0 : index
    %175 = vector.load %arg14[%c0_79, %c0_80] : memref<1x32xf32, #tpu.memory_space<vmem>>, vector<1x32xf32>
    %c0_81 = arith.constant 0 : index
    %c0_82 = arith.constant 0 : index
    %176 = vector.load %arg15[%c0_81, %c0_82] : memref<1x32xf32, #tpu.memory_space<vmem>>, vector<1x32xf32>
    %cst_83 = arith.constant dense<0.000000e+00> : vector<8xf32>
    %177 = vector.multi_reduction <add>, %174, %cst_83 [1] : vector<8x32xf32> to vector<8xf32>
    %178 = vector.shape_cast %177 : vector<8xf32> to vector<8x1xf32>
    %cst_84 = arith.constant 3.200000e+01 : f32
    %179 = vector.broadcast %cst_84 : f32 to vector<8x1xf32>
    %180 = arith.divf %178, %179 : vector<8x1xf32>
    %181 = vector.broadcast %180 : vector<8x1xf32> to vector<8x32xf32>
    %182 = arith.subf %174, %181 : vector<8x32xf32>
    %183 = arith.mulf %182, %182 : vector<8x32xf32>
    %cst_85 = arith.constant dense<0.000000e+00> : vector<8xf32>
    %184 = vector.multi_reduction <add>, %183, %cst_85 [1] : vector<8x32xf32> to vector<8xf32>
    %185 = vector.shape_cast %184 : vector<8xf32> to vector<8x1xf32>
    %cst_86 = arith.constant 3.200000e+01 : f32
    %186 = vector.broadcast %cst_86 : f32 to vector<8x1xf32>
    %187 = arith.divf %185, %186 : vector<8x1xf32>
    %188 = vector.broadcast %180 : vector<8x1xf32> to vector<8x32xf32>
    %189 = arith.subf %174, %188 : vector<8x32xf32>
    %cst_87 = arith.constant 9.99999974E-6 : f32
    %190 = vector.broadcast %cst_87 : f32 to vector<8x1xf32>
    %191 = arith.addf %187, %190 : vector<8x1xf32>
    %192 = math.rsqrt %191 : vector<8x1xf32>
    %193 = vector.broadcast %192 : vector<8x1xf32> to vector<8x32xf32>
    %194 = arith.mulf %189, %193 : vector<8x32xf32>
    %195 = vector.broadcast %175 : vector<1x32xf32> to vector<8x32xf32>
    %196 = arith.mulf %194, %195 : vector<8x32xf32>
    %197 = vector.broadcast %176 : vector<1x32xf32> to vector<8x32xf32>
    %198 = arith.addf %196, %197 : vector<8x32xf32>
    %c0_88 = arith.constant 0 : index
    %c0_89 = arith.constant 0 : index
    %c0_90 = arith.constant 0 : index
    %199 = vector.load %arg16[%c0_88, %c0_89, %c0_90] : memref<1x8x32xf32, #tpu.memory_space<vmem>>, vector<1x8x32xf32>
    %200 = vector.shape_cast %199 : vector<1x8x32xf32> to vector<8x32xf32>
    %201 = vector.shape_cast %198 : vector<8x32xf32> to vector<1x8x32xf32>
    tpu.vector_store %arg16[%c0_88, %c0_89, %c0_90], %201 {strides = array<i32>} : memref<1x8x32xf32, #tpu.memory_space<vmem>>, vector<1x8x32xf32>,
    return
  }
  func.func @transform_0(%arg0: i32) -> (i32, i32, i32) {
    %c0_i32 = arith.constant 0 : i32
    %c0_i32_0 = arith.constant 0 : i32
    %c0_i32_1 = arith.constant 0 : i32
    return %arg0, %c0_i32, %c0_i32_0 : i32, i32, i32
  }
  func.func @transform_1(%arg0: i32) -> (i32, i32, i32) {
    %c0_i32 = arith.constant 0 : i32
    %c0_i32_0 = arith.constant 0 : i32
    %c0_i32_1 = arith.constant 0 : i32
    return %arg0, %c0_i32, %c0_i32_0 : i32, i32, i32
  }
  func.func @transform_2(%arg0: i32) -> (i32, i32, i32) {
    %c0_i32 = arith.constant 0 : i32
    %c0_i32_0 = arith.constant 0 : i32
    %c0_i32_1 = arith.constant 0 : i32
    %c0_i32_2 = arith.constant 0 : i32
    return %c0_i32, %c0_i32_0, %c0_i32_1 : i32, i32, i32
  }
  func.func @transform_3(%arg0: i32) -> (i32, i32) {
    %c0_i32 = arith.constant 0 : i32
    %c0_i32_0 = arith.constant 0 : i32
    %c0_i32_1 = arith.constant 0 : i32
    return %c0_i32, %c0_i32_0 : i32, i32
  }
  func.func @transform_4(%arg0: i32) -> (i32, i32) {
    %c0_i32 = arith.constant 0 : i32
    %c0_i32_0 = arith.constant 0 : i32
    %c0_i32_1 = arith.constant 0 : i32
    return %c0_i32, %c0_i32_0 : i32, i32
  }
  func.func @transform_5(%arg0: i32) -> (i32, i32) {
    %c0_i32 = arith.constant 0 : i32
    %c0_i32_0 = arith.constant 0 : i32
    %c0_i32_1 = arith.constant 0 : i32
    return %c0_i32, %c0_i32_0 : i32, i32
  }
  func.func @transform_6(%arg0: i32) -> (i32, i32) {
    %c0_i32 = arith.constant 0 : i32
    %c0_i32_0 = arith.constant 0 : i32
    %c0_i32_1 = arith.constant 0 : i32
    return %c0_i32, %c0_i32_0 : i32, i32
  }
  func.func @transform_7(%arg0: i32) -> (i32, i32) {
    %c0_i32 = arith.constant 0 : i32
    %c0_i32_0 = arith.constant 0 : i32
    %c0_i32_1 = arith.constant 0 : i32
    return %c0_i32, %c0_i32_0 : i32, i32
  }
  func.func @transform_8(%arg0: i32) -> (i32, i32) {
    %c0_i32 = arith.constant 0 : i32
    %c0_i32_0 = arith.constant 0 : i32
    %c0_i32_1 = arith.constant 0 : i32
    return %c0_i32, %c0_i32_0 : i32, i32
  }
  func.func @transform_9(%arg0: i32) -> (i32, i32) {
    %c0_i32 = arith.constant 0 : i32
    %c0_i32_0 = arith.constant 0 : i32
    %c0_i32_1 = arith.constant 0 : i32
    return %c0_i32, %c0_i32_0 : i32, i32
  }
  func.func @transform_10(%arg0: i32) -> (i32, i32) {
    %c0_i32 = arith.constant 0 : i32
    %c0_i32_0 = arith.constant 0 : i32
    %c0_i32_1 = arith.constant 0 : i32
    return %c0_i32, %c0_i32_0 : i32, i32
  }
  func.func @transform_11(%arg0: i32) -> (i32, i32) {
    %c0_i32 = arith.constant 0 : i32
    %c0_i32_0 = arith.constant 0 : i32
    %c0_i32_1 = arith.constant 0 : i32
    return %c0_i32, %c0_i32_0 : i32, i32
  }
  func.func @transform_12(%arg0: i32) -> (i32, i32) {
    %c0_i32 = arith.constant 0 : i32
    %c0_i32_0 = arith.constant 0 : i32
    %c0_i32_1 = arith.constant 0 : i32
    return %c0_i32, %c0_i32_0 : i32, i32
  }
  func.func @transform_13(%arg0: i32) -> (i32, i32) {
    %c0_i32 = arith.constant 0 : i32
    %c0_i32_0 = arith.constant 0 : i32
    %c0_i32_1 = arith.constant 0 : i32
    return %c0_i32, %c0_i32_0 : i32, i32
  }
  func.func @transform_14(%arg0: i32) -> (i32, i32) {
    %c0_i32 = arith.constant 0 : i32
    %c0_i32_0 = arith.constant 0 : i32
    %c0_i32_1 = arith.constant 0 : i32
    return %c0_i32, %c0_i32_0 : i32, i32
  }
  func.func @transform_15(%arg0: i32) -> (i32, i32, i32) {
    %c0_i32 = arith.constant 0 : i32
    %c0_i32_0 = arith.constant 0 : i32
    %c0_i32_1 = arith.constant 0 : i32
    return %arg0, %c0_i32, %c0_i32_0 : i32, i32, i32
  }
}

</mosaic_0001>

<bundles_post_ra>
// kernel: tpu_custom_call.1
= control target key start
LH: loop header
LB: loop body
LE: loop exit
PB: predicated region body
PF: predicated region fallthrough
CT: control target
= control target key end

     0   :  { %s2857_s0 = inlined_call_operand.vmem [shape: f32[2,8,32], index: 0, kind: input, shape index: {}]   ;;  %s2858_s1 = inlined_call_operand.hbm [shape: f32[2,1,8], index: 1, kind: input, shape index: {}]   ;;  %s2859_s2 = inlined_call_operand.vmem [shape: bf16[4,8,128], index: 2, kind: input, shape index: {}]   ;;  %s2860_s3 = inlined_call_operand.vmem [shape: bf16[32,96], index: 3, kind: input, shape index: {}]   ;;  %s2861_s4 = inlined_call_operand.hbm [shape: f32[1,96], index: 4, kind: input, shape index: {}]   ;;  %s2862_s5 = inlined_call_operand.hbm [shape: bf16[32,32], index: 5, kind: input, shape index: {}]   ;;  %s2863_s6 = inlined_call_operand.hbm [shape: f32[1,32], index: 6, kind: input, shape index: {}]   ;;  %s2864_s7 = inlined_call_operand.hbm [shape: f32[1,32], index: 7, kind: input, shape index: {}]   ;;  %s2865_s8 = inlined_call_operand.hbm [shape: f32[1,32], index: 8, kind: input, shape index: {}]   ;;  %s2866_s9 = inlined_call_operand.vmem [shape: bf16[32,64], index: 9, kind: input, shape index: {}]   ;;  %s2867_s10 = inlined_call_operand.vmem [shape: f32[1,64], index: 10, kind: input, shape index: {}]   ;;  %s2868_s11 = inlined_call_operand.vmem [shape: bf16[64,32], index: 11, kind: input, shape index: {}]   ;;  %s2869_s12 = inlined_call_operand.vmem [shape: f32[1,32], index: 12, kind: input, shape index: {}]   ;;  %s2870_s13 = inlined_call_operand.vmem [shape: f32[1,32], index: 13, kind: input, shape index: {}]   ;;  %s2871_s14 = inlined_call_operand.vmem [shape: f32[1,32], index: 14, kind: input, shape index: {}]   ;;  %s2872_s15 = inlined_call_operand.hbm [shape: f32[2,8,32], index: 15, kind: output, shape index: {}]  }
   0x1   :  { %2881 = sst [smem:[#allocation23_spill]] %s2861_s4 }
   0x2   :  { %2882 = sst [smem:[#allocation24_spill]] %s2862_s5 }
   0x3   :  { %2883 = sst [smem:[#allocation25_spill]] %s2863_s6 }
   0x4   :  { %2884 = sst [smem:[#allocation26_spill]] %s2864_s7 }
   0x5   :  { %2885 = sst [smem:[#allocation27_spill]] %s2865_s8 }
   0x6   :  { %2886 = sst [smem:[#allocation28_spill]] %s2871_s14 }
   0x7   :  { %2887 = sst [smem:[#allocation29_spill]] %s2872_s15 }
   0x8   :  { %20 = vsyncpa [#allocation4], 0 }
   0x9   :  { %22 = vsyncpa [#allocation4 + $0x1], 0 }
   0xa   :  { %23 = vsyncpa [#allocation7], 0 }
   0xb   :  { %24 = vsyncpa [#allocation10], 0 }
   0xc   :  { %25 = vsyncpa [#allocation13], 0 }
   0xd   :  { %26 = vsyncpa [#allocation5], 0 }
   0xe   :  { %28 = vsyncpa [#allocation5 + $0x1], 0  ;;  %s2472_s18 = smov 0   ;;  %s2474_s19 = smov 0  }
   0xf   :  { %s2476_s20 = smov 0   ;;  %s2478_s21 = smov 0  }
  0x10 LB: > { %2888 = sst [smem:[#allocation20_spill]] %s2360_s20  ;;  %s2366_s22 = smov [#allocation6]   ;;  %s2364_s21 = sphi %s2478_s21, %s2917_s21   ;;  %s2360_s20 = sphi %s2476_s20, %s2919_s20   ;;  %s2356_s19 = sphi %s2474_s19, %s2921_s19   ;;  %s2352_s18 = sphi %s2472_s18, %s2920_s18  }
  0x11   : > { %s409_s23 = sshll.u32 %s2366_s22, 4  ;;  %s2493_s24 = sadd.s32 4294967295, %s2364_s21   ;;  %s410_s23 = int_to_ptr.vmem [resolvable:$true] %s409_s23 }
  0x12   : > { %p1772_p0 = scmp.ge.s32.totalorder %s2364_s21, 1  ;;  %p2874_p1 = scmp.eq.s32.totalorder %s2493_s24, 0 }
  0x13   : > { %p390_p2 = scmp.lt.s32.totalorder %s2364_s21, 3  ;;  %s2367_s26 = smov [#allocation9]  }
  0x14   : > { %s433_s27 = sshll.u32 %s2367_s26, 4  ;;  %s2368_s28 = smov [#allocation8]   ;;  %s434_s27 = int_to_ptr.vmem [resolvable:$true] %s433_s27 }
  0x15   : > { %p2498_p3 = pnand %p1772_p0, %p390_p2  ;;  %s419_s29 = sshll.u32 %s2368_s28, 4  ;;  %s2511_s29 = int_to_ptr.vmem [resolvable:$true] %s419_s29 }
  0x16   : > { %s2141_s17 = scalar_lea.vmem %s410_s23, 16  ;;  %s2148_s22 = scalar_lea.vmem %s410_s23, 32 }
  0x17   : > { %s2889_s25 = scalar_select %p2498_p3, 1, 0 }
  0x18   : > { %p2006_p5 = pneg %p2498_p3  ;;  %p2142_p8 = scmp.ne.s32.totalorder %s410_s23, %s2141_s17 }
  0x19   : > { %p2149_p11 = scmp.lt.s32.totalorder %s410_s23, %s410_s23  ;;  %p2150_p12 = scmp.lt.s32.totalorder %s2148_s22, %s2141_s17 }
  0x1a   : > { %p2507_p6 = pnand %p2006_p5, %p2874_p1 }
  0x1b   : > { %p2151_p13 = por %p2150_p12, %p2149_p11 }
  0x1c   : > { %p2515_p7 = pneg %p2507_p6 }
  0x1e   : > { %p2144_p9 = pnand %p2142_p8, %p2515_p7 }
  0x20   : > { %p2145_p10 = pneg %p2144_p9 }
  0x22   : > { %p2152_p0 = pnand %p2151_p13, %p2145_p10 }
  0x24   : > { %2155 = shalt.err (!%p2152_p0)
}
  0x25   : > { %s2892_s4 = sld [smem:[#allocation23_spill]]  ;;  %s2167_s15 = scalar_lea.vmem %s434_s27, 16 }
  0x26   : > { %p2168_p2 = scmp.ne.s32.totalorder %s434_s27, %s2167_s15  ;;  %s2174_s14 = scalar_lea.vmem %s434_s27, 32 }
  0x27   : > { %p2175_p8 = scmp.lt.s32.totalorder %s434_s27, %s434_s27  ;;  %p2176_p9 = scmp.lt.s32.totalorder %s2174_s14, %s2167_s15 }
  0x28   : > { %p2170_p5 = pnand %p2168_p2, %p2515_p7 }
  0x29   : > { %p2177_p1 = por %p2176_p9, %p2175_p8 }
  0x2a   : > { %p2171_p4 = pneg %p2170_p5 }
  0x2b   : > { %2009 = dma.hbm_to_vmem [thread:$0]  (!%p2507_p6), %s2892_s4, 16, %s410_s23, [#allocation7]  }
  0x2c   : > { %p2178_p3 = pnand %p2177_p1, %p2171_p4 }
  0x2e   : > { %2181 = shalt.err (!%p2178_p3)
}
  0x2f   : > { %s2893_s6 = sld [smem:[#allocation25_spill]]  ;;  %s2193_s23 = scalar_lea.vmem %s2511_s29, 256 }
  0x30   : > { %p2194_p10 = scmp.ne.s32.totalorder %s2511_s29, %s2193_s23  ;;  %p2201_p13 = scmp.lt.s32.totalorder %s2511_s29, %s2511_s29 }
  0x31   : > { %p2202_p0 = scmp.lt.s32.totalorder %s2193_s23, %s2193_s23 }
  0x32   : > { %p2196_p11 = pnand %p2194_p10, %p2515_p7 }
  0x33   : > { %p2203_p1 = por %p2202_p0, %p2201_p13 }
  0x34   : > { %p2197_p12 = pneg %p2196_p11 }
  0x35   : > { %2015 = dma.hbm_to_vmem [thread:$0]  (!%p2507_p6), %s2893_s6, 16, %s434_s27, [#allocation10]  }
  0x36   : > { %p2204_p3 = pnand %p2203_p1, %p2197_p12 }
  0x38   : > { %2207 = shalt.err (!%p2204_p3)
}
  0x39   : > { %s2369_s14 = smov 64   ;;  %s2370_s15 = smov 4  }
  0x3a   : > { %s2894_s5 = sld [smem:[#allocation24_spill]]  ;;  %s2371_s27 = smov [#allocation11]  }
  0x3b   : > { %s444_s17 = sshll.u32 %s2371_s27, 4  ;;  %s2372_s22 = smov [#allocation12]   ;;  %s445_s17 = int_to_ptr.vmem [resolvable:$true] %s444_s17 }
  0x3c   : > { %s455_s4 = sshll.u32 %s2372_s22, 4  ;;  %s2219_s6 = scalar_lea.vmem %s445_s17, 16  ;;  %s456_s4 = int_to_ptr.vmem [resolvable:$true] %s455_s4 }
  0x3d   : > { %p2220_p4 = scmp.ne.s32.totalorder %s445_s17, %s2219_s6  ;;  %s2226_s23 = scalar_lea.vmem %s445_s17, 32 }
  0x3e   : > { %p2227_p8 = scmp.lt.s32.totalorder %s445_s17, %s445_s17  ;;  %p2228_p9 = scmp.lt.s32.totalorder %s2226_s23, %s2219_s6 }
  0x3f   : > { %p2222_p2 = pnand %p2220_p4, %p2515_p7 }
  0x40   : > { %2012 = dma.hbm_to_vmem [thread:$0]  (!%p2507_p6), %s2894_s5, 256, %s2511_s29, [#allocation7], %s2369_s14, %s2369_s14, %s2370_s15  }
  0x41   : > { %p2223_p5 = pneg %p2222_p2  ;;  %p2229_p10 = por %p2228_p9, %p2227_p8 }
  0x43   : > { %p2230_p11 = pnand %p2229_p10, %p2223_p5 }
  0x45   : > { %2233 = shalt.err (!%p2230_p11)
}
  0x46   : > { %s2895_s7 = sld [smem:[#allocation26_spill]]  ;;  %s2245_s14 = scalar_lea.vmem %s456_s4, 16 }
  0x47   : > { %p2246_p12 = scmp.ne.s32.totalorder %s456_s4, %s2245_s14  ;;  %s2252_s15 = scalar_lea.vmem %s456_s4, 32 }
  0x48   : > { %p2253_p1 = scmp.lt.s32.totalorder %s456_s4, %s456_s4  ;;  %p2254_p3 = scmp.lt.s32.totalorder %s2252_s15, %s2245_s14 }
  0x49   : > { %p2248_p13 = pnand %p2246_p12, %p2515_p7 }
  0x4a   : > { %p2255_p4 = por %p2254_p3, %p2253_p1 }
  0x4b   : > { %p2249_p0 = pneg %p2248_p13 }
  0x4c   : > { %2018 = dma.hbm_to_vmem [thread:$0]  (!%p2507_p6), %s2895_s7, 16, %s445_s17, [#allocation10]  }
  0x4d   : > { %p2256_p2 = pnand %p2255_p4, %p2249_p0 }
  0x4f   : > { %2259 = shalt.err (!%p2256_p2)
}
  0x50   : > { %s2896_s8 = sld [smem:[#allocation27_spill]]  ;;  %s1771_s16 = sadd.s32 4294967294, %s2364_s21  }
  0x51   : > { %s2561_s30 = sadd.s32 1, %s2364_s21   ;;  %s67_s27 = sadd.s32 1, %s2360_s20 }
  0x52   : > { %2897 = sst [smem:[#allocation21_spill]] %s2561_s30  ;;  %s64_s17 = ssub.s32 %s2364_s21, %s2561_s30 }
  0x53   : > { %p74_p7 = scmp.ne.s32.totalorder %s2360_s20, %s2356_s19  ;;  %p65_p5 = scmp.eq.s32.totalorder %s64_s17, 0 }
  0x54   : > { %p75_p8 = scmp.eq.s32.totalorder %s2364_s21, 0  ;;  %p80_p9 = scmp.ne.s32.totalorder %s2356_s19, %s2352_s18 }
  0x55   : > { %p377_p10 = scmp.eq.s32.totalorder %s2493_s24, 1  ;;  %p2899_p12 = scmp.eq.s32.totalorder %s2493_s24, 0 }
  0x56   : > { %2021 = dma.hbm_to_vmem [thread:$0]  (!%p2507_p6), %s2896_s8, 16, %s456_s4, [#allocation13]  }
  0x57   : > { %s2573_s22 = scalar_select %p65_p5, %s2360_s20, %s67_s27  }
  0x58   : > { %p76_p11 = por %p75_p8, %p74_p7  ;;  %p2577_p13 = por %p2899_p12, %p80_p9 }
  0x59   : > { %2898 = sst [smem:[#allocation22_spill]] %s2573_s22  ;;  %p2581_p6 = por %p377_p10, %p74_p7 }
  0x5a   : > { %s2900_s23 = scalar_select %p2577_p13, 1, 0 }
  0x5b   : > { %s2901_s4 = scalar_select %p2581_p6, 1, 0 }
  0x5c   : > { %p383_p0 = scmp.eq.s32.totalorder %s1771_s16, 1  ;;  %p2035_p1 = scmp.lt.s32.totalorder %s2364_s21, 2 }
  0x5d   : > { %s491_s26 = sand.u32 1, %s2360_s20   ;;  %s1779_s14 = sshll.u32 %s2364_s21, 4 }
  0x5e   : > { %p2587_p3 = por %p383_p0, %p80_p9  ;;  %s2595_s28 = scalar_lea.hbm %s2858_s1, %s1779_s14 }
  0x5f   : > { %s494_s27 = scalar_lea.vmem [#allocation3], %s491_s26  ;;  %p2597_p4 = pnand %p2035_p1, %p76_p11 }
  0x60   : > { %s2902_s29 = scalar_select %p2587_p3, 1, 0 }
  0x61   : > { %s501_s17 = sshll.u32 %s494_s27, 4  ;;  %s492_s5 = scalar_lea.sflag [#allocation4], %s491_s26  ;;  %s502_s17 = int_to_ptr.vmem [resolvable:$true] %s501_s17 }
  0x62   : > { %s2260_s7 = scalar_lea.hbm %s2595_s28, 16  ;;  %p2262_p7 = pneg %p2597_p4 }
  0x63   : > { %p2261_p2 = scmp.ne.s32.totalorder %s2595_s28, %s2260_s7  ;;  %s2265_s6 = scalar_lea.hbm %s2858_s1, 32 }
  0x64   : > { %p2266_p9 = scmp.lt.s32.totalorder %s2595_s28, %s2858_s1  ;;  %p2267_p10 = scmp.lt.s32.totalorder %s2265_s6, %s2260_s7 }
  0x65   : > { %p2263_p5 = pnand %p2262_p7, %p2261_p2 }
  0x66   : > { %p2268_p11 = por %p2267_p10, %p2266_p9 }
  0x67   : > { %p2264_p8 = pneg %p2263_p5 }
  0x69   : > { %p2269_p12 = pnand %p2268_p11, %p2264_p8 }
  0x6b   : > { %2272 = shalt.err (!%p2269_p12)
}
  0x6c   : > { %s2273_s27 = scalar_lea.vmem %s502_s17, 16  ;;  %s2373_s26 = smov [#allocation3]  }
  0x6d   : > { %p2274_p0 = scmp.ne.s32.totalorder %s502_s17, %s2273_s27  ;;  %s2278_s20 = sshll.u32 %s2373_s26, 4  ;;  %s2279_s20 = int_to_ptr.vmem [resolvable:$false] %s2278_s20 }
  0x6e   : > { %s2280_s30 = scalar_lea.vmem %s2279_s20, 32  ;;  %p2281_p2 = scmp.lt.s32.totalorder %s502_s17, %s2279_s20 }
  0x6f   : > { %p2276_p1 = pnand %p2274_p0, %p2262_p7  ;;  %p2282_p5 = scmp.lt.s32.totalorder %s2280_s30, %s2273_s27 }
  0x71   : > { %p2277_p3 = pneg %p2276_p1  ;;  %p2283_p6 = por %p2282_p5, %p2281_p2 }
  0x73   : > { %p2284_p13 = pnand %p2283_p6, %p2277_p3 }
  0x75   : > { %2287 = shalt.err (!%p2284_p13)
}
  0x76   : > { %2025 = dma.hbm_to_vmem [thread:$0]  (!%p2597_p4), %s2595_s28, 16, %s502_s17, %s492_s5  }
  0x77   : > { %p2904_p8 = scmp.ne.s32.totalorder %s2889_s25, 0 }
  0x78   : > { %s2618_s7 = sand.u32 (!%p2904_p8), 1, %s2356_s19   ;;  %p2905_p7 = scmp.ne.s32.totalorder (!%p2904_p8), %s2900_s23, 0 }
  0x79   : > { %510 = sbr.rel (%p2904_p8) target bundleno = 4442 (0x115a), region = 80  ;;  %s513_s8 = scalar_lea.sflag (!%p2904_p8), [#allocation4], %s2618_s7 }
  0x7a   : > { %s515_s22 = scalar_lea.vmem (!%p2904_p8), [#allocation3], %s2618_s7 }
  0x7e   : > { %2331 = dma.done.wait (%p2905_p7), %s513_s8, 16  }
  0x7f   : > { %2333 = vsyncadd (%p2905_p7), %s513_s8, 4294967280  ;;  %p2906_p13 = scmp.eq.s32.totalorder %s2493_s24, 0 }
  0x81   : > { %2335 = dma.done.wait (%p2906_p13), [#allocation7], 272   ;;  %p2907_p6 = pmov %p2906_p13 }
  0x83   : > { %2337 = vsyncadd (%p2907_p6), [#allocation7], 4294967024  ;;  %p2908_p3 = pmov %p2907_p6 }
  0x85   : > { %2339 = dma.done.wait (%p2908_p3), [#allocation10], 32   ;;  %p2909_p4 = pmov %p2908_p3 }
  0x86   : > { %p2910_p9 = pmov %p2908_p3 }
  0x87   : > { %2341 = vsyncadd (%p2909_p4), [#allocation10], 4294967264 }
  0x88   : > { %2343 = dma.done.wait (%p2910_p9), [#allocation13], 16   ;;  %p2911_p10 = pmov %p2908_p3 }
  0x89   : > { %p585_p11 = scmp.lt.s32.totalorder %s2493_s24, 1  ;;  %v2374_v0 = vmov 0.0   ;;  %vm2375_vm0 = vmmov 0   ;;  %v2098_v1 = vld [vmem:[%s2860_s3 + $0x8] sm:$0xff]   ;;  %v2099_v2 = vld [vmem:[%s2860_s3] sm:$0xff]   ;;  %vm616_vm1 = vcmask 261120  }
  0x8a   : > { %2345 = vsyncadd (%p2911_p10), [#allocation13], 4294967280  ;;  %1874 = vmatprep.subr.bf16.mxu0 %v2374_v0  ;;  %1878 = vmatprep.mubr.msk.bf16.mxu0 %vm2375_vm0, %v2374_v0  ;;  %v712_v5 = vld [vmem:[%s2859_s2] sm:$0xf]  ;;  %vm713_vm2 = vcmask 1043456   ;;  %vm664_vm3 = vcmask 64512  }
  0x8b   : > { %s586_s5 = scalar_select %p585_p11, %s2493_s24, 1  ;;  %1882 = vmatprep.subr.bf16.mxu1 %v2374_v0  ;;  %1884 = vmatprep.mubr.msk.bf16.mxu1 %vm2375_vm0, %v2374_v0  ;;  %v715_v6 = vsel %vm713_vm2, %v712_v5, 0  ;;  %v1788_v7 = vld [vmem:[#allocation6] ss:$0 sm:$0xff]  ;;  %v2690_v28 = vld [vmem:[%s515_s22] ss:$0 sm:$0xff] }
  0x8c   : > { %1875 = vmatpush3.bf16.msra.mxu0 %v2098_v1  ;;  %s2376_s27 = smov 96   ;;  %s2377_s26 = smov 377   ;;  %v1797_v42 = vld [vmem:[%s2859_s2 + $0x4] sm:$0xf]  ;;  %vm830_vm4 = vcmask 60416   ;;  %vm1001_vm5 = vcmask 126016  }
  0x8d   : > { %s1787_s20 = sshll.u32 %s586_s5, 3  ;;  %1876 = vmatprep.subr.bf16.mxu0 %v2374_v0  ;;  %s2378_s8 = smov 64   ;;  %v886_v45 = vsel %vm713_vm2, %v1797_v42, 0  ;;  %vm1172_vm6 = vcmask 191616   ;;  %vm1343_vm7 = vcmask 257216   ;;  %vm1555_vm8 = vcmask 523264  }
  0x8e   : > { %s588_s23 = scalar_lea.vmem %s2857_s0, %s1787_s20  ;;  %s2379_s5 = smov 88  }
  0x8f   : > { %v2655_v3 = vld [vmem:[%s588_s23] sm:$0xff]  ;;  %s2380_s22 = smov 120   ;;  %s2381_s30 = smov 56  }
  0x90   : > { %v591_v4 = vpack.c.bf16 %v2655_v3, %v2655_v3  ;;  %1877 = vmatpush3.bf16.msra.mxu0 %v2099_v2  ;;  %s2382_s23 = smov 80   ;;  %s2383_s28 = smov 112  }
  0x91   : > { %1888 = vmatprep.subr.bf16.mxu0 %v2374_v0  ;;  %s2384_s14 = smov 104   ;;  %s2385_s15 = smov 72  }
  0x92   : > { %s2386_s6 = smov 48   ;;  %s2390_s20 = smov 24  }
  0x93   : > { %1879 = vmatmul.mubr.msk.bf16.vlgmr.msra.gmra.mxu0 %vm616_vm1, %v591_v4  ;;  %p2914_p0 = scmp.ne.s32.totalorder %s2901_s4, 0 }
  0x94   : > { %1890 = vmatprep.mubr.msk.bf16.mxu0 %vm2375_vm0, %v2374_v0  ;;  %1889 = vmatpush3.bf16.msra.mxu0 %v715_v6 }
  0x95   : > { %1900 = vmatprep.subr.bf16.mxu0 %v2374_v0 }
 0x153   : > { %v654_v8 = vpop.f32.mrf.mxu0 }
 0x154   : > { %v655_v9 = vadd.f32 %v1788_v7, %v654_v8 }
 0x155   : > { %v1880_v10 = vpop.f32.mrf.mxu0 }
 0x156   : > { %v2669_v11 = vpack.c.bf16 %v655_v9, %v655_v9 }
 0x157   : > { %v657_v12 = vpop.f32.mrf.mxu0 }
 0x158   : > { %662 = vrot.lane.b32.xlu0 %v2669_v11, %s2376_s27  ;;  %1891 = vmatmul.mubr.msk.bf16.vlgmr.msra.gmra.mxu0 %vm664_vm3, %v2669_v11 }
 0x159   : > { %v1881_v13 = vpop.f32.mrf.mxu0  ;;  %1902 = vmatprep.mubr.msk.bf16.mxu0 %vm2375_vm0, %v2374_v0 }
 0x1ca   : > { %v663_v14 = vpop.permute.xlu0 %662 }
 0x1cb   : > { %v669_v15 = vsel %vm664_vm3, %v663_v14, 0 }
 0x1cc   : > { %1883 = vmatpush3.bf16.xpose.msra.mxu1 %v669_v15  ;;  %v1802_v15 = vld [vmem:[%s2859_s2 + $0x8] sm:$0xf] }
 0x1cd   : > { %1894 = vmatprep.subr.bf16.mxu1 %v2374_v0 }
 0x1d3   : > { %1885 = vmatmul.mubr.msk.bf16.vlgmr.msra.gmra.mxu1 %vm664_vm3, %v2669_v11 }
 0x1d4   : > { %1896 = vmatprep.mubr.msk.bf16.mxu1 %vm2375_vm0, %v2374_v0 }
 0x218   : > { %v751_v16 = vpop.f32.mrf.mxu0 }
 0x219   : > { %759 = vrot.lane.b32.xlu0 %v751_v16, %s2377_s26 }
 0x21a   : > { %v1892_v17 = vpop.f32.mrf.mxu0 }
 0x21c   : > { %v754_v18 = vpop.f32.mrf.mxu0 }
 0x21d   : > { %781 = vrot.lane.b32.xlu0 %v2669_v11, %s2378_s8  ;;  %v1057_v18 = vsel %vm713_vm2, %v1802_v15, 0 }
 0x21e   : > { %v1893_v19 = vpop.f32.mrf.mxu0 }
 0x221   : > { %834 = vrot.lane.b32.xlu0 %v2669_v11, %s2379_s5  ;;  %s2387_s5 = smov 8  }
 0x28b   : > { %v760_v20 = vpop.permute.xlu0 %759 }
 0x28f   : > { %v782_v21 = vpop.permute.xlu0 %781 }
 0x290   : > { %v787_v22 = vsel %vm713_vm2, %v782_v21, 0 }
 0x291   : > { %1895 = vmatpush3.bf16.msra.mxu1 %v787_v22 }
 0x292   : > { %1906 = vmatprep.subr.bf16.mxu1 %v2374_v0 }
 0x293   : > { %v705_v23 = vpop.f32.mrf.mxu1  ;;  %v835_v24 = vpop.permute.xlu0 %834 }
 0x294   : > { %v711_v25 = vmul.f32 0.35355338, %v705_v23  ;;  %v840_v26 = vsel %vm664_vm3, %v835_v24, 0 }
 0x295   : > { %v1886_v27 = vpop.f32.mrf.mxu1  ;;  %1901 = vmatpush3.bf16.xpose.msra.mxu0 %v840_v26 }
 0x296   : > { %v761_v29 = vadd.f32 %v760_v20, %v711_v25  ;;  %1912 = vmatprep.subr.bf16.mxu0 %v2374_v0 }
 0x297   : > { %v708_v30 = vpop.f32.mrf.mxu1 }
 0x298   : > { %v768_v31 = vadd.f32 %v2690_v28, %v761_v29 }
 0x299   : > { %v1887_v32 = vpop.f32.mrf.mxu1 }
 0x29a   : > { %v769_v33 = vsel %vm664_vm3, %v768_v31, -inf }
 0x29b   : > { %770 = vmax.xlane.f32.xlu1 %v769_v33 }
 0x324   : > { %v771_v34 = vpop.xlane.xlu1 %770 }
 0x325   : > { %v772_v35 = vsub.f32 %v768_v31, %v771_v34 }
 0x327   : > { %v773_v36 = vmul.f32 1.442695, %v772_v35 }
 0x329   : > { %2108 = vpow2.f32 %v773_v36 }
 0x336   : > { %v2109_v37 = vpop.eup %2108 }
 0x337   : > { %v775_v38 = vsel %vm664_vm3, %v2109_v37, 0.0 }
 0x338   : > { %776 = vadd.xlane.f32.xlu1 %v775_v38 }
 0x349   : > { %832 = vrot.lane.b32.xlu1 %v2669_v11, %s2380_s22  ;;  %s2388_s22 = smov 16  }
 0x3c1   : > { %v777_v39 = vpop.xlane.xlu1 %776 }
 0x3c2   : > { %2110 = vrcp.f32 %v777_v39 }
 0x3c5   : > { %v833_v40 = vpop.permute.xlu1 %832 }
 0x3c6   : > { %1903 = vmatmul.mubr.msk.bf16.vlgmr.msra.gmra.mxu0 %vm664_vm3, %v833_v40 }
 0x3c7   : > { %1914 = vmatprep.mubr.msk.bf16.mxu0 %vm2375_vm0, %v2374_v0 }
 0x3cf   : > { %v2111_v41 = vpop.eup %2110 }
 0x3d0   : > { %v779_v43 = vmul.f32 %v2111_v41, %v2109_v37 }
 0x3d2   : > { %v780_v44 = vpack.c.bf16 %v779_v43, %v779_v43 }
 0x3d4   : > { %1897 = vmatmul.mubr.msk.bf16.vlgmr.msra.gmra.mxu1 %vm664_vm3, %v780_v44 }
 0x3d5   : > { %1907 = vmatpush3.bf16.msra.mxu1 %v886_v45  ;;  %1908 = vmatprep.mubr.msk.bf16.mxu1 %vm2375_vm0, %v2374_v0 }
 0x3d6   : > { %1918 = vmatprep.subr.bf16.mxu1 %v2374_v0 }
 0x3dc   : > { %1909 = vmatmul.mubr.msk.bf16.vlgmr.msra.gmra.mxu1 %vm664_vm3, %v833_v40 }
 0x3dd   : > { %1920 = vmatprep.mubr.msk.bf16.mxu1 %vm2375_vm0, %v2374_v0 }
 0x486   : > { %v876_v46 = vpop.f32.mrf.mxu0 }
 0x487   : > { %v882_v59 = vmul.f32 0.35355338, %v876_v46 }
 0x488   : > { %v1904_v47 = vpop.f32.mrf.mxu0 }
 0x48a   : > { %v879_v48 = vpop.f32.mrf.mxu0 }
 0x48c   : > { %v1905_v49 = vpop.f32.mrf.mxu0 }
 0x48d   : > { %v1807_v49 = vld [vmem:[%s2859_s2 + $0xc] sm:$0xf] }
 0x494   : > { %v823_v50 = vpop.f32.mrf.mxu1 }
 0x495   : > { %v829_v51 = vpack.c.bf16 %v823_v50, %v823_v50 }
 0x496   : > { %v1898_v52 = vpop.f32.mrf.mxu1 }
 0x497   : > { %831 = vst.msk [vmem:[#allocation2] sm:$0xf] %vm830_vm4, %v829_v51  ;;  %v1228_v52 = vsel %vm713_vm2, %v1807_v49, 0 }
 0x498   : > { %v826_v53 = vpop.f32.mrf.mxu1 }
 0x49a   : > { %v1899_v54 = vpop.f32.mrf.mxu1 }
 0x49c   : > { %v922_v55 = vpop.f32.mrf.mxu1 }
 0x49d   : > { %930 = vrot.lane.b32.xlu0 %v922_v55, %s2377_s26 }
 0x49e   : > { %v1910_v56 = vpop.f32.mrf.mxu1 }
 0x4a0   : > { %v925_v57 = vpop.f32.mrf.mxu1 }
 0x4a2   : > { %v1911_v58 = vpop.f32.mrf.mxu1 }
 0x50f   : > { %v931_v60 = vpop.permute.xlu0 %930 }
 0x510   : > { %v932_v61 = vadd.f32 %v931_v60, %v882_v59 }
 0x512   : > { %v933_v62 = vadd.f32 %v2690_v28, %v932_v61 }
 0x514   : > { %v934_v63 = vsel %vm664_vm3, %v933_v62, -inf }
 0x515   : > { %935 = vmax.xlane.f32.xlu0 %v934_v63 }
 0x52b   : > { %946 = vrot.lane.b32.xlu0 %v2669_v11, %s2381_s30  ;;  %s1786_s30 = sshll.u32 %s2618_s7, 3 }
 0x52f   : > { %1005 = vrot.lane.b32.xlu0 %v2669_v11, %s2382_s23  ;;  %s2391_s23 = smov [#allocation14]  }
 0x59e   : > { %v936_v1 = vpop.xlane.xlu0 %935 }
 0x59f   : > { %v937_v2 = vsub.f32 %v933_v62, %v936_v1 }
 0x5a1   : > { %v938_v4 = vmul.f32 1.442695, %v937_v2 }
 0x5a2   : > { %v947_v5 = vpop.permute.xlu0 %946 }
 0x5a3   : > { %2112 = vpow2.f32 %v938_v4  ;;  %v952_v6 = vsel %vm713_vm2, %v947_v5, 0 }
 0x5a4   : > { %1913 = vmatpush3.bf16.msra.mxu0 %v952_v6 }
 0x5a5   : > { %1924 = vmatprep.subr.bf16.mxu0 %v2374_v0 }
 0x5a6   : > { %v1006_v7 = vpop.permute.xlu0 %1005 }
 0x5a7   : > { %v1011_v8 = vsel %vm664_vm3, %v1006_v7, 0 }
 0x5a8   : > { %1919 = vmatpush3.bf16.xpose.msra.mxu1 %v1011_v8 }
 0x5a9   : > { %1930 = vmatprep.subr.bf16.mxu1 %v2374_v0 }
 0x5b0   : > { %v2113_v9 = vpop.eup %2112 }
 0x5b1   : > { %v940_v10 = vsel %vm664_vm3, %v2113_v9, 0.0 }
 0x5b2   : > { %941 = vadd.xlane.f32.xlu1 %v940_v10 }
 0x5c3   : > { %1003 = vrot.lane.b32.xlu1 %v2669_v11, %s2383_s28  ;;  %s2292_s28 = sshll.u32 %s2391_s23, 4  ;;  %s2293_s28 = int_to_ptr.vmem [resolvable:$false] %s2292_s28 }
 0x63b   : > { %v942_v12 = vpop.xlane.xlu1 %941 }
 0x63c   : > { %2114 = vrcp.f32 %v942_v12 }
 0x63f   : > { %v1004_v13 = vpop.permute.xlu1 %1003 }
 0x640   : > { %1921 = vmatmul.mubr.msk.bf16.vlgmr.msra.gmra.mxu1 %vm664_vm3, %v1004_v13 }
 0x641   : > { %1932 = vmatprep.mubr.msk.bf16.mxu1 %vm2375_vm0, %v2374_v0 }
 0x649   : > { %v2115_v14 = vpop.eup %2114 }
 0x64a   : > { %v944_v16 = vmul.f32 %v2115_v14, %v2113_v9 }
 0x64c   : > { %v945_v17 = vpack.c.bf16 %v944_v16, %v944_v16 }
 0x64e   : > { %1915 = vmatmul.mubr.msk.bf16.vlgmr.msra.gmra.mxu0 %vm664_vm3, %v945_v17 }
 0x64f   : > { %1925 = vmatpush3.bf16.msra.mxu0 %v1057_v18  ;;  %1926 = vmatprep.mubr.msk.bf16.mxu0 %vm2375_vm0, %v2374_v0 }
 0x650   : > { %1936 = vmatprep.subr.bf16.mxu0 %v2374_v0 }
 0x656   : > { %1927 = vmatmul.mubr.msk.bf16.vlgmr.msra.gmra.mxu0 %vm664_vm3, %v1004_v13 }
 0x657   : > { %1938 = vmatprep.mubr.msk.bf16.mxu0 %vm2375_vm0, %v2374_v0 }
 0x700   : > { %v1047_v19 = vpop.f32.mrf.mxu1 }
 0x701   : > { %v1053_v32 = vmul.f32 0.35355338, %v1047_v19 }
 0x702   : > { %v1922_v20 = vpop.f32.mrf.mxu1 }
 0x704   : > { %v1050_v21 = vpop.f32.mrf.mxu1 }
 0x706   : > { %v1923_v22 = vpop.f32.mrf.mxu1 }
 0x70e   : > { %v2736_v23 = vpop.f32.mrf.mxu0 }
 0x70f   : > { %v1833_v8 = vpack.c.bf16 %v2736_v23, %v2736_v23  ;;  %v2100_v23 = vld [vmem:[#allocation8 + $0x8] sm:$0xff]  }
 0x710   : > { %v1916_v24 = vpop.f32.mrf.mxu0 }
 0x711   : > { %v2101_v24 = vld [vmem:[#allocation8] sm:$0xff]  }
 0x712   : > { %v991_v25 = vpop.f32.mrf.mxu0 }
 0x714   : > { %v1917_v26 = vpop.f32.mrf.mxu0 }
 0x716   : > { %v1093_v27 = vpop.f32.mrf.mxu0 }
 0x717   : > { %1101 = vrot.lane.b32.xlu0 %v1093_v27, %s2377_s26 }
 0x718   : > { %v1928_v29 = vpop.f32.mrf.mxu0 }
 0x71a   : > { %v1096_v30 = vpop.f32.mrf.mxu0 }
 0x71c   : > { %v1929_v31 = vpop.f32.mrf.mxu0 }
 0x789   : > { %v1102_v33 = vpop.permute.xlu0 %1101 }
 0x78a   : > { %v1103_v34 = vadd.f32 %v1102_v33, %v1053_v32  ;;  %v1811_v32 = vld [vmem:[#allocation9] ss:$0 sm:$0xff] }
 0x78c   : > { %v1104_v35 = vadd.f32 %v2690_v28, %v1103_v34 }
 0x78e   : > { %v1105_v36 = vsel %vm664_vm3, %v1104_v35, -inf }
 0x78f   : > { %1106 = vmax.xlane.f32.xlu1 %v1105_v36 }
 0x7a0   : > { %1174 = vrot.lane.b32.xlu1 %v2669_v11, %s2384_s14  ;;  %s2912_s14 = sld [smem:[#allocation28_spill]] }
 0x7a4   : > { %1176 = vrot.lane.b32.xlu1 %v2669_v11, %s2385_s15  ;;  %s1830_s15 = sshll.u32 %s2493_s24, 7  ;;  %s2294_s24 = scalar_lea.vmem %s2293_s28, 256 }
 0x818   : > { %v1107_v37 = vpop.xlane.xlu1 %1106 }
 0x819   : > { %v1108_v38 = vsub.f32 %v1104_v35, %v1107_v37 }
 0x81b   : > { %v1109_v39 = vmul.f32 1.442695, %v1108_v38 }
 0x81c   : > { %v1175_v40 = vpop.permute.xlu1 %1174 }
 0x81d   : > { %2116 = vpow2.f32 %v1109_v39 }
 0x820   : > { %v1177_v41 = vpop.permute.xlu1 %1176 }
 0x821   : > { %v1182_v42 = vsel %vm664_vm3, %v1177_v41, 0 }
 0x822   : > { %1937 = vmatpush3.bf16.xpose.msra.mxu0 %v1182_v42 }
 0x823   : > { %1948 = vmatprep.subr.bf16.mxu0 %v2374_v0 }
 0x829   : > { %1939 = vmatmul.mubr.msk.bf16.vlgmr.msra.gmra.mxu0 %vm664_vm3, %v1175_v40 }
 0x82a   : > { %v2117_v43 = vpop.eup %2116  ;;  %1950 = vmatprep.mubr.msk.bf16.mxu0 %vm2375_vm0, %v2374_v0 }
 0x82b   : > { %v1111_v44 = vsel %vm664_vm3, %v2117_v43, 0.0 }
 0x82c   : > { %1112 = vadd.xlane.f32.xlu0 %v1111_v44 }
 0x842   : > { %1117 = vrot.lane.b32.xlu0 %v2669_v11, %s2386_s6  ;;  %s584_s6 = scalar_lea.vmem [#allocation14], %s1786_s30 }
 0x843   : > { %s1644_s27 = sshll.u32 %s584_s6, 4  ;;  %s1645_s27 = int_to_ptr.vmem [resolvable:$true] %s1644_s27 }
 0x844   : > { %s2288_s25 = scalar_lea.vmem %s1645_s27, 128  ;;  %p2295_p5 = scmp.lt.s32.totalorder %s1645_s27, %s2293_s28 }
 0x845   : > { %p2289_p12 = scmp.ne.s32.totalorder %s1645_s27, %s2288_s25  ;;  %p2296_p8 = scmp.lt.s32.totalorder %s2294_s24, %s2288_s25 }
 0x847   : > { %p2290_p1 = pnand %p2289_p12, %p2914_p0  ;;  %p2297_p7 = por %p2296_p8, %p2295_p5 }
 0x849   : > { %p2291_p2 = pneg %p2290_p1 }
 0x84b   : > { %p2298_p13 = pnand %p2297_p7, %p2291_p2 }
 0x8b5   : > { %v1113_v45 = vpop.xlane.xlu0 %1112 }
 0x8b6   : > { %2118 = vrcp.f32 %v1113_v45  ;;  %v2102_v45 = vld [vmem:[%s2866_s9 + $0x8] sm:$0xff]  }
 0x8b9   : > { %v1118_v46 = vpop.permute.xlu0 %1117 }
 0x8ba   : > { %v1123_v47 = vsel %vm713_vm2, %v1118_v46, 0 }
 0x8bb   : > { %1931 = vmatpush3.bf16.msra.mxu1 %v1123_v47 }
 0x8bc   : > { %1942 = vmatprep.subr.bf16.mxu1 %v2374_v0 }
 0x8c3   : > { %v2119_v48 = vpop.eup %2118 }
 0x8c4   : > { %v1115_v50 = vmul.f32 %v2119_v48, %v2117_v43 }
 0x8c6   : > { %v1116_v51 = vpack.c.bf16 %v1115_v50, %v1115_v50  ;;  %v1815_v50 = vld [vmem:[#allocation11] ss:$0 sm:$0xff] }
 0x8c8   : > { %1933 = vmatmul.mubr.msk.bf16.vlgmr.msra.gmra.mxu1 %vm664_vm3, %v1116_v51 }
 0x8c9   : > { %1943 = vmatpush3.bf16.msra.mxu1 %v1228_v52  ;;  %1944 = vmatprep.mubr.msk.bf16.mxu1 %vm2375_vm0, %v2374_v0  ;;  %v1816_v52 = vld [vmem:[#allocation12] ss:$0 sm:$0xff] }
 0x8ca   : > { %1954 = vmatprep.subr.bf16.mxu1 %v2374_v0 }
 0x8d0   : > { %1945 = vmatmul.mubr.msk.bf16.vlgmr.msra.gmra.mxu1 %vm664_vm3, %v1175_v40 }
 0x8d1   : > { %1958 = vmatprep.mubr.msk.bf16.mxu1 %vm2375_vm0, %v2374_v0  ;;  %1955 = vmatpush3.bf16.msra.mxu1 %v2100_v23 }
 0x8d2   : > { %1956 = vmatprep.subr.bf16.mxu1 %v2374_v0 }
 0x8d5   : > { %1957 = vmatpush3.bf16.msra.mxu1 %v2101_v24 }
 0x8d6   : > { %1970 = vmatprep.subr.bf16.mxu1 %v2374_v0 }
 0x8e9   : > { %v1218_v53 = vpop.f32.mrf.mxu0 }
 0x8ea   : > { %v1224_v2 = vmul.f32 0.35355338, %v1218_v53 }
 0x8eb   : > { %v1940_v54 = vpop.f32.mrf.mxu0 }
 0x8ed   : > { %v1221_v55 = vpop.f32.mrf.mxu0 }
 0x8ef   : > { %v1941_v56 = vpop.f32.mrf.mxu0 }
 0x8f0   : > { %v2104_v56 = vld [vmem:[%s2868_s11 + $0x18] sm:$0xff]  }
 0x988   : > { %v1159_v57 = vpop.f32.mrf.mxu1 }
 0x989   : > { %v1834_v9 = vpack.c.bf16 %v1159_v57, %v1159_v57  ;;  %v2105_v57 = vld [vmem:[%s2868_s11 + $0x10] sm:$0xff]  }
 0x98a   : > { %v1934_v58 = vpop.f32.mrf.mxu1 }
 0x98b   : > { %v2106_v58 = vld [vmem:[%s2868_s11 + $0x8] sm:$0xff]  }
 0x98c   : > { %v1162_v59 = vpop.f32.mrf.mxu1 }
 0x98d   : > { %v2107_v59 = vld [vmem:[%s2868_s11] sm:$0xff]  }
 0x98e   : > { %v1935_v60 = vpop.f32.mrf.mxu1 }
 0x98f   : > { %v1817_v60 = vld [vmem:[%s2867_s10] ss:$0 sm:$0xff] }
 0x990   : > { %v1264_v61 = vpop.f32.mrf.mxu1 }
 0x991   : > { %1272 = vrot.lane.b32.xlu0 %v1264_v61, %s2377_s26  ;;  %s2389_s26 = smov 40  }
 0x992   : > { %v1946_v62 = vpop.f32.mrf.mxu1 }
 0x994   : > { %v1267_v63 = vpop.f32.mrf.mxu1 }
 0x996   : > { %v1947_v1 = vpop.f32.mrf.mxu1 }
 0xa03   : > { %v1273_v4 = vpop.permute.xlu0 %1272 }
 0xa04   : > { %v1274_v5 = vadd.f32 %v1273_v4, %v1224_v2 }
 0xa06   : > { %v1275_v6 = vadd.f32 %v2690_v28, %v1274_v5 }
 0xa08   : > { %v1276_v7 = vsel %vm664_vm3, %v1275_v6, -inf }
 0xa09   : > { %1277 = vmax.xlane.f32.xlu1 %v1276_v7 }
 0xa1a   : > { %998 = vrot.lane.b32.xlu1 %v1833_v8, %s2387_s5 }
 0xa1e   : > { %1169 = vrot.lane.b32.xlu1 %v1834_v9, %s2388_s22  ;;  %v1821_v9 = vld [vmem:[%s2869_s12] ss:$0 sm:$0xff]  ;;  %s2913_s22 = sld [smem:[#allocation29_spill]] }
 0xa92   : > { %v1278_v10 = vpop.xlane.xlu1 %1277 }
 0xa93   : > { %v1279_v12 = vsub.f32 %v1275_v6, %v1278_v10 }
 0xa95   : > { %v1280_v13 = vmul.f32 1.442695, %v1279_v12 }
 0xa96   : > { %v999_v14 = vpop.permute.xlu1 %998 }
 0xa97   : > { %2120 = vpow2.f32 %v1280_v13  ;;  %1002 = vst.msk [vmem:[#allocation2] sm:$0xf] %vm1001_vm5, %v999_v14 }
 0xa9a   : > { %v1170_v28 = vpop.permute.xlu1 %1169 }
 0xa9b   : > { %1173 = vst.msk [vmem:[#allocation2] sm:$0xf] %vm1172_vm6, %v1170_v28 }
 0xaa4   : > { %v2121_v15 = vpop.eup %2120 }
 0xaa5   : > { %v1282_v16 = vsel %vm664_vm3, %v2121_v15, 0.0 }
 0xaa6   : > { %1283 = vadd.xlane.f32.xlu0 %v1282_v16 }
 0xabc   : > { %1288 = vrot.lane.b32.xlu0 %v2669_v11, %s2389_s26  ;;  %s1642_s26 = scalar_lea.hbm %s2913_s22, %s1830_s15 }
 0xb2f   : > { %v1284_v17 = vpop.xlane.xlu0 %1283 }
 0xb30   : > { %2122 = vrcp.f32 %v1284_v17 }
 0xb33   : > { %v1289_v18 = vpop.permute.xlu0 %1288 }
 0xb34   : > { %v1294_v19 = vsel %vm713_vm2, %v1289_v18, 0 }
 0xb35   : > { %1949 = vmatpush3.bf16.msra.mxu0 %v1294_v19 }
 0xb36   : > { %1962 = vmatprep.subr.bf16.mxu0 %v2374_v0 }
 0xb3d   : > { %v2123_v20 = vpop.eup %2122 }
 0xb3e   : > { %v1286_v21 = vmul.f32 %v2123_v20, %v2121_v15 }
 0xb40   : > { %v1287_v22 = vpack.c.bf16 %v1286_v21, %v1286_v21 }
 0xb42   : > { %1951 = vmatmul.mubr.msk.bf16.vlgmr.msra.gmra.mxu0 %vm664_vm3, %v1287_v22 }
 0xb43   : > { %1966 = vmatprep.mubr.msk.bf16.mxu0 %vm2375_vm0, %v2374_v0  ;;  %1963 = vmatpush3.bf16.msra.mxu0 %v2102_v45 }
 0xb44   : > { %1964 = vmatprep.subr.bf16.mxu0 %v2374_v0 }
 0xc02   : > { %v1330_v11 = vpop.f32.mrf.mxu0 }
 0xc03   : > { %v1835_v25 = vpack.c.bf16 %v1330_v11, %v1330_v11 }
 0xc04   : > { %v1952_v26 = vpop.f32.mrf.mxu0 }
 0xc05   : > { %1340 = vrot.lane.b32.xlu0 %v1835_v25, %s2390_s20  ;;  %v1827_v25 = vld [vmem:[%s2870_s13] ss:$0 sm:$0xff]  ;;  %s1631_s20 = scalar_lea.sflag [#allocation5], %s2618_s7 }
 0xc06   : > { %v1333_v27 = vpop.f32.mrf.mxu0 }
 0xc07   : > { %v1828_v27 = vld [vmem:[%s2912_s14] ss:$0 sm:$0xff] }
 0xc08   : > { %v1953_v29 = vpop.f32.mrf.mxu0 }
 0xc77   : > { %v1341_v30 = vpop.permute.xlu0 %1340 }
 0xc78   : > { %1344 = vst.msk [vmem:[#allocation2] sm:$0xf] %vm1343_vm7, %v1341_v30 }
 0xc7f   : > { %v1345_v31 = vld [vmem:[#allocation2] sm:$0xf] }
 0xc80   : > { %1959 = vmatmul.mubr.msk.bf16.vlgmr.msra.gmra.mxu1 %vm616_vm1, %v1345_v31 }
 0xc81   : > { %1978 = vmatprep.mubr.msk.bf16.mxu1 %vm2375_vm0, %v2374_v0  ;;  %1971 = vmatpush3.bf16.msra.mxu1 %v2104_v56 }
 0xc82   : > { %1972 = vmatprep.subr.bf16.mxu1 %v2374_v0 }
 0xc85   : > { %1973 = vmatpush3.bf16.msra.mxu1 %v2105_v57 }
 0xc86   : > { %1974 = vmatprep.subr.bf16.mxu1 %v2374_v0 }
 0xc89   : > { %1975 = vmatpush3.bf16.msra.mxu1 %v2106_v58 }
 0xc8a   : > { %1976 = vmatprep.subr.bf16.mxu1 %v2374_v0 }
 0xc8d   : > { %1977 = vmatpush3.bf16.msra.mxu1 %v2107_v59 }
 0xd40   : > { %v1406_v33 = vpop.f32.mrf.mxu1 }
 0xd41   : > { %v1407_v34 = vadd.f32 %v1811_v32, %v1406_v33 }
 0xd42   : > { %v1960_v35 = vpop.f32.mrf.mxu1 }
 0xd43   : > { %v1412_v36 = vadd.f32 %v1407_v34, %v2655_v3  ;;  %v2103_v3 = vld [vmem:[%s2866_s9] sm:$0xff]  }
 0xd44   : > { %v1409_v37 = vpop.f32.mrf.mxu1  ;;  %1965 = vmatpush3.bf16.msra.mxu0 %v2103_v3 }
 0xd45   : > { %v1415_v38 = vsel %vm616_vm1, %v1412_v36, 0.0 }
 0xd46   : > { %1416 = vadd.xlane.f32.xlu1 %v1415_v38  ;;  %v1961_v39 = vpop.f32.mrf.mxu1 }
 0xdcf   : > { %v1417_v40 = vpop.xlane.xlu1 %1416 }
 0xdd0   : > { %v1419_v41 = vmul.f32 0.03125, %v1417_v40 }
 0xdd2   : > { %v1420_v42 = vsub.f32 %v1412_v36, %v1419_v41 }
 0xdd4   : > { %v1421_v43 = vmul.f32 %v1420_v42, %v1420_v42 }
 0xdd6   : > { %v1422_v44 = vsel %vm616_vm1, %v1421_v43, 0.0 }
 0xdd7   : > { %1423 = vadd.xlane.f32.xlu0 %v1422_v44 }
 0xe60   : > { %v1424_v46 = vpop.xlane.xlu0 %1423 }
 0xe61   : > { %v1425_v47 = vmul.f32 0.03125, %v1424_v46 }
 0xe63   : > { %v1426_v48 = vadd.f32 1e-05, %v1425_v47 }
 0xe65   : > { %2124 = vrsqrt.f32 %v1426_v48 }
 0xe72   : > { %v2125_v49 = vpop.eup %2124 }
 0xe73   : > { %v1428_v51 = vmul.f32 %v2125_v49, %v1420_v42 }
 0xe75   : > { %v1435_v53 = vmul.f32 %v1815_v50, %v1428_v51 }
 0xe77   : > { %v1442_v54 = vadd.f32 %v1816_v52, %v1435_v53 }
 0xe79   : > { %v1443_v55 = vpack.c.bf16 %v1442_v54, %v1442_v54 }
 0xe7b   : > { %1967 = vmatmul.mubr.msk.bf16.vlgmr.msra.gmra.mxu0 %vm616_vm1, %v1443_v55 }
 0xf3b   : > { %v1504_v61 = vpop.f32.mrf.mxu0 }
 0xf3c   : > { %v1505_v62 = vadd.f32 %v1817_v60, %v1504_v61 }
 0xf3d   : > { %v1968_v63 = vpop.f32.mrf.mxu0 }
 0xf3e   : > { %v1511_v1 = vmul.f32 0.70710677, %v1505_v62  ;;  %v1510_v6 = vmul.f32 0.5, %v1505_v62 }
 0xf3f   : > { %v1507_v2 = vpop.f32.mrf.mxu0 }
 0xf40   : > { %2126 = verf.f32 %v1511_v1 }
 0xf41   : > { %v1969_v4 = vpop.f32.mrf.mxu0 }
 0xf4d   : > { %v2127_v5 = vpop.eup %2126 }
 0xf4e   : > { %v1513_v7 = vadd.f32 1.0, %v2127_v5 }
 0xf50   : > { %v1514_v0 = vmul.f32 %v1513_v7, %v1510_v6 }
 0xf52   : > { %v1515_v8 = vpack.c.bf16 %v1514_v0, %v1514_v0 }
 0xf54   : > { %1979 = vmatmul.mubr.msk.bf16.vlgmr.msra.gmra.mxu1 %vm1555_vm8, %v1515_v8 }
0x1014   : > { %v1593_v10 = vpop.f32.mrf.mxu1 }
0x1015   : > { %v1594_v12 = vadd.f32 %v1821_v9, %v1593_v10 }
0x1016   : > { %v1980_v13 = vpop.f32.mrf.mxu1 }
0x1017   : > { %v1599_v14 = vadd.f32 %v1594_v12, %v1442_v54 }
0x1018   : > { %v1596_v28 = vpop.f32.mrf.mxu1 }
0x1019   : > { %v1602_v15 = vsel %vm616_vm1, %v1599_v14, 0.0 }
0x101a   : > { %1603 = vadd.xlane.f32.xlu0 %v1602_v15  ;;  %v1981_v16 = vpop.f32.mrf.mxu1 }
0x10a3   : > { %v1604_v17 = vpop.xlane.xlu0 %1603 }
0x10a4   : > { %v1605_v18 = vmul.f32 0.03125, %v1604_v17 }
0x10a6   : > { %v1606_v19 = vsub.f32 %v1599_v14, %v1605_v18 }
0x10a8   : > { %v1607_v20 = vmul.f32 %v1606_v19, %v1606_v19 }
0x10aa   : > { %v1608_v21 = vsel %vm616_vm1, %v1607_v20, 0.0 }
0x10ab   : > { %1609 = vadd.xlane.f32.xlu1 %v1608_v21 }
0x1134   : > { %v1610_v22 = vpop.xlane.xlu1 %1609 }
0x1135   : > { %v1611_v23 = vmul.f32 0.03125, %v1610_v22 }
0x1137   : > { %v1612_v24 = vadd.f32 1e-05, %v1611_v23 }
0x1139   : > { %2128 = vrsqrt.f32 %v1612_v24 }
0x1146   : > { %v2129_v11 = vpop.eup %2128 }
0x1147   : > { %v1614_v26 = vmul.f32 %v2129_v11, %v1606_v19 }
0x1149   : > { %v1621_v29 = vmul.f32 %v1827_v25, %v1614_v26 }
0x114b   : > { %v1628_v30 = vadd.f32 %v1828_v27, %v1621_v29 }
0x114d   : > { %1629 = vst.msk [vmem:[%s584_s6] sm:$0xff] %vm616_vm1, %v1628_v30 }
0x114e   : > { %2301 = shalt.err (!%p2298_p13)
}
0x114f   : > { %s2302_s30 = scalar_lea.hbm %s1642_s26, 128  ;;  %s2306_s16 = scalar_lea.hbm %s2913_s22, 256 }
0x1150   : > { %p2303_p6 = scmp.ne.s32.totalorder %s1642_s26, %s2302_s30  ;;  %p2307_p9 = scmp.lt.s32.totalorder %s1642_s26, %s2913_s22 }
0x1151   : > { %p2308_p10 = scmp.lt.s32.totalorder %s2306_s16, %s2302_s30 }
0x1152   : > { %p2304_p3 = pnand %p2303_p6, %p2914_p0 }
0x1153   : > { %p2309_p11 = por %p2308_p10, %p2307_p9 }
0x1154   : > { %p2305_p4 = pneg %p2304_p3 }
0x1156   : > { %p2310_p12 = pnand %p2309_p11, %p2305_p4 }
0x1158   : > { %2313 = shalt.err (!%p2310_p12)
}
0x1159   : > { %2004 = dma.vmem_to_hbm [thread:$0]  (%p2914_p0), %s1645_s27, 128, %s1642_s26, %s1631_s20  }
0x115a PF: > { %s1656_s6 = sand.u32 1, %s2352_s18   ;;  %p2915_p1 = scmp.ne.s32.totalorder %s2902_s29, 0 }
0x115b   : > { %p2916_p2 = scmp.ge.s32.totalorder %s2364_s21, 2  ;;  %s1657_s8 = scalar_lea.sflag [#allocation5], %s1656_s6 }
0x115d   : > { %p2027_p5 = pnand %p2916_p2, %p2915_p1 }
0x115f   : > { %p2028_p8 = pneg %p2027_p5 }
0x1161   : > { %2347 = dma.done.wait (%p2028_p8), %s1657_s8, 128  }
0x1162   : > { %2349 = vsyncadd (%p2028_p8), %s1657_s8, 4294967168  ;;  %s2917_s21 = sld [smem:[#allocation21_spill]]  ;;  %s2920_s18 = smov %s2356_s19 }
0x1163   : > { %s2918_s5 = sld [smem:[#allocation20_spill]] }
0x1164   : > { %s2919_s20 = sld [smem:[#allocation22_spill]] }
0x1168   : > { %p31_p7 = scmp.ge.s32.totalorder %s2917_s21, 4  }
0x1169   : > { %s2921_s19 = smov %s2918_s5 }
0x116a   :  { %33 = sbr.rel (!%p31_p7) target bundleno = 16 (0x10), region = 151 }
0x116f   :  { %1662 = vsyncpa [#allocation4], 1 }
0x1170   :  { %1664 = vsyncpa [#allocation4 + $0x1], 1 }
0x1171   :  { %1665 = vsyncpa [#allocation7], 1 }
0x1172   :  { %1666 = vsyncpa [#allocation10], 1 }
0x1173   :  { %1667 = vsyncpa [#allocation13], 1 }
0x1174   :  { %1668 = vsyncpa [#allocation5], 1 }
0x1175   :  { %1670 = vsyncpa [#allocation5 + $0x1], 1 }

// kernel: tpu_custom_call.1
= control target key start
LH: loop header
LB: loop body
LE: loop exit
PB: predicated region body
PF: predicated region fallthrough
CT: control target
= control target key end

     0   :  { %s2857_s0 = inlined_call_operand.vmem [shape: f32[2,8,32], index: 0, kind: input, shape index: {}]   ;;  %s2858_s1 = inlined_call_operand.hbm [shape: f32[2,1,8], index: 1, kind: input, shape index: {}]   ;;  %s2859_s2 = inlined_call_operand.vmem [shape: bf16[4,8,128], index: 2, kind: input, shape index: {}]   ;;  %s2860_s3 = inlined_call_operand.vmem [shape: bf16[32,96], index: 3, kind: input, shape index: {}]   ;;  %s2861_s4 = inlined_call_operand.hbm [shape: f32[1,96], index: 4, kind: input, shape index: {}]   ;;  %s2862_s5 = inlined_call_operand.hbm [shape: bf16[32,32], index: 5, kind: input, shape index: {}]   ;;  %s2863_s6 = inlined_call_operand.hbm [shape: f32[1,32], index: 6, kind: input, shape index: {}]   ;;  %s2864_s7 = inlined_call_operand.hbm [shape: f32[1,32], index: 7, kind: input, shape index: {}]   ;;  %s2865_s8 = inlined_call_operand.hbm [shape: f32[1,32], index: 8, kind: input, shape index: {}]   ;;  %s2866_s9 = inlined_call_operand.vmem [shape: bf16[32,64], index: 9, kind: input, shape index: {}]   ;;  %s2867_s10 = inlined_call_operand.vmem [shape: f32[1,64], index: 10, kind: input, shape index: {}]   ;;  %s2868_s11 = inlined_call_operand.vmem [shape: bf16[64,32], index: 11, kind: input, shape index: {}]   ;;  %s2869_s12 = inlined_call_operand.vmem [shape: f32[1,32], index: 12, kind: input, shape index: {}]   ;;  %s2870_s13 = inlined_call_operand.vmem [shape: f32[1,32], index: 13, kind: input, shape index: {}]   ;;  %s2871_s14 = inlined_call_operand.vmem [shape: f32[1,32], index: 14, kind: input, shape index: {}]   ;;  %s2872_s15 = inlined_call_operand.hbm [shape: f32[2,8,32], index: 15, kind: output, shape index: {}]  }
   0x1   :  { %2881 = sst [smem:[#allocation23_spill]] %s2861_s4 }
   0x2   :  { %2882 = sst [smem:[#allocation24_spill]] %s2862_s5 }
   0x3   :  { %2883 = sst [smem:[#allocation25_spill]] %s2863_s6 }
   0x4   :  { %2884 = sst [smem:[#allocation26_spill]] %s2864_s7 }
   0x5   :  { %2885 = sst [smem:[#allocation27_spill]] %s2865_s8 }
   0x6   :  { %2886 = sst [smem:[#allocation28_spill]] %s2871_s14 }
   0x7   :  { %2887 = sst [smem:[#allocation29_spill]] %s2872_s15 }
   0x8   :  { %20 = vsyncpa [#allocation4], 0 }
   0x9   :  { %22 = vsyncpa [#allocation4 + $0x1], 0 }
   0xa   :  { %23 = vsyncpa [#allocation7], 0 }
   0xb   :  { %24 = vsyncpa [#allocation10], 0 }
   0xc   :  { %25 = vsyncpa [#allocation13], 0 }
   0xd   :  { %26 = vsyncpa [#allocation5], 0 }
   0xe   :  { %28 = vsyncpa [#allocation5 + $0x1], 0  ;;  %s2472_s18 = smov 0   ;;  %s2474_s19 = smov 0  }
   0xf   :  { %s2476_s20 = smov 0   ;;  %s2478_s21 = smov 0  }
  0x10 LB: > { %2888 = sst [smem:[#allocation20_spill]] %s2360_s20  ;;  %s2366_s22 = smov [#allocation6]   ;;  %s2364_s21 = sphi %s2478_s21, %s2917_s21   ;;  %s2360_s20 = sphi %s2476_s20, %s2919_s20   ;;  %s2356_s19 = sphi %s2474_s19, %s2921_s19   ;;  %s2352_s18 = sphi %s2472_s18, %s2920_s18  }
  0x11   : > { %s409_s23 = sshll.u32 %s2366_s22, 4  ;;  %s2493_s24 = sadd.s32 4294967295, %s2364_s21   ;;  %s410_s23 = int_to_ptr.vmem [resolvable:$true] %s409_s23 }
  0x12   : > { %p1772_p0 = scmp.ge.s32.totalorder %s2364_s21, 1  ;;  %p2874_p1 = scmp.eq.s32.totalorder %s2493_s24, 0 }
  0x13   : > { %p390_p2 = scmp.lt.s32.totalorder %s2364_s21, 3  ;;  %s2367_s26 = smov [#allocation9]  }
  0x14   : > { %s433_s27 = sshll.u32 %s2367_s26, 4  ;;  %s2368_s28 = smov [#allocation8]   ;;  %s434_s27 = int_to_ptr.vmem [resolvable:$true] %s433_s27 }
  0x15   : > { %p2498_p3 = pnand %p1772_p0, %p390_p2  ;;  %s419_s29 = sshll.u32 %s2368_s28, 4  ;;  %s2511_s29 = int_to_ptr.vmem [resolvable:$true] %s419_s29 }
  0x16   : > { %s2141_s17 = scalar_lea.vmem %s410_s23, 16  ;;  %s2148_s22 = scalar_lea.vmem %s410_s23, 32 }
  0x17   : > { %s2889_s25 = scalar_select %p2498_p3, 1, 0 }
  0x18   : > { %p2006_p5 = pneg %p2498_p3  ;;  %p2142_p8 = scmp.ne.s32.totalorder %s410_s23, %s2141_s17 }
  0x19   : > { %p2149_p11 = scmp.lt.s32.totalorder %s410_s23, %s410_s23  ;;  %p2150_p12 = scmp.lt.s32.totalorder %s2148_s22, %s2141_s17 }
  0x1a   : > { %p2507_p6 = pnand %p2006_p5, %p2874_p1 }
  0x1b   : > { %p2151_p13 = por %p2150_p12, %p2149_p11 }
  0x1c   : > { %p2515_p7 = pneg %p2507_p6 }
  0x1e   : > { %p2144_p9 = pnand %p2142_p8, %p2515_p7 }
  0x20   : > { %p2145_p10 = pneg %p2144_p9 }
  0x22   : > { %p2152_p0 = pnand %p2151_p13, %p2145_p10 }
  0x24   : > { %2155 = shalt.err (!%p2152_p0)
}
  0x25   : > { %s2892_s4 = sld [smem:[#allocation23_spill]]  ;;  %s2167_s15 = scalar_lea.vmem %s434_s27, 16 }
  0x26   : > { %p2168_p2 = scmp.ne.s32.totalorder %s434_s27, %s2167_s15  ;;  %s2174_s14 = scalar_lea.vmem %s434_s27, 32 }
  0x27   : > { %p2175_p8 = scmp.lt.s32.totalorder %s434_s27, %s434_s27  ;;  %p2176_p9 = scmp.lt.s32.totalorder %s2174_s14, %s2167_s15 }
  0x28   : > { %p2170_p5 = pnand %p2168_p2, %p2515_p7 }
  0x29   : > { %p2177_p1 = por %p2176_p9, %p2175_p8 }
  0x2a   : > { %p2171_p4 = pneg %p2170_p5 }
  0x2b   : > { %2009 = dma.hbm_to_vmem [thread:$0]  (!%p2507_p6), %s2892_s4, 16, %s410_s23, [#allocation7]  }
  0x2c   : > { %p2178_p3 = pnand %p2177_p1, %p2171_p4 }
  0x2e   : > { %2181 = shalt.err (!%p2178_p3)
}
  0x2f   : > { %s2893_s6 = sld [smem:[#allocation25_spill]]  ;;  %s2193_s23 = scalar_lea.vmem %s2511_s29, 256 }
  0x30   : > { %p2194_p10 = scmp.ne.s32.totalorder %s2511_s29, %s2193_s23  ;;  %p2201_p13 = scmp.lt.s32.totalorder %s2511_s29, %s2511_s29 }
  0x31   : > { %p2202_p0 = scmp.lt.s32.totalorder %s2193_s23, %s2193_s23 }
  0x32   : > { %p2196_p11 = pnand %p2194_p10, %p2515_p7 }
  0x33   : > { %p2203_p1 = por %p2202_p0, %p2201_p13 }
  0x34   : > { %p2197_p12 = pneg %p2196_p11 }
  0x35   : > { %2015 = dma.hbm_to_vmem [thread:$0]  (!%p2507_p6), %s2893_s6, 16, %s434_s27, [#allocation10]  }
  0x36   : > { %p2204_p3 = pnand %p2203_p1, %p2197_p12 }
  0x38   : > { %2207 = shalt.err (!%p2204_p3)
}
  0x39   : > { %s2369_s14 = smov 64   ;;  %s2370_s15 = smov 4  }
  0x3a   : > { %s2894_s5 = sld [smem:[#allocation24_spill]]  ;;  %s2371_s27 = smov [#allocation11]  }
  0x3b   : > { %s444_s17 = sshll.u32 %s2371_s27, 4  ;;  %s2372_s22 = smov [#allocation12]   ;;  %s445_s17 = int_to_ptr.vmem [resolvable:$true] %s444_s17 }
  0x3c   : > { %s455_s4 = sshll.u32 %s2372_s22, 4  ;;  %s2219_s6 = scalar_lea.vmem %s445_s17, 16  ;;  %s456_s4 = int_to_ptr.vmem [resolvable:$true] %s455_s4 }
  0x3d   : > { %p2220_p4 = scmp.ne.s32.totalorder %s445_s17, %s2219_s6  ;;  %s2226_s23 = scalar_lea.vmem %s445_s17, 32 }
  0x3e   : > { %p2227_p8 = scmp.lt.s32.totalorder %s445_s17, %s445_s17  ;;  %p2228_p9 = scmp.lt.s32.totalorder %s2226_s23, %s2219_s6 }
  0x3f   : > { %p2222_p2 = pnand %p2220_p4, %p2515_p7 }
  0x40   : > { %2012 = dma.hbm_to_vmem [thread:$0]  (!%p2507_p6), %s2894_s5, 256, %s2511_s29, [#allocation7], %s2369_s14, %s2369_s14, %s2370_s15  }
  0x41   : > { %p2223_p5 = pneg %p2222_p2  ;;  %p2229_p10 = por %p2228_p9, %p2227_p8 }
  0x43   : > { %p2230_p11 = pnand %p2229_p10, %p2223_p5 }
  0x45   : > { %2233 = shalt.err (!%p2230_p11)
}
  0x46   : > { %s2895_s7 = sld [smem:[#allocation26_spill]]  ;;  %s2245_s14 = scalar_lea.vmem %s456_s4, 16 }
  0x47   : > { %p2246_p12 = scmp.ne.s32.totalorder %s456_s4, %s2245_s14  ;;  %s2252_s15 = scalar_lea.vmem %s456_s4, 32 }
  0x48   : > { %p2253_p1 = scmp.lt.s32.totalorder %s456_s4, %s456_s4  ;;  %p2254_p3 = scmp.lt.s32.totalorder %s2252_s15, %s2245_s14 }
  0x49   : > { %p2248_p13 = pnand %p2246_p12, %p2515_p7 }
  0x4a   : > { %p2255_p4 = por %p2254_p3, %p2253_p1 }
  0x4b   : > { %p2249_p0 = pneg %p2248_p13 }
  0x4c   : > { %2018 = dma.hbm_to_vmem [thread:$0]  (!%p2507_p6), %s2895_s7, 16, %s445_s17, [#allocation10]  }
  0x4d   : > { %p2256_p2 = pnand %p2255_p4, %p2249_p0 }
  0x4f   : > { %2259 = shalt.err (!%p2256_p2)
}
  0x50   : > { %s2896_s8 = sld [smem:[#allocation27_spill]]  ;;  %s1771_s16 = sadd.s32 4294967294, %s2364_s21  }
  0x51   : > { %s2561_s30 = sadd.s32 1, %s2364_s21   ;;  %s67_s27 = sadd.s32 1, %s2360_s20 }
  0x52   : > { %2897 = sst [smem:[#allocation21_spill]] %s2561_s30  ;;  %s64_s17 = ssub.s32 %s2364_s21, %s2561_s30 }
  0x53   : > { %p74_p7 = scmp.ne.s32.totalorder %s2360_s20, %s2356_s19  ;;  %p65_p5 = scmp.eq.s32.totalorder %s64_s17, 0 }
  0x54   : > { %p75_p8 = scmp.eq.s32.totalorder %s2364_s21, 0  ;;  %p80_p9 = scmp.ne.s32.totalorder %s2356_s19, %s2352_s18 }
  0x55   : > { %p377_p10 = scmp.eq.s32.totalorder %s2493_s24, 1  ;;  %p2899_p12 = scmp.eq.s32.totalorder %s2493_s24, 0 }
  0x56   : > { %2021 = dma.hbm_to_vmem [thread:$0]  (!%p2507_p6), %s2896_s8, 16, %s456_s4, [#allocation13]  }
  0x57   : > { %s2573_s22 = scalar_select %p65_p5, %s2360_s20, %s67_s27  }
  0x58   : > { %p76_p11 = por %p75_p8, %p74_p7  ;;  %p2577_p13 = por %p2899_p12, %p80_p9 }
  0x59   : > { %2898 = sst [smem:[#allocation22_spill]] %s2573_s22  ;;  %p2581_p6 = por %p377_p10, %p74_p7 }
  0x5a   : > { %s2900_s23 = scalar_select %p2577_p13, 1, 0 }
  0x5b   : > { %s2901_s4 = scalar_select %p2581_p6, 1, 0 }
  0x5c   : > { %p383_p0 = scmp.eq.s32.totalorder %s1771_s16, 1  ;;  %p2035_p1 = scmp.lt.s32.totalorder %s2364_s21, 2 }
  0x5d   : > { %s491_s26 = sand.u32 1, %s2360_s20   ;;  %s1779_s14 = sshll.u32 %s2364_s21, 4 }
  0x5e   : > { %p2587_p3 = por %p383_p0, %p80_p9  ;;  %s2595_s28 = scalar_lea.hbm %s2858_s1, %s1779_s14 }
  0x5f   : > { %s494_s27 = scalar_lea.vmem [#allocation3], %s491_s26  ;;  %p2597_p4 = pnand %p2035_p1, %p76_p11 }
  0x60   : > { %s2902_s29 = scalar_select %p2587_p3, 1, 0 }
  0x61   : > { %s501_s17 = sshll.u32 %s494_s27, 4  ;;  %s492_s5 = scalar_lea.sflag [#allocation4], %s491_s26  ;;  %s502_s17 = int_to_ptr.vmem [resolvable:$true] %s501_s17 }
  0x62   : > { %s2260_s7 = scalar_lea.hbm %s2595_s28, 16  ;;  %p2262_p7 = pneg %p2597_p4 }
  0x63   : > { %p2261_p2 = scmp.ne.s32.totalorder %s2595_s28, %s2260_s7  ;;  %s2265_s6 = scalar_lea.hbm %s2858_s1, 32 }
  0x64   : > { %p2266_p9 = scmp.lt.s32.totalorder %s2595_s28, %s2858_s1  ;;  %p2267_p10 = scmp.lt.s32.totalorder %s2265_s6, %s2260_s7 }
  0x65   : > { %p2263_p5 = pnand %p2262_p7, %p2261_p2 }
  0x66   : > { %p2268_p11 = por %p2267_p10, %p2266_p9 }
  0x67   : > { %p2264_p8 = pneg %p2263_p5 }
  0x69   : > { %p2269_p12 = pnand %p2268_p11, %p2264_p8 }
  0x6b   : > { %2272 = shalt.err (!%p2269_p12)
}
  0x6c   : > { %s2273_s27 = scalar_lea.vmem %s502_s17, 16  ;;  %s2373_s26 = smov [#allocation3]  }
  0x6d   : > { %p2274_p0 = scmp.ne.s32.totalorder %s502_s17, %s2273_s27  ;;  %s2278_s20 = sshll.u32 %s2373_s26, 4  ;;  %s2279_s20 = int_to_ptr.vmem [resolvable:$false] %s2278_s20 }
  0x6e   : > { %s2280_s30 = scalar_lea.vmem %s2279_s20, 32  ;;  %p2281_p2 = scmp.lt.s32.totalorder %s502_s17, %s2279_s20 }
  0x6f   : > { %p2276_p1 = pnand %p2274_p0, %p2262_p7  ;;  %p2282_p5 = scmp.lt.s32.totalorder %s2280_s30, %s2273_s27 }
  0x71   : > { %p2277_p3 = pneg %p2276_p1  ;;  %p2283_p6 = por %p2282_p5, %p2281_p2 }
  0x73   : > { %p2284_p13 = pnand %p2283_p6, %p2277_p3 }
  0x75   : > { %2287 = shalt.err (!%p2284_p13)
}
  0x76   : > { %2025 = dma.hbm_to_vmem [thread:$0]  (!%p2597_p4), %s2595_s28, 16, %s502_s17, %s492_s5  }
  0x77   : > { %p2904_p8 = scmp.ne.s32.totalorder %s2889_s25, 0 }
  0x78   : > { %s2618_s7 = sand.u32 (!%p2904_p8), 1, %s2356_s19   ;;  %p2905_p7 = scmp.ne.s32.totalorder (!%p2904_p8), %s2900_s23, 0 }
  0x79   : > { %510 = sbr.rel (%p2904_p8) target bundleno = 4442 (0x115a), region = 80  ;;  %s513_s8 = scalar_lea.sflag (!%p2904_p8), [#allocation4], %s2618_s7 }
  0x7a   : > { %s515_s22 = scalar_lea.vmem (!%p2904_p8), [#allocation3], %s2618_s7 }
  0x7e   : > { %2331 = dma.done.wait (%p2905_p7), %s513_s8, 16  }
  0x7f   : > { %2333 = vsyncadd (%p2905_p7), %s513_s8, 4294967280  ;;  %p2906_p13 = scmp.eq.s32.totalorder %s2493_s24, 0 }
  0x81   : > { %2335 = dma.done.wait (%p2906_p13), [#allocation7], 272   ;;  %p2907_p6 = pmov %p2906_p13 }
  0x83   : > { %2337 = vsyncadd (%p2907_p6), [#allocation7], 4294967024  ;;  %p2908_p3 = pmov %p2907_p6 }
  0x85   : > { %2339 = dma.done.wait (%p2908_p3), [#allocation10], 32   ;;  %p2909_p4 = pmov %p2908_p3 }
  0x86   : > { %p2910_p9 = pmov %p2908_p3 }
  0x87   : > { %2341 = vsyncadd (%p2909_p4), [#allocation10], 4294967264 }
  0x88   : > { %2343 = dma.done.wait (%p2910_p9), [#allocation13], 16   ;;  %p2911_p10 = pmov %p2908_p3 }
  0x89   : > { %p585_p11 = scmp.lt.s32.totalorder %s2493_s24, 1  ;;  %v2374_v0 = vmov 0.0   ;;  %vm2375_vm0 = vmmov 0   ;;  %v2098_v1 = vld [vmem:[%s2860_s3 + $0x8] sm:$0xff]   ;;  %v2099_v2 = vld [vmem:[%s2860_s3] sm:$0xff]   ;;  %vm616_vm1 = vcmask 261120  }
  0x8a   : > { %2345 = vsyncadd (%p2911_p10), [#allocation13], 4294967280  ;;  %1874 = vmatprep.subr.bf16.mxu0 %v2374_v0  ;;  %1878 = vmatprep.mubr.msk.bf16.mxu0 %vm2375_vm0, %v2374_v0  ;;  %v712_v5 = vld [vmem:[%s2859_s2] sm:$0xf]  ;;  %vm713_vm2 = vcmask 1043456   ;;  %vm664_vm3 = vcmask 64512  }
  0x8b   : > { %s586_s5 = scalar_select %p585_p11, %s2493_s24, 1  ;;  %1882 = vmatprep.subr.bf16.mxu1 %v2374_v0  ;;  %1884 = vmatprep.mubr.msk.bf16.mxu1 %vm2375_vm0, %v2374_v0  ;;  %v715_v6 = vsel %vm713_vm2, %v712_v5, 0  ;;  %v1788_v7 = vld [vmem:[#allocation6] ss:$0 sm:$0xff]  ;;  %v2690_v28 = vld [vmem:[%s515_s22] ss:$0 sm:$0xff] }
  0x8c   : > { %1875 = vmatpush3.bf16.msra.mxu0 %v2098_v1  ;;  %s2376_s27 = smov 96   ;;  %s2377_s26 = smov 377   ;;  %v1797_v42 = vld [vmem:[%s2859_s2 + $0x4] sm:$0xf]  ;;  %vm830_vm4 = vcmask 60416   ;;  %vm1001_vm5 = vcmask 126016  }
  0x8d   : > { %s1787_s20 = sshll.u32 %s586_s5, 3  ;;  %1876 = vmatprep.subr.bf16.mxu0 %v2374_v0  ;;  %s2378_s8 = smov 64   ;;  %v886_v45 = vsel %vm713_vm2, %v1797_v42, 0  ;;  %vm1172_vm6 = vcmask 191616   ;;  %vm1343_vm7 = vcmask 257216   ;;  %vm1555_vm8 = vcmask 523264  }
  0x8e   : > { %s588_s23 = scalar_lea.vmem %s2857_s0, %s1787_s20  ;;  %s2379_s5 = smov 88  }
  0x8f   : > { %v2655_v3 = vld [vmem:[%s588_s23] sm:$0xff]  ;;  %s2380_s22 = smov 120   ;;  %s2381_s30 = smov 56  }
  0x90   : > { %v591_v4 = vpack.c.bf16 %v2655_v3, %v2655_v3  ;;  %1877 = vmatpush3.bf16.msra.mxu0 %v2099_v2  ;;  %s2382_s23 = smov 80   ;;  %s2383_s28 = smov 112  }
  0x91   : > { %1888 = vmatprep.subr.bf16.mxu0 %v2374_v0  ;;  %s2384_s14 = smov 104   ;;  %s2385_s15 = smov 72  }
  0x92   : > { %s2386_s6 = smov 48   ;;  %s2390_s20 = smov 24  }
  0x93   : > { %1879 = vmatmul.mubr.msk.bf16.vlgmr.msra.gmra.mxu0 %vm616_vm1, %v591_v4  ;;  %p2914_p0 = scmp.ne.s32.totalorder %s2901_s4, 0 }
  0x94   : > { %1890 = vmatprep.mubr.msk.bf16.mxu0 %vm2375_vm0, %v2374_v0  ;;  %1889 = vmatpush3.bf16.msra.mxu0 %v715_v6 }
  0x95   : > { %1900 = vmatprep.subr.bf16.mxu0 %v2374_v0 }
 0x153   : > { %v654_v8 = vpop.f32.mrf.mxu0 }
 0x154   : > { %v655_v9 = vadd.f32 %v1788_v7, %v654_v8 }
 0x155   : > { %v1880_v10 = vpop.f32.mrf.mxu0 }
 0x156   : > { %v2669_v11 = vpack.c.bf16 %v655_v9, %v655_v9 }
 0x157   : > { %v657_v12 = vpop.f32.mrf.mxu0 }
 0x158   : > { %662 = vrot.lane.b32.xlu0 %v2669_v11, %s2376_s27  ;;  %1891 = vmatmul.mubr.msk.bf16.vlgmr.msra.gmra.mxu0 %vm664_vm3, %v2669_v11 }
 0x159   : > { %v1881_v13 = vpop.f32.mrf.mxu0  ;;  %1902 = vmatprep.mubr.msk.bf16.mxu0 %vm2375_vm0, %v2374_v0 }
 0x1ca   : > { %v663_v14 = vpop.permute.xlu0 %662 }
 0x1cb   : > { %v669_v15 = vsel %vm664_vm3, %v663_v14, 0 }
 0x1cc   : > { %1883 = vmatpush3.bf16.xpose.msra.mxu1 %v669_v15  ;;  %v1802_v15 = vld [vmem:[%s2859_s2 + $0x8] sm:$0xf] }
 0x1cd   : > { %1894 = vmatprep.subr.bf16.mxu1 %v2374_v0 }
 0x1d3   : > { %1885 = vmatmul.mubr.msk.bf16.vlgmr.msra.gmra.mxu1 %vm664_vm3, %v2669_v11 }
 0x1d4   : > { %1896 = vmatprep.mubr.msk.bf16.mxu1 %vm2375_vm0, %v2374_v0 }
 0x218   : > { %v751_v16 = vpop.f32.mrf.mxu0 }
 0x219   : > { %759 = vrot.lane.b32.xlu0 %v751_v16, %s2377_s26 }
 0x21a   : > { %v1892_v17 = vpop.f32.mrf.mxu0 }
 0x21c   : > { %v754_v18 = vpop.f32.mrf.mxu0 }
 0x21d   : > { %781 = vrot.lane.b32.xlu0 %v2669_v11, %s2378_s8  ;;  %v1057_v18 = vsel %vm713_vm2, %v1802_v15, 0 }
 0x21e   : > { %v1893_v19 = vpop.f32.mrf.mxu0 }
 0x221   : > { %834 = vrot.lane.b32.xlu0 %v2669_v11, %s2379_s5  ;;  %s2387_s5 = smov 8  }
 0x28b   : > { %v760_v20 = vpop.permute.xlu0 %759 }
 0x28f   : > { %v782_v21 = vpop.permute.xlu0 %781 }
 0x290   : > { %v787_v22 = vsel %vm713_vm2, %v782_v21, 0 }
 0x291   : > { %1895 = vmatpush3.bf16.msra.mxu1 %v787_v22 }
 0x292   : > { %1906 = vmatprep.subr.bf16.mxu1 %v2374_v0 }
 0x293   : > { %v705_v23 = vpop.f32.mrf.mxu1  ;;  %v835_v24 = vpop.permute.xlu0 %834 }
 0x294   : > { %v711_v25 = vmul.f32 0.35355338, %v705_v23  ;;  %v840_v26 = vsel %vm664_vm3, %v835_v24, 0 }
 0x295   : > { %v1886_v27 = vpop.f32.mrf.mxu1  ;;  %1901 = vmatpush3.bf16.xpose.msra.mxu0 %v840_v26 }
 0x296   : > { %v761_v29 = vadd.f32 %v760_v20, %v711_v25  ;;  %1912 = vmatprep.subr.bf16.mxu0 %v2374_v0 }
 0x297   : > { %v708_v30 = vpop.f32.mrf.mxu1 }
 0x298   : > { %v768_v31 = vadd.f32 %v2690_v28, %v761_v29 }
 0x299   : > { %v1887_v32 = vpop.f32.mrf.mxu1 }
 0x29a   : > { %v769_v33 = vsel %vm664_vm3, %v768_v31, -inf }
 0x29b   : > { %770 = vmax.xlane.f32.xlu1 %v769_v33 }
 0x324   : > { %v771_v34 = vpop.xlane.xlu1 %770 }
 0x325   : > { %v772_v35 = vsub.f32 %v768_v31, %v771_v34 }
 0x327   : > { %v773_v36 = vmul.f32 1.442695, %v772_v35 }
 0x329   : > { %2108 = vpow2.f32 %v773_v36 }
 0x336   : > { %v2109_v37 = vpop.eup %2108 }
 0x337   : > { %v775_v38 = vsel %vm664_vm3, %v2109_v37, 0.0 }
 0x338   : > { %776 = vadd.xlane.f32.xlu1 %v775_v38 }
 0x349   : > { %832 = vrot.lane.b32.xlu1 %v2669_v11, %s2380_s22  ;;  %s2388_s22 = smov 16  }
 0x3c1   : > { %v777_v39 = vpop.xlane.xlu1 %776 }
 0x3c2   : > { %2110 = vrcp.f32 %v777_v39 }
 0x3c5   : > { %v833_v40 = vpop.permute.xlu1 %832 }
 0x3c6   : > { %1903 = vmatmul.mubr.msk.bf16.vlgmr.msra.gmra.mxu0 %vm664_vm3, %v833_v40 }
 0x3c7   : > { %1914 = vmatprep.mubr.msk.bf16.mxu0 %vm2375_vm0, %v2374_v0 }
 0x3cf   : > { %v2111_v41 = vpop.eup %2110 }
 0x3d0   : > { %v779_v43 = vmul.f32 %v2111_v41, %v2109_v37 }
 0x3d2   : > { %v780_v44 = vpack.c.bf16 %v779_v43, %v779_v43 }
 0x3d4   : > { %1897 = vmatmul.mubr.msk.bf16.vlgmr.msra.gmra.mxu1 %vm664_vm3, %v780_v44 }
 0x3d5   : > { %1907 = vmatpush3.bf16.msra.mxu1 %v886_v45  ;;  %1908 = vmatprep.mubr.msk.bf16.mxu1 %vm2375_vm0, %v2374_v0 }
 0x3d6   : > { %1918 = vmatprep.subr.bf16.mxu1 %v2374_v0 }
 0x3dc   : > { %1909 = vmatmul.mubr.msk.bf16.vlgmr.msra.gmra.mxu1 %vm664_vm3, %v833_v40 }
 0x3dd   : > { %1920 = vmatprep.mubr.msk.bf16.mxu1 %vm2375_vm0, %v2374_v0 }
 0x486   : > { %v876_v46 = vpop.f32.mrf.mxu0 }
 0x487   : > { %v882_v59 = vmul.f32 0.35355338, %v876_v46 }
 0x488   : > { %v1904_v47 = vpop.f32.mrf.mxu0 }
 0x48a   : > { %v879_v48 = vpop.f32.mrf.mxu0 }
 0x48c   : > { %v1905_v49 = vpop.f32.mrf.mxu0 }
 0x48d   : > { %v1807_v49 = vld [vmem:[%s2859_s2 + $0xc] sm:$0xf] }
 0x494   : > { %v823_v50 = vpop.f32.mrf.mxu1 }
 0x495   : > { %v829_v51 = vpack.c.bf16 %v823_v50, %v823_v50 }
 0x496   : > { %v1898_v52 = vpop.f32.mrf.mxu1 }
 0x497   : > { %831 = vst.msk [vmem:[#allocation2] sm:$0xf] %vm830_vm4, %v829_v51  ;;  %v1228_v52 = vsel %vm713_vm2, %v1807_v49, 0 }
 0x498   : > { %v826_v53 = vpop.f32.mrf.mxu1 }
 0x49a   : > { %v1899_v54 = vpop.f32.mrf.mxu1 }
 0x49c   : > { %v922_v55 = vpop.f32.mrf.mxu1 }
 0x49d   : > { %930 = vrot.lane.b32.xlu0 %v922_v55, %s2377_s26 }
 0x49e   : > { %v1910_v56 = vpop.f32.mrf.mxu1 }
 0x4a0   : > { %v925_v57 = vpop.f32.mrf.mxu1 }
 0x4a2   : > { %v1911_v58 = vpop.f32.mrf.mxu1 }
 0x50f   : > { %v931_v60 = vpop.permute.xlu0 %930 }
 0x510   : > { %v932_v61 = vadd.f32 %v931_v60, %v882_v59 }
 0x512   : > { %v933_v62 = vadd.f32 %v2690_v28, %v932_v61 }
 0x514   : > { %v934_v63 = vsel %vm664_vm3, %v933_v62, -inf }
 0x515   : > { %935 = vmax.xlane.f32.xlu0 %v934_v63 }
 0x52b   : > { %946 = vrot.lane.b32.xlu0 %v2669_v11, %s2381_s30  ;;  %s1786_s30 = sshll.u32 %s2618_s7, 3 }
 0x52f   : > { %1005 = vrot.lane.b32.xlu0 %v2669_v11, %s2382_s23  ;;  %s2391_s23 = smov [#allocation14]  }
 0x59e   : > { %v936_v1 = vpop.xlane.xlu0 %935 }
 0x59f   : > { %v937_v2 = vsub.f32 %v933_v62, %v936_v1 }
 0x5a1   : > { %v938_v4 = vmul.f32 1.442695, %v937_v2 }
 0x5a2   : > { %v947_v5 = vpop.permute.xlu0 %946 }
 0x5a3   : > { %2112 = vpow2.f32 %v938_v4  ;;  %v952_v6 = vsel %vm713_vm2, %v947_v5, 0 }
 0x5a4   : > { %1913 = vmatpush3.bf16.msra.mxu0 %v952_v6 }
 0x5a5   : > { %1924 = vmatprep.subr.bf16.mxu0 %v2374_v0 }
 0x5a6   : > { %v1006_v7 = vpop.permute.xlu0 %1005 }
 0x5a7   : > { %v1011_v8 = vsel %vm664_vm3, %v1006_v7, 0 }
 0x5a8   : > { %1919 = vmatpush3.bf16.xpose.msra.mxu1 %v1011_v8 }
 0x5a9   : > { %1930 = vmatprep.subr.bf16.mxu1 %v2374_v0 }
 0x5b0   : > { %v2113_v9 = vpop.eup %2112 }
 0x5b1   : > { %v940_v10 = vsel %vm664_vm3, %v2113_v9, 0.0 }
 0x5b2   : > { %941 = vadd.xlane.f32.xlu1 %v940_v10 }
 0x5c3   : > { %1003 = vrot.lane.b32.xlu1 %v2669_v11, %s2383_s28  ;;  %s2292_s28 = sshll.u32 %s2391_s23, 4  ;;  %s2293_s28 = int_to_ptr.vmem [resolvable:$false] %s2292_s28 }
 0x63b   : > { %v942_v12 = vpop.xlane.xlu1 %941 }
 0x63c   : > { %2114 = vrcp.f32 %v942_v12 }
 0x63f   : > { %v1004_v13 = vpop.permute.xlu1 %1003 }
 0x640   : > { %1921 = vmatmul.mubr.msk.bf16.vlgmr.msra.gmra.mxu1 %vm664_vm3, %v1004_v13 }
 0x641   : > { %1932 = vmatprep.mubr.msk.bf16.mxu1 %vm2375_vm0, %v2374_v0 }
 0x649   : > { %v2115_v14 = vpop.eup %2114 }
 0x64a   : > { %v944_v16 = vmul.f32 %v2115_v14, %v2113_v9 }
 0x64c   : > { %v945_v17 = vpack.c.bf16 %v944_v16, %v944_v16 }
 0x64e   : > { %1915 = vmatmul.mubr.msk.bf16.vlgmr.msra.gmra.mxu0 %vm664_vm3, %v945_v17 }
 0x64f   : > { %1925 = vmatpush3.bf16.msra.mxu0 %v1057_v18  ;;  %1926 = vmatprep.mubr.msk.bf16.mxu0 %vm2375_vm0, %v2374_v0 }
 0x650   : > { %1936 = vmatprep.subr.bf16.mxu0 %v2374_v0 }
 0x656   : > { %1927 = vmatmul.mubr.msk.bf16.vlgmr.msra.gmra.mxu0 %vm664_vm3, %v1004_v13 }
 0x657   : > { %1938 = vmatprep.mubr.msk.bf16.mxu0 %vm2375_vm0, %v2374_v0 }
 0x700   : > { %v1047_v19 = vpop.f32.mrf.mxu1 }
 0x701   : > { %v1053_v32 = vmul.f32 0.35355338, %v1047_v19 }
 0x702   : > { %v1922_v20 = vpop.f32.mrf.mxu1 }
 0x704   : > { %v1050_v21 = vpop.f32.mrf.mxu1 }
 0x706   : > { %v1923_v22 = vpop.f32.mrf.mxu1 }
 0x70e   : > { %v2736_v23 = vpop.f32.mrf.mxu0 }
 0x70f   : > { %v1833_v8 = vpack.c.bf16 %v2736_v23, %v2736_v23  ;;  %v2100_v23 = vld [vmem:[#allocation8 + $0x8] sm:$0xff]  }
 0x710   : > { %v1916_v24 = vpop.f32.mrf.mxu0 }
 0x711   : > { %v2101_v24 = vld [vmem:[#allocation8] sm:$0xff]  }
 0x712   : > { %v991_v25 = vpop.f32.mrf.mxu0 }
 0x714   : > { %v1917_v26 = vpop.f32.mrf.mxu0 }
 0x716   : > { %v1093_v27 = vpop.f32.mrf.mxu0 }
 0x717   : > { %1101 = vrot.lane.b32.xlu0 %v1093_v27, %s2377_s26 }
 0x718   : > { %v1928_v29 = vpop.f32.mrf.mxu0 }
 0x71a   : > { %v1096_v30 = vpop.f32.mrf.mxu0 }
 0x71c   : > { %v1929_v31 = vpop.f32.mrf.mxu0 }
 0x789   : > { %v1102_v33 = vpop.permute.xlu0 %1101 }
 0x78a   : > { %v1103_v34 = vadd.f32 %v1102_v33, %v1053_v32  ;;  %v1811_v32 = vld [vmem:[#allocation9] ss:$0 sm:$0xff] }
 0x78c   : > { %v1104_v35 = vadd.f32 %v2690_v28, %v1103_v34 }
 0x78e   : > { %v1105_v36 = vsel %vm664_vm3, %v1104_v35, -inf }
 0x78f   : > { %1106 = vmax.xlane.f32.xlu1 %v1105_v36 }
 0x7a0   : > { %1174 = vrot.lane.b32.xlu1 %v2669_v11, %s2384_s14  ;;  %s2912_s14 = sld [smem:[#allocation28_spill]] }
 0x7a4   : > { %1176 = vrot.lane.b32.xlu1 %v2669_v11, %s2385_s15  ;;  %s1830_s15 = sshll.u32 %s2493_s24, 7  ;;  %s2294_s24 = scalar_lea.vmem %s2293_s28, 256 }
 0x818   : > { %v1107_v37 = vpop.xlane.xlu1 %1106 }
 0x819   : > { %v1108_v38 = vsub.f32 %v1104_v35, %v1107_v37 }
 0x81b   : > { %v1109_v39 = vmul.f32 1.442695, %v1108_v38 }
 0x81c   : > { %v1175_v40 = vpop.permute.xlu1 %1174 }
 0x81d   : > { %2116 = vpow2.f32 %v1109_v39 }
 0x820   : > { %v1177_v41 = vpop.permute.xlu1 %1176 }
 0x821   : > { %v1182_v42 = vsel %vm664_vm3, %v1177_v41, 0 }
 0x822   : > { %1937 = vmatpush3.bf16.xpose.msra.mxu0 %v1182_v42 }
 0x823   : > { %1948 = vmatprep.subr.bf16.mxu0 %v2374_v0 }
 0x829   : > { %1939 = vmatmul.mubr.msk.bf16.vlgmr.msra.gmra.mxu0 %vm664_vm3, %v1175_v40 }
 0x82a   : > { %v2117_v43 = vpop.eup %2116  ;;  %1950 = vmatprep.mubr.msk.bf16.mxu0 %vm2375_vm0, %v2374_v0 }
 0x82b   : > { %v1111_v44 = vsel %vm664_vm3, %v2117_v43, 0.0 }
 0x82c   : > { %1112 = vadd.xlane.f32.xlu0 %v1111_v44 }
 0x842   : > { %1117 = vrot.lane.b32.xlu0 %v2669_v11, %s2386_s6  ;;  %s584_s6 = scalar_lea.vmem [#allocation14], %s1786_s30 }
 0x843   : > { %s1644_s27 = sshll.u32 %s584_s6, 4  ;;  %s1645_s27 = int_to_ptr.vmem [resolvable:$true] %s1644_s27 }
 0x844   : > { %s2288_s25 = scalar_lea.vmem %s1645_s27, 128  ;;  %p2295_p5 = scmp.lt.s32.totalorder %s1645_s27, %s2293_s28 }
 0x845   : > { %p2289_p12 = scmp.ne.s32.totalorder %s1645_s27, %s2288_s25  ;;  %p2296_p8 = scmp.lt.s32.totalorder %s2294_s24, %s2288_s25 }
 0x847   : > { %p2290_p1 = pnand %p2289_p12, %p2914_p0  ;;  %p2297_p7 = por %p2296_p8, %p2295_p5 }
 0x849   : > { %p2291_p2 = pneg %p2290_p1 }
 0x84b   : > { %p2298_p13 = pnand %p2297_p7, %p2291_p2 }
 0x8b5   : > { %v1113_v45 = vpop.xlane.xlu0 %1112 }
 0x8b6   : > { %2118 = vrcp.f32 %v1113_v45  ;;  %v2102_v45 = vld [vmem:[%s2866_s9 + $0x8] sm:$0xff]  }
 0x8b9   : > { %v1118_v46 = vpop.permute.xlu0 %1117 }
 0x8ba   : > { %v1123_v47 = vsel %vm713_vm2, %v1118_v46, 0 }
 0x8bb   : > { %1931 = vmatpush3.bf16.msra.mxu1 %v1123_v47 }
 0x8bc   : > { %1942 = vmatprep.subr.bf16.mxu1 %v2374_v0 }
 0x8c3   : > { %v2119_v48 = vpop.eup %2118 }
 0x8c4   : > { %v1115_v50 = vmul.f32 %v2119_v48, %v2117_v43 }
 0x8c6   : > { %v1116_v51 = vpack.c.bf16 %v1115_v50, %v1115_v50  ;;  %v1815_v50 = vld [vmem:[#allocation11] ss:$0 sm:$0xff] }
 0x8c8   : > { %1933 = vmatmul.mubr.msk.bf16.vlgmr.msra.gmra.mxu1 %vm664_vm3, %v1116_v51 }
 0x8c9   : > { %1943 = vmatpush3.bf16.msra.mxu1 %v1228_v52  ;;  %1944 = vmatprep.mubr.msk.bf16.mxu1 %vm2375_vm0, %v2374_v0  ;;  %v1816_v52 = vld [vmem:[#allocation12] ss:$0 sm:$0xff] }
 0x8ca   : > { %1954 = vmatprep.subr.bf16.mxu1 %v2374_v0 }
 0x8d0   : > { %1945 = vmatmul.mubr.msk.bf16.vlgmr.msra.gmra.mxu1 %vm664_vm3, %v1175_v40 }
 0x8d1   : > { %1958 = vmatprep.mubr.msk.bf16.mxu1 %vm2375_vm0, %v2374_v0  ;;  %1955 = vmatpush3.bf16.msra.mxu1 %v2100_v23 }
 0x8d2   : > { %1956 = vmatprep.subr.bf16.mxu1 %v2374_v0 }
 0x8d5   : > { %1957 = vmatpush3.bf16.msra.mxu1 %v2101_v24 }
 0x8d6   : > { %1970 = vmatprep.subr.bf16.mxu1 %v2374_v0 }
 0x8e9   : > { %v1218_v53 = vpop.f32.mrf.mxu0 }
 0x8ea   : > { %v1224_v2 = vmul.f32 0.35355338, %v1218_v53 }
 0x8eb   : > { %v1940_v54 = vpop.f32.mrf.mxu0 }
 0x8ed   : > { %v1221_v55 = vpop.f32.mrf.mxu0 }
 0x8ef   : > { %v1941_v56 = vpop.f32.mrf.mxu0 }
 0x8f0   : > { %v2104_v56 = vld [vmem:[%s2868_s11 + $0x18] sm:$0xff]  }
 0x988   : > { %v1159_v57 = vpop.f32.mrf.mxu1 }
 0x989   : > { %v1834_v9 = vpack.c.bf16 %v1159_v57, %v1159_v57  ;;  %v2105_v57 = vld [vmem:[%s2868_s11 + $0x10] sm:$0xff]  }
 0x98a   : > { %v1934_v58 = vpop.f32.mrf.mxu1 }
 0x98b   : > { %v2106_v58 = vld [vmem:[%s2868_s11 + $0x8] sm:$0xff]  }
 0x98c   : > { %v1162_v59 = vpop.f32.mrf.mxu1 }
 0x98d   : > { %v2107_v59 = vld [vmem:[%s2868_s11] sm:$0xff]  }
 0x98e   : > { %v1935_v60 = vpop.f32.mrf.mxu1 }
 0x98f   : > { %v1817_v60 = vld [vmem:[%s2867_s10] ss:$0 sm:$0xff] }
 0x990   : > { %v1264_v61 = vpop.f32.mrf.mxu1 }
 0x991   : > { %1272 = vrot.lane.b32.xlu0 %v1264_v61, %s2377_s26  ;;  %s2389_s26 = smov 40  }
 0x992   : > { %v1946_v62 = vpop.f32.mrf.mxu1 }
 0x994   : > { %v1267_v63 = vpop.f32.mrf.mxu1 }
 0x996   : > { %v1947_v1 = vpop.f32.mrf.mxu1 }
 0xa03   : > { %v1273_v4 = vpop.permute.xlu0 %1272 }
 0xa04   : > { %v1274_v5 = vadd.f32 %v1273_v4, %v1224_v2 }
 0xa06   : > { %v1275_v6 = vadd.f32 %v2690_v28, %v1274_v5 }
 0xa08   : > { %v1276_v7 = vsel %vm664_vm3, %v1275_v6, -inf }
 0xa09   : > { %1277 = vmax.xlane.f32.xlu1 %v1276_v7 }
 0xa1a   : > { %998 = vrot.lane.b32.xlu1 %v1833_v8, %s2387_s5 }
 0xa1e   : > { %1169 = vrot.lane.b32.xlu1 %v1834_v9, %s2388_s22  ;;  %v1821_v9 = vld [vmem:[%s2869_s12] ss:$0 sm:$0xff]  ;;  %s2913_s22 = sld [smem:[#allocation29_spill]] }
 0xa92   : > { %v1278_v10 = vpop.xlane.xlu1 %1277 }
 0xa93   : > { %v1279_v12 = vsub.f32 %v1275_v6, %v1278_v10 }
 0xa95   : > { %v1280_v13 = vmul.f32 1.442695, %v1279_v12 }
 0xa96   : > { %v999_v14 = vpop.permute.xlu1 %998 }
 0xa97   : > { %2120 = vpow2.f32 %v1280_v13  ;;  %1002 = vst.msk [vmem:[#allocation2] sm:$0xf] %vm1001_vm5, %v999_v14 }
 0xa9a   : > { %v1170_v28 = vpop.permute.xlu1 %1169 }
 0xa9b   : > { %1173 = vst.msk [vmem:[#allocation2] sm:$0xf] %vm1172_vm6, %v1170_v28 }
 0xaa4   : > { %v2121_v15 = vpop.eup %2120 }
 0xaa5   : > { %v1282_v16 = vsel %vm664_vm3, %v2121_v15, 0.0 }
 0xaa6   : > { %1283 = vadd.xlane.f32.xlu0 %v1282_v16 }
 0xabc   : > { %1288 = vrot.lane.b32.xlu0 %v2669_v11, %s2389_s26  ;;  %s1642_s26 = scalar_lea.hbm %s2913_s22, %s1830_s15 }
 0xb2f   : > { %v1284_v17 = vpop.xlane.xlu0 %1283 }
 0xb30   : > { %2122 = vrcp.f32 %v1284_v17 }
 0xb33   : > { %v1289_v18 = vpop.permute.xlu0 %1288 }
 0xb34   : > { %v1294_v19 = vsel %vm713_vm2, %v1289_v18, 0 }
 0xb35   : > { %1949 = vmatpush3.bf16.msra.mxu0 %v1294_v19 }
 0xb36   : > { %1962 = vmatprep.subr.bf16.mxu0 %v2374_v0 }
 0xb3d   : > { %v2123_v20 = vpop.eup %2122 }
 0xb3e   : > { %v1286_v21 = vmul.f32 %v2123_v20, %v2121_v15 }
 0xb40   : > { %v1287_v22 = vpack.c.bf16 %v1286_v21, %v1286_v21 }
 0xb42   : > { %1951 = vmatmul.mubr.msk.bf16.vlgmr.msra.gmra.mxu0 %vm664_vm3, %v1287_v22 }
 0xb43   : > { %1966 = vmatprep.mubr.msk.bf16.mxu0 %vm2375_vm0, %v2374_v0  ;;  %1963 = vmatpush3.bf16.msra.mxu0 %v2102_v45 }
 0xb44   : > { %1964 = vmatprep.subr.bf16.mxu0 %v2374_v0 }
 0xc02   : > { %v1330_v11 = vpop.f32.mrf.mxu0 }
 0xc03   : > { %v1835_v25 = vpack.c.bf16 %v1330_v11, %v1330_v11 }
 0xc04   : > { %v1952_v26 = vpop.f32.mrf.mxu0 }
 0xc05   : > { %1340 = vrot.lane.b32.xlu0 %v1835_v25, %s2390_s20  ;;  %v1827_v25 = vld [vmem:[%s2870_s13] ss:$0 sm:$0xff]  ;;  %s1631_s20 = scalar_lea.sflag [#allocation5], %s2618_s7 }
 0xc06   : > { %v1333_v27 = vpop.f32.mrf.mxu0 }
 0xc07   : > { %v1828_v27 = vld [vmem:[%s2912_s14] ss:$0 sm:$0xff] }
 0xc08   : > { %v1953_v29 = vpop.f32.mrf.mxu0 }
 0xc77   : > { %v1341_v30 = vpop.permute.xlu0 %1340 }
 0xc78   : > { %1344 = vst.msk [vmem:[#allocation2] sm:$0xf] %vm1343_vm7, %v1341_v30 }
 0xc7f   : > { %v1345_v31 = vld [vmem:[#allocation2] sm:$0xf] }
 0xc80   : > { %1959 = vmatmul.mubr.msk.bf16.vlgmr.msra.gmra.mxu1 %vm616_vm1, %v1345_v31 }
 0xc81   : > { %1978 = vmatprep.mubr.msk.bf16.mxu1 %vm2375_vm0, %v2374_v0  ;;  %1971 = vmatpush3.bf16.msra.mxu1 %v2104_v56 }
 0xc82   : > { %1972 = vmatprep.subr.bf16.mxu1 %v2374_v0 }
 0xc85   : > { %1973 = vmatpush3.bf16.msra.mxu1 %v2105_v57 }
 0xc86   : > { %1974 = vmatprep.subr.bf16.mxu1 %v2374_v0 }
 0xc89   : > { %1975 = vmatpush3.bf16.msra.mxu1 %v2106_v58 }
 0xc8a   : > { %1976 = vmatprep.subr.bf16.mxu1 %v2374_v0 }
 0xc8d   : > { %1977 = vmatpush3.bf16.msra.mxu1 %v2107_v59 }
 0xd40   : > { %v1406_v33 = vpop.f32.mrf.mxu1 }
 0xd41   : > { %v1407_v34 = vadd.f32 %v1811_v32, %v1406_v33 }
 0xd42   : > { %v1960_v35 = vpop.f32.mrf.mxu1 }
 0xd43   : > { %v1412_v36 = vadd.f32 %v1407_v34, %v2655_v3  ;;  %v2103_v3 = vld [vmem:[%s2866_s9] sm:$0xff]  }
 0xd44   : > { %v1409_v37 = vpop.f32.mrf.mxu1  ;;  %1965 = vmatpush3.bf16.msra.mxu0 %v2103_v3 }
 0xd45   : > { %v1415_v38 = vsel %vm616_vm1, %v1412_v36, 0.0 }
 0xd46   : > { %1416 = vadd.xlane.f32.xlu1 %v1415_v38  ;;  %v1961_v39 = vpop.f32.mrf.mxu1 }
 0xdcf   : > { %v1417_v40 = vpop.xlane.xlu1 %1416 }
 0xdd0   : > { %v1419_v41 = vmul.f32 0.03125, %v1417_v40 }
 0xdd2   : > { %v1420_v42 = vsub.f32 %v1412_v36, %v1419_v41 }
 0xdd4   : > { %v1421_v43 = vmul.f32 %v1420_v42, %v1420_v42 }
 0xdd6   : > { %v1422_v44 = vsel %vm616_vm1, %v1421_v43, 0.0 }
 0xdd7   : > { %1423 = vadd.xlane.f32.xlu0 %v1422_v44 }
 0xe60   : > { %v1424_v46 = vpop.xlane.xlu0 %1423 }
 0xe61   : > { %v1425_v47 = vmul.f32 0.03125, %v1424_v46 }
 0xe63   : > { %v1426_v48 = vadd.f32 1e-05, %v1425_v47 }
 0xe65   : > { %2124 = vrsqrt.f32 %v1426_v48 }
 0xe72   : > { %v2125_v49 = vpop.eup %2124 }
 0xe73   : > { %v1428_v51 = vmul.f32 %v2125_v49, %v1420_v42 }
 0xe75   : > { %v1435_v53 = vmul.f32 %v1815_v50, %v1428_v51 }
 0xe77   : > { %v1442_v54 = vadd.f32 %v1816_v52, %v1435_v53 }
 0xe79   : > { %v1443_v55 = vpack.c.bf16 %v1442_v54, %v1442_v54 }
 0xe7b   : > { %1967 = vmatmul.mubr.msk.bf16.vlgmr.msra.gmra.mxu0 %vm616_vm1, %v1443_v55 }
 0xf3b   : > { %v1504_v61 = vpop.f32.mrf.mxu0 }
 0xf3c   : > { %v1505_v62 = vadd.f32 %v1817_v60, %v1504_v61 }
 0xf3d   : > { %v1968_v63 = vpop.f32.mrf.mxu0 }
 0xf3e   : > { %v1511_v1 = vmul.f32 0.70710677, %v1505_v62  ;;  %v1510_v6 = vmul.f32 0.5, %v1505_v62 }
 0xf3f   : > { %v1507_v2 = vpop.f32.mrf.mxu0 }
 0xf40   : > { %2126 = verf.f32 %v1511_v1 }
 0xf41   : > { %v1969_v4 = vpop.f32.mrf.mxu0 }
 0xf4d   : > { %v2127_v5 = vpop.eup %2126 }
 0xf4e   : > { %v1513_v7 = vadd.f32 1.0, %v2127_v5 }
 0xf50   : > { %v1514_v0 = vmul.f32 %v1513_v7, %v1510_v6 }
 0xf52   : > { %v1515_v8 = vpack.c.bf16 %v1514_v0, %v1514_v0 }
 0xf54   : > { %1979 = vmatmul.mubr.msk.bf16.vlgmr.msra.gmra.mxu1 %vm1555_vm8, %v1515_v8 }
0x1014   : > { %v1593_v10 = vpop.f32.mrf.mxu1 }
0x1015   : > { %v1594_v12 = vadd.f32 %v1821_v9, %v1593_v10 }
0x1016   : > { %v1980_v13 = vpop.f32.mrf.mxu1 }
0x1017   : > { %v1599_v14 = vadd.f32 %v1594_v12, %v1442_v54 }
0x1018   : > { %v1596_v28 = vpop.f32.mrf.mxu1 }
0x1019   : > { %v1602_v15 = vsel %vm616_vm1, %v1599_v14, 0.0 }
0x101a   : > { %1603 = vadd.xlane.f32.xlu0 %v1602_v15  ;;  %v1981_v16 = vpop.f32.mrf.mxu1 }
0x10a3   : > { %v1604_v17 = vpop.xlane.xlu0 %1603 }
0x10a4   : > { %v1605_v18 = vmul.f32 0.03125, %v1604_v17 }
0x10a6   : > { %v1606_v19 = vsub.f32 %v1599_v14, %v1605_v18 }
0x10a8   : > { %v1607_v20 = vmul.f32 %v1606_v19, %v1606_v19 }
0x10aa   : > { %v1608_v21 = vsel %vm616_vm1, %v1607_v20, 0.0 }
0x10ab   : > { %1609 = vadd.xlane.f32.xlu1 %v1608_v21 }
0x1134   : > { %v1610_v22 = vpop.xlane.xlu1 %1609 }
0x1135   : > { %v1611_v23 = vmul.f32 0.03125, %v1610_v22 }
0x1137   : > { %v1612_v24 = vadd.f32 1e-05, %v1611_v23 }
0x1139   : > { %2128 = vrsqrt.f32 %v1612_v24 }
0x1146   : > { %v2129_v11 = vpop.eup %2128 }
0x1147   : > { %v1614_v26 = vmul.f32 %v2129_v11, %v1606_v19 }
0x1149   : > { %v1621_v29 = vmul.f32 %v1827_v25, %v1614_v26 }
0x114b   : > { %v1628_v30 = vadd.f32 %v1828_v27, %v1621_v29 }
0x114d   : > { %1629 = vst.msk [vmem:[%s584_s6] sm:$0xff] %vm616_vm1, %v1628_v30 }
0x114e   : > { %2301 = shalt.err (!%p2298_p13)
}
0x114f   : > { %s2302_s30 = scalar_lea.hbm %s1642_s26, 128  ;;  %s2306_s16 = scalar_lea.hbm %s2913_s22, 256 }
0x1150   : > { %p2303_p6 = scmp.ne.s32.totalorder %s1642_s26, %s2302_s30  ;;  %p2307_p9 = scmp.lt.s32.totalorder %s1642_s26, %s2913_s22 }
0x1151   : > { %p2308_p10 = scmp.lt.s32.totalorder %s2306_s16, %s2302_s30 }
0x1152   : > { %p2304_p3 = pnand %p2303_p6, %p2914_p0 }
0x1153   : > { %p2309_p11 = por %p2308_p10, %p2307_p9 }
0x1154   : > { %p2305_p4 = pneg %p2304_p3 }
0x1156   : > { %p2310_p12 = pnand %p2309_p11, %p2305_p4 }
0x1158   : > { %2313 = shalt.err (!%p2310_p12)
}
0x1159   : > { %2004 = dma.vmem_to_hbm [thread:$0]  (%p2914_p0), %s1645_s27, 128, %s1642_s26, %s1631_s20  }
0x115a PF: > { %s1656_s6 = sand.u32 1, %s2352_s18   ;;  %p2915_p1 = scmp.ne.s32.totalorder %s2902_s29, 0 }
0x115b   : > { %p2916_p2 = scmp.ge.s32.totalorder %s2364_s21, 2  ;;  %s1657_s8 = scalar_lea.sflag [#allocation5], %s1656_s6 }
0x115d   : > { %p2027_p5 = pnand %p2916_p2, %p2915_p1 }
0x115f   : > { %p2028_p8 = pneg %p2027_p5 }
0x1161   : > { %2347 = dma.done.wait (%p2028_p8), %s1657_s8, 128  }
0x1162   : > { %2349 = vsyncadd (%p2028_p8), %s1657_s8, 4294967168  ;;  %s2917_s21 = sld [smem:[#allocation21_spill]]  ;;  %s2920_s18 = smov %s2356_s19 }
0x1163   : > { %s2918_s5 = sld [smem:[#allocation20_spill]] }
0x1164   : > { %s2919_s20 = sld [smem:[#allocation22_spill]] }
0x1168   : > { %p31_p7 = scmp.ge.s32.totalorder %s2917_s21, 4  }
0x1169   : > { %s2921_s19 = smov %s2918_s5 }
0x116a   :  { %33 = sbr.rel (!%p31_p7) target bundleno = 16 (0x10), region = 151 }
0x116f   :  { %1662 = vsyncpa [#allocation4], 1 }
0x1170   :  { %1664 = vsyncpa [#allocation4 + $0x1], 1 }
0x1171   :  { %1665 = vsyncpa [#allocation7], 1 }
0x1172   :  { %1666 = vsyncpa [#allocation10], 1 }
0x1173   :  { %1667 = vsyncpa [#allocation13], 1 }
0x1174   :  { %1668 = vsyncpa [#allocation5], 1 }
0x1175   :  { %1670 = vsyncpa [#allocation5 + $0x1], 1 }

</bundles_post_ra>
